<compile_context>
chip_gen: v5e
topology: v5e:2x2
jax: 0.10.0
libtpu: 0.0.40
codegen_flags: <defaults>
</compile_context>

<pallas_src>
import math
import functools

import jax
import jax.numpy as jnp
from jax.experimental import pallas as pl
from jax.experimental.pallas import tpu as pltpu

SQRT2 = math.sqrt(2.0)


# ----------------------------------------------------------------------------
# Block-diagonal DFT matrices for rfft / irfft (norm='ortho') over a batch tile.
#   Fcat : (2*Bt*NFP, Bt*N)   [yr ; yi] = Fcat @ X        (X is (Bt*N, D))
#   Acat : (Bt*N, 2*Bt*NFP)   y = Acat @ [zr ; zi]
# NFP = nf rounded up to a multiple of 8 (padded rows/cols are zero).
# ----------------------------------------------------------------------------
def build_dft_blockdiag(n: int, nf: int, bt: int):
    assert n % 2 == 0, "max_len must be even for this irfft construction"
    nfp = ((nf + 7) // 8) * 8

    t = jnp.arange(n, dtype=jnp.float32)
    k = jnp.arange(nf, dtype=jnp.float32)
    theta = 2.0 * jnp.pi * k[:, None] * t[None, :] / n            # (nf, n)
    scale = 1.0 / jnp.sqrt(jnp.float32(n))
    # rfft (ortho): Y = F @ x,  F[k,t] = exp(-2*pi*i*k*t/n)/sqrt(n)
    Fr = jnp.cos(theta) * scale                                   # (nf, n)
    Fi = -jnp.sin(theta) * scale                                  # (nf, n)
    # irfft (ortho): x = Ar @ Zr + Ai @ Zi (Hermitian reconstruction folded in)
    c = jnp.where((k == 0) | (k == n // 2), 1.0, 2.0)             # (nf,)
    Ar = (jnp.cos(theta) * c[:, None]).T * scale                  # (n, nf)
    Ai = (-jnp.sin(theta) * c[:, None]).T * scale                 # (n, nf)

    # pad the frequency axis to a multiple of 8 (sublane alignment)
    Frp = jnp.zeros((nfp, n), jnp.float32).at[:nf].set(Fr)
    Fip = jnp.zeros((nfp, n), jnp.float32).at[:nf].set(Fi)
    Arp = jnp.zeros((n, nfp), jnp.float32).at[:, :nf].set(Ar)
    Aip = jnp.zeros((n, nfp), jnp.float32).at[:, :nf].set(Ai)

    # block-diagonal over the batch tile (one matmul handles all Bt sequences)
    eye = jnp.eye(bt, dtype=jnp.float32)
    FrBD = jnp.einsum("ab,fn->afbn", eye, Frp).reshape(bt * nfp, bt * n)
    FiBD = jnp.einsum("ab,fn->afbn", eye, Fip).reshape(bt * nfp, bt * n)
    ArBD = jnp.einsum("ab,nf->anbf", eye, Arp).reshape(bt * n, bt * nfp)
    AiBD = jnp.einsum("ab,nf->anbf", eye, Aip).reshape(bt * n, bt * nfp)

    Fcat = jnp.concatenate([FrBD, FiBD], axis=0)                  # (2*bt*nfp, bt*n)
    Acat = jnp.concatenate([ArBD, AiBD], axis=1)                  # (bt*n, 2*bt*nfp)
    return Fcat, Acat, nfp


def _pad_rows(a, rows):
    return jnp.zeros((rows,) + a.shape[1:], a.dtype).at[: a.shape[0]].set(a)


# ----------------------------------------------------------------------------
# Kernel: full Encoder (all layers) for one batch tile.
# ----------------------------------------------------------------------------
def _layernorm(x, g, b, eps=1e-12):
    u = jnp.mean(x, axis=-1, keepdims=True)
    xc = x - u
    s = jnp.mean(xc * xc, axis=-1, keepdims=True)
    return g * (xc * jax.lax.rsqrt(s + eps)) + b


def encoder_kernel(x_ref, fcat_ref, acat_ref, wr_ref, wi_ref,
                   g1_ref, be1_ref, w1_ref, b1_ref, w2_ref, b2_ref,
                   g2_ref, be2_ref, o_ref):
    bt, n, d = x_ref.shape
    depth = w1_ref.shape[0]
    bnfp = wr_ref.shape[1]                      # Bt * NFP

    act = x_ref[...].reshape(bt * n, d)         # (Bt*N, D) f32, resident across layers
    fcat = fcat_ref[...]                        # (2*Bt*NFP, Bt*N)
    acat = acat_ref[...]                        # (Bt*N, 2*Bt*NFP)

    for l in range(depth):                      # depth is small & static -> unrolled
        # --- FilterLayer: batched rfft -> complex filter -> irfft (2 matmuls) ---
        y = jnp.dot(fcat, act, preferred_element_type=jnp.float32)   # (2*Bt*NFP, D)
        yr = y[:bnfp]
        yi = y[bnfp:]
        wr = wr_ref[l]                           # (Bt*NFP, D), pre-tiled per layer
        wi = wi_ref[l]
        zr = yr * wr - yi * wi
        zi = yr * wi + yi * wr
        z = jnp.concatenate([zr, zi], axis=0)                        # (2*Bt*NFP, D)
        yf = jnp.dot(acat, z, preferred_element_type=jnp.float32)    # (Bt*N, D)
        # dropout(p=0.5) is identity in eval mode
        h = _layernorm(yf + act, g1_ref[l], be1_ref[l])

        # --- FFN: bf16 matmuls, f32 accumulation; gelu(erf); add & norm ---
        t = jnp.dot(h.astype(jnp.bfloat16), w1_ref[l],
                    preferred_element_type=jnp.float32) + b1_ref[l]  # (Bt*N, 4D)
        t = t * 0.5 * (1.0 + jax.lax.erf(t * (1.0 / SQRT2)))
        t = jnp.dot(t.astype(jnp.bfloat16), w2_ref[l],
                    preferred_element_type=jnp.float32) + b2_ref[l]  # (Bt*N, D)
        act = _layernorm(t + h, g2_ref[l], be2_ref[l])

    o_ref[...] = act.reshape(bt, n, d).astype(o_ref.dtype)


# ----------------------------------------------------------------------------
# Wrapper: stack per-layer weights (leading depth axis) and launch one kernel.
# ----------------------------------------------------------------------------
def encoder_forward(x, layer_params, *, block_b=8):
    B, n, d = x.shape
    nf = n // 2 + 1
    block_b = min(block_b, B)
    assert B % block_b == 0, "batch must be divisible by the batch tile"
    # keep the batch-tile a multiple of 8 so sublane tiling of blocks is clean
    assert block_b % 8 == 0 or block_b == B

    Fcat, Acat, nfp = build_dft_blockdiag(n, nf, block_b)

    # Stack per-layer parameters along a leading depth axis; pre-tile the filter
    # weights to (Bt*NFP, D) so the in-kernel filter multiply is pure elementwise.
    WR = jnp.stack([jnp.tile(_pad_rows(p["wr"], nfp), (block_b, 1)) for p in layer_params])
    WI = jnp.stack([jnp.tile(_pad_rows(p["wi"], nfp), (block_b, 1)) for p in layer_params])
    G1 = jnp.stack([p["ln1_w"] for p in layer_params])
    BE1 = jnp.stack([p["ln1_b"] for p in layer_params])
    W1 = jnp.stack([p["w1"] for p in layer_params]).astype(jnp.bfloat16)
    B1 = jnp.stack([p["b1"] for p in layer_params])
    W2 = jnp.stack([p["w2"] for p in layer_params]).astype(jnp.bfloat16)
    B2 = jnp.stack([p["b2"] for p in layer_params])
    G2 = jnp.stack([p["ln2_w"] for p in layer_params])
    BE2 = jnp.stack([p["ln2_b"] for p in layer_params])

    inputs = (x, Fcat, Acat, WR, WI, G1, BE1, W1, B1, W2, B2, G2, BE2)

    in_specs = [pl.BlockSpec((block_b, n, d), lambda i: (i, 0, 0))]
    for a in inputs[1:]:
        in_specs.append(
            pl.BlockSpec(a.shape, functools.partial(lambda i, nd: (0,) * nd, nd=a.ndim)))

    return pl.pallas_call(
        encoder_kernel,
        out_shape=jax.ShapeDtypeStruct((B, n, d), x.dtype),
        grid=(B // block_b,),
        in_specs=in_specs,
        out_specs=pl.BlockSpec((block_b, n, d), lambda i: (i, 0, 0)),
        compiler_params=pltpu.CompilerParams(
            dimension_semantics=("parallel",)),   # even grid -> both v7x TCs busy
    )(*inputs)


# ----------------------------------------------------------------------------
# Pure-JAX reference (uses jnp.fft, all-f32) for correctness check.
# ----------------------------------------------------------------------------
def ref_forward(x, layer_params, n):
    for p in layer_params:
        filt = p["wr"] + 1j * p["wi"]                             # (nf, d)
        y = jnp.fft.rfft(x, axis=1, norm="ortho") * filt[None]
        y = jnp.fft.irfft(y, n=n, axis=1, norm="ortho").astype(jnp.float32)
        h = _layernorm(y + x, p["ln1_w"], p["ln1_b"])
        t = h @ p["w1"] + p["b1"]
        t = t * 0.5 * (1.0 + jax.lax.erf(t / SQRT2))
        t = t @ p["w2"] + p["b2"]
        x = _layernorm(t + h, p["ln2_w"], p["ln2_b"])
    return x


# ----------------------------------------------------------------------------
# Deterministic parameter init (synthetic, mirrors module __init__ shapes).
# ----------------------------------------------------------------------------
def init_layer_params(key, d, nf):
    ks = jax.random.split(key, 6)
    return {
        "wr":    jax.random.normal(ks[0], (nf, d), jnp.float32) * 0.02,
        "wi":    jax.random.normal(ks[1], (nf, d), jnp.float32) * 0.02,
        "ln1_w": jnp.ones((1, d), jnp.float32),
        "ln1_b": jnp.zeros((1, d), jnp.float32),
        "w1":    jax.random.normal(ks[2], (d, 4 * d), jnp.float32) * 0.02,
        "b1":    jax.random.normal(ks[3], (1, 4 * d), jnp.float32) * 0.01,
        "w2":    jax.random.normal(ks[4], (4 * d, d), jnp.float32) * 0.02,
        "b2":    jax.random.normal(ks[5], (1, d), jnp.float32) * 0.01,
        "ln2_w": jnp.ones((1, d), jnp.float32),
        "ln2_b": jnp.zeros((1, d), jnp.float32),
    }


if __name__ == "__main__":
    batch, max_len, d_model, depth = 16, 8, 32, 2
    nf = max_len // 2 + 1

    key = jax.random.PRNGKey(0)
    kx, kp = jax.random.split(key)
    x = jax.random.normal(kx, (batch, max_len, d_model), jnp.float32)

    layer_params = [init_layer_params(k, d_model, nf)
                    for k in jax.random.split(kp, depth)]

    out = encoder_forward(x, layer_params, block_b=8)
    out = jax.block_until_ready(out)

    ref = jax.block_until_ready(ref_forward(x, layer_params, max_len))
    assert out.shape == (batch, max_len, d_model)
    # tolerance accounts for bf16 FFN matmul operands (f32 accumulation)
    err = float(jnp.max(jnp.abs(out - ref)))
    assert jnp.allclose(out, ref, atol=2e-2, rtol=2e-2), err

    print("KERNEL_OK")
</pallas_src>

<mosaic_0001>
module attributes {stable_mosaic.version = 11 : i64} {
  func.func @encoder_kernel(%arg0: i32, %arg1: memref<8x8x32xf32, #tpu.memory_space<vmem>>, %arg2: memref<128x64xf32, #tpu.memory_space<vmem>>, %arg3: memref<64x128xf32, #tpu.memory_space<vmem>>, %arg4: memref<2x64x32xf32, #tpu.memory_space<vmem>>, %arg5: memref<2x64x32xf32, #tpu.memory_space<vmem>>, %arg6: memref<2x1x32xf32, #tpu.memory_space<vmem>>, %arg7: memref<2x1x32xf32, #tpu.memory_space<vmem>>, %arg8: memref<2x32x128xbf16, #tpu.memory_space<vmem>>, %arg9: memref<2x1x128xf32, #tpu.memory_space<vmem>>, %arg10: memref<2x128x32xbf16, #tpu.memory_space<vmem>>, %arg11: memref<2x1x32xf32, #tpu.memory_space<vmem>>, %arg12: memref<2x1x32xf32, #tpu.memory_space<vmem>>, %arg13: memref<2x1x32xf32, #tpu.memory_space<vmem>>, %arg14: memref<8x8x32xf32, #tpu.memory_space<vmem>>) attributes {dimension_semantics = [#tpu.dimension_semantics<parallel>], iteration_bounds = array<i64: 2>, scalar_prefetch = 0 : i64, scratch_operands = 0 : i64, tpu.core_type = #tpu.core_type<tc>, window_params = [{transform_indices = @transform_0, window_bounds = array<i64: 8, 8, 32>}, {pipeline_mode = #tpu.pipeline_mode<synchronous>, transform_indices = @transform_1, window_bounds = array<i64: 128, 64>}, {pipeline_mode = #tpu.pipeline_mode<synchronous>, transform_indices = @transform_2, window_bounds = array<i64: 64, 128>}, {pipeline_mode = #tpu.pipeline_mode<synchronous>, transform_indices = @transform_3, window_bounds = array<i64: 2, 64, 32>}, {pipeline_mode = #tpu.pipeline_mode<synchronous>, transform_indices = @transform_4, window_bounds = array<i64: 2, 64, 32>}, {pipeline_mode = #tpu.pipeline_mode<synchronous>, transform_indices = @transform_5, window_bounds = array<i64: 2, 1, 32>}, {pipeline_mode = #tpu.pipeline_mode<synchronous>, transform_indices = @transform_6, window_bounds = array<i64: 2, 1, 32>}, {pipeline_mode = #tpu.pipeline_mode<synchronous>, transform_indices = @transform_7, window_bounds = array<i64: 2, 32, 128>}, {pipeline_mode = #tpu.pipeline_mode<synchronous>, transform_indices = @transform_8, window_bounds = array<i64: 2, 1, 128>}, {pipeline_mode = #tpu.pipeline_mode<synchronous>, transform_indices = @transform_9, window_bounds = array<i64: 2, 128, 32>}, {pipeline_mode = #tpu.pipeline_mode<synchronous>, transform_indices = @transform_10, window_bounds = array<i64: 2, 1, 32>}, {pipeline_mode = #tpu.pipeline_mode<synchronous>, transform_indices = @transform_11, window_bounds = array<i64: 2, 1, 32>}, {pipeline_mode = #tpu.pipeline_mode<synchronous>, transform_indices = @transform_12, window_bounds = array<i64: 2, 1, 32>}, {transform_indices = @transform_13, window_bounds = array<i64: 8, 8, 32>}]} {
    %c0 = arith.constant 0 : index
    %c0_0 = arith.constant 0 : index
    %c0_1 = arith.constant 0 : index
    %0 = vector.load %arg1[%c0, %c0_0, %c0_1] : memref<8x8x32xf32, #tpu.memory_space<vmem>>, vector<8x8x32xf32>
    %1 = vector.shape_cast %0 : vector<8x8x32xf32> to vector<64x32xf32>
    %c0_2 = arith.constant 0 : index
    %c0_3 = arith.constant 0 : index
    %2 = vector.load %arg2[%c0_2, %c0_3] : memref<128x64xf32, #tpu.memory_space<vmem>>, vector<128x64xf32>
    %c0_4 = arith.constant 0 : index
    %c0_5 = arith.constant 0 : index
    %3 = vector.load %arg3[%c0_4, %c0_5] : memref<64x128xf32, #tpu.memory_space<vmem>>, vector<64x128xf32>
    %cst = arith.constant dense<0.000000e+00> : vector<128x32xf32>
    %4 = tpu.matmul %2, %1, %cst {dimension_numbers = #tpu.dot_dimension_numbers<[1], [0], [0], [1], [0, 0, 1, 1], [], []>} : vector<128x64xf32>, vector<64x32xf32>, vector<128x32xf32> -> vector<128x32xf32>
    %5 = vector.extract_strided_slice %4 {offsets = [0, 0], sizes = [64, 32], strides = [1, 1]} : vector<128x32xf32> to vector<64x32xf32>
    %6 = vector.extract_strided_slice %4 {offsets = [64, 0], sizes = [64, 32], strides = [1, 1]} : vector<128x32xf32> to vector<64x32xf32>
    %c0_6 = arith.constant 0 : index
    %c0_7 = arith.constant 0 : index
    %c0_8 = arith.constant 0 : index
    %7 = vector.load %arg4[%c0_6, %c0_7, %c0_8] : memref<2x64x32xf32, #tpu.memory_space<vmem>>, vector<1x64x32xf32>
    %8 = vector.shape_cast %7 : vector<1x64x32xf32> to vector<64x32xf32>
    %c0_9 = arith.constant 0 : index
    %c0_10 = arith.constant 0 : index
    %c0_11 = arith.constant 0 : index
    %9 = vector.load %arg5[%c0_9, %c0_10, %c0_11] : memref<2x64x32xf32, #tpu.memory_space<vmem>>, vector<1x64x32xf32>
    %10 = vector.shape_cast %9 : vector<1x64x32xf32> to vector<64x32xf32>
    %11 = arith.mulf %5, %8 : vector<64x32xf32>
    %12 = arith.mulf %6, %10 : vector<64x32xf32>
    %13 = arith.subf %11, %12 : vector<64x32xf32>
    %14 = arith.mulf %5, %10 : vector<64x32xf32>
    %15 = arith.mulf %6, %8 : vector<64x32xf32>
    %16 = arith.addf %14, %15 : vector<64x32xf32>
    %17 = tpu.concatenate %13, %16 in 0 : vector<64x32xf32>, vector<64x32xf32> -> vector<128x32xf32>
    %cst_12 = arith.constant dense<0.000000e+00> : vector<64x32xf32>
    %18 = tpu.matmul %3, %17, %cst_12 {dimension_numbers = #tpu.dot_dimension_numbers<[1], [0], [0], [1], [0, 0, 1, 1], [], []>} : vector<64x128xf32>, vector<128x32xf32>, vector<64x32xf32> -> vector<64x32xf32>
    %19 = arith.addf %18, %1 : vector<64x32xf32>
    %c0_13 = arith.constant 0 : index
    %c0_14 = arith.constant 0 : index
    %c0_15 = arith.constant 0 : index
    %20 = vector.load %arg6[%c0_13, %c0_14, %c0_15] : memref<2x1x32xf32, #tpu.memory_space<vmem>>, vector<1x1x32xf32>
    %21 = vector.shape_cast %20 : vector<1x1x32xf32> to vector<1x32xf32>
    %c0_16 = arith.constant 0 : index
    %c0_17 = arith.constant 0 : index
    %c0_18 = arith.constant 0 : index
    %22 = vector.load %arg7[%c0_16, %c0_17, %c0_18] : memref<2x1x32xf32, #tpu.memory_space<vmem>>, vector<1x1x32xf32>
    %23 = vector.shape_cast %22 : vector<1x1x32xf32> to vector<1x32xf32>
    %cst_19 = arith.constant dense<0.000000e+00> : vector<64xf32>
    %24 = vector.multi_reduction <add>, %19, %cst_19 [1] : vector<64x32xf32> to vector<64xf32>
    %25 = vector.shape_cast %24 : vector<64xf32> to vector<64x1xf32>
    %cst_20 = arith.constant 3.200000e+01 : f32
    %26 = vector.broadcast %cst_20 : f32 to vector<64x1xf32>
    %27 = arith.divf %25, %26 : vector<64x1xf32>
    %28 = vector.broadcast %27 : vector<64x1xf32> to vector<64x32xf32>
    %29 = arith.subf %19, %28 : vector<64x32xf32>
    %30 = arith.mulf %29, %29 : vector<64x32xf32>
    %cst_21 = arith.constant dense<0.000000e+00> : vector<64xf32>
    %31 = vector.multi_reduction <add>, %30, %cst_21 [1] : vector<64x32xf32> to vector<64xf32>
    %32 = vector.shape_cast %31 : vector<64xf32> to vector<64x1xf32>
    %cst_22 = arith.constant 3.200000e+01 : f32
    %33 = vector.broadcast %cst_22 : f32 to vector<64x1xf32>
    %34 = arith.divf %32, %33 : vector<64x1xf32>
    %cst_23 = arith.constant 9.99999996E-13 : f32
    %35 = vector.broadcast %cst_23 : f32 to vector<64x1xf32>
    %36 = arith.addf %34, %35 : vector<64x1xf32>
    %37 = math.rsqrt %36 : vector<64x1xf32>
    %38 = vector.broadcast %37 : vector<64x1xf32> to vector<64x32xf32>
    %39 = arith.mulf %29, %38 : vector<64x32xf32>
    %40 = vector.broadcast %21 : vector<1x32xf32> to vector<64x32xf32>
    %41 = arith.mulf %40, %39 : vector<64x32xf32>
    %42 = vector.broadcast %23 : vector<1x32xf32> to vector<64x32xf32>
    %43 = arith.addf %41, %42 : vector<64x32xf32>
    %44 = arith.truncf %43 : vector<64x32xf32> to vector<64x32xbf16>
    %c0_24 = arith.constant 0 : index
    %c0_25 = arith.constant 0 : index
    %c0_26 = arith.constant 0 : index
    %45 = vector.load %arg8[%c0_24, %c0_25, %c0_26] : memref<2x32x128xbf16, #tpu.memory_space<vmem>>, vector<1x32x128xbf16>
    %46 = vector.shape_cast %45 : vector<1x32x128xbf16> to vector<32x128xbf16>
    %cst_27 = arith.constant dense<0.000000e+00> : vector<64x128xf32>
    %47 = tpu.matmul %44, %46, %cst_27 {dimension_numbers = #tpu.dot_dimension_numbers<[1], [0], [0], [1], [0, 0, 1, 1], [], []>} : vector<64x32xbf16>, vector<32x128xbf16>, vector<64x128xf32> -> vector<64x128xf32>
    %c0_28 = arith.constant 0 : index
    %c0_29 = arith.constant 0 : index
    %c0_30 = arith.constant 0 : index
    %48 = vector.load %arg9[%c0_28, %c0_29, %c0_30] : memref<2x1x128xf32, #tpu.memory_space<vmem>>, vector<1x1x128xf32>
    %49 = vector.shape_cast %48 : vector<1x1x128xf32> to vector<1x128xf32>
    %50 = vector.broadcast %49 : vector<1x128xf32> to vector<64x128xf32>
    %51 = arith.addf %47, %50 : vector<64x128xf32>
    %cst_31 = arith.constant 5.000000e-01 : f32
    %52 = vector.broadcast %cst_31 : f32 to vector<64x128xf32>
    %53 = arith.mulf %51, %52 : vector<64x128xf32>
    %cst_32 = arith.constant 0.707106769 : f32
    %54 = vector.broadcast %cst_32 : f32 to vector<64x128xf32>
    %55 = arith.mulf %51, %54 : vector<64x128xf32>
    %56 = math.erf %55 : vector<64x128xf32>
    %cst_33 = arith.constant 1.000000e+00 : f32
    %57 = vector.broadcast %cst_33 : f32 to vector<64x128xf32>
    %58 = arith.addf %57, %56 : vector<64x128xf32>
    %59 = arith.mulf %53, %58 : vector<64x128xf32>
    %60 = arith.truncf %59 : vector<64x128xf32> to vector<64x128xbf16>
    %c0_34 = arith.constant 0 : index
    %c0_35 = arith.constant 0 : index
    %c0_36 = arith.constant 0 : index
    %61 = vector.load %arg10[%c0_34, %c0_35, %c0_36] : memref<2x128x32xbf16, #tpu.memory_space<vmem>>, vector<1x128x32xbf16>
    %62 = vector.shape_cast %61 : vector<1x128x32xbf16> to vector<128x32xbf16>
    %cst_37 = arith.constant dense<0.000000e+00> : vector<64x32xf32>
    %63 = tpu.matmul %60, %62, %cst_37 {dimension_numbers = #tpu.dot_dimension_numbers<[1], [0], [0], [1], [0, 0, 1, 1], [], []>} : vector<64x128xbf16>, vector<128x32xbf16>, vector<64x32xf32> -> vector<64x32xf32>
    %c0_38 = arith.constant 0 : index
    %c0_39 = arith.constant 0 : index
    %c0_40 = arith.constant 0 : index
    %64 = vector.load %arg11[%c0_38, %c0_39, %c0_40] : memref<2x1x32xf32, #tpu.memory_space<vmem>>, vector<1x1x32xf32>
    %65 = vector.shape_cast %64 : vector<1x1x32xf32> to vector<1x32xf32>
    %66 = vector.broadcast %65 : vector<1x32xf32> to vector<64x32xf32>
    %67 = arith.addf %63, %66 : vector<64x32xf32>
    %68 = arith.addf %67, %43 : vector<64x32xf32>
    %c0_41 = arith.constant 0 : index
    %c0_42 = arith.constant 0 : index
    %c0_43 = arith.constant 0 : index
    %69 = vector.load %arg12[%c0_41, %c0_42, %c0_43] : memref<2x1x32xf32, #tpu.memory_space<vmem>>, vector<1x1x32xf32>
    %70 = vector.shape_cast %69 : vector<1x1x32xf32> to vector<1x32xf32>
    %c0_44 = arith.constant 0 : index
    %c0_45 = arith.constant 0 : index
    %c0_46 = arith.constant 0 : index
    %71 = vector.load %arg13[%c0_44, %c0_45, %c0_46] : memref<2x1x32xf32, #tpu.memory_space<vmem>>, vector<1x1x32xf32>
    %72 = vector.shape_cast %71 : vector<1x1x32xf32> to vector<1x32xf32>
    %cst_47 = arith.constant dense<0.000000e+00> : vector<64xf32>
    %73 = vector.multi_reduction <add>, %68, %cst_47 [1] : vector<64x32xf32> to vector<64xf32>
    %74 = vector.shape_cast %73 : vector<64xf32> to vector<64x1xf32>
    %cst_48 = arith.constant 3.200000e+01 : f32
    %75 = vector.broadcast %cst_48 : f32 to vector<64x1xf32>
    %76 = arith.divf %74, %75 : vector<64x1xf32>
    %77 = vector.broadcast %76 : vector<64x1xf32> to vector<64x32xf32>
    %78 = arith.subf %68, %77 : vector<64x32xf32>
    %79 = arith.mulf %78, %78 : vector<64x32xf32>
    %cst_49 = arith.constant dense<0.000000e+00> : vector<64xf32>
    %80 = vector.multi_reduction <add>, %79, %cst_49 [1] : vector<64x32xf32> to vector<64xf32>
    %81 = vector.shape_cast %80 : vector<64xf32> to vector<64x1xf32>
    %cst_50 = arith.constant 3.200000e+01 : f32
    %82 = vector.broadcast %cst_50 : f32 to vector<64x1xf32>
    %83 = arith.divf %81, %82 : vector<64x1xf32>
    %cst_51 = arith.constant 9.99999996E-13 : f32
    %84 = vector.broadcast %cst_51 : f32 to vector<64x1xf32>
    %85 = arith.addf %83, %84 : vector<64x1xf32>
    %86 = math.rsqrt %85 : vector<64x1xf32>
    %87 = vector.broadcast %86 : vector<64x1xf32> to vector<64x32xf32>
    %88 = arith.mulf %78, %87 : vector<64x32xf32>
    %89 = vector.broadcast %70 : vector<1x32xf32> to vector<64x32xf32>
    %90 = arith.mulf %89, %88 : vector<64x32xf32>
    %91 = vector.broadcast %72 : vector<1x32xf32> to vector<64x32xf32>
    %92 = arith.addf %90, %91 : vector<64x32xf32>
    %cst_52 = arith.constant dense<0.000000e+00> : vector<128x32xf32>
    %93 = tpu.matmul %2, %92, %cst_52 {dimension_numbers = #tpu.dot_dimension_numbers<[1], [0], [0], [1], [0, 0, 1, 1], [], []>} : vector<128x64xf32>, vector<64x32xf32>, vector<128x32xf32> -> vector<128x32xf32>
    %94 = vector.extract_strided_slice %93 {offsets = [0, 0], sizes = [64, 32], strides = [1, 1]} : vector<128x32xf32> to vector<64x32xf32>
    %95 = vector.extract_strided_slice %93 {offsets = [64, 0], sizes = [64, 32], strides = [1, 1]} : vector<128x32xf32> to vector<64x32xf32>
    %c1 = arith.constant 1 : index
    %c0_53 = arith.constant 0 : index
    %c0_54 = arith.constant 0 : index
    %96 = vector.load %arg4[%c1, %c0_53, %c0_54] : memref<2x64x32xf32, #tpu.memory_space<vmem>>, vector<1x64x32xf32>
    %97 = vector.shape_cast %96 : vector<1x64x32xf32> to vector<64x32xf32>
    %c1_55 = arith.constant 1 : index
    %c0_56 = arith.constant 0 : index
    %c0_57 = arith.constant 0 : index
    %98 = vector.load %arg5[%c1_55, %c0_56, %c0_57] : memref<2x64x32xf32, #tpu.memory_space<vmem>>, vector<1x64x32xf32>
    %99 = vector.shape_cast %98 : vector<1x64x32xf32> to vector<64x32xf32>
    %100 = arith.mulf %94, %97 : vector<64x32xf32>
    %101 = arith.mulf %95, %99 : vector<64x32xf32>
    %102 = arith.subf %100, %101 : vector<64x32xf32>
    %103 = arith.mulf %94, %99 : vector<64x32xf32>
    %104 = arith.mulf %95, %97 : vector<64x32xf32>
    %105 = arith.addf %103, %104 : vector<64x32xf32>
    %106 = tpu.concatenate %102, %105 in 0 : vector<64x32xf32>, vector<64x32xf32> -> vector<128x32xf32>
    %cst_58 = arith.constant dense<0.000000e+00> : vector<64x32xf32>
    %107 = tpu.matmul %3, %106, %cst_58 {dimension_numbers = #tpu.dot_dimension_numbers<[1], [0], [0], [1], [0, 0, 1, 1], [], []>} : vector<64x128xf32>, vector<128x32xf32>, vector<64x32xf32> -> vector<64x32xf32>
    %108 = arith.addf %107, %92 : vector<64x32xf32>
    %c1_59 = arith.constant 1 : index
    %c0_60 = arith.constant 0 : index
    %c0_61 = arith.constant 0 : index
    %109 = vector.load %arg6[%c1_59, %c0_60, %c0_61] : memref<2x1x32xf32, #tpu.memory_space<vmem>>, vector<1x1x32xf32>
    %110 = vector.shape_cast %109 : vector<1x1x32xf32> to vector<1x32xf32>
    %c1_62 = arith.constant 1 : index
    %c0_63 = arith.constant 0 : index
    %c0_64 = arith.constant 0 : index
    %111 = vector.load %arg7[%c1_62, %c0_63, %c0_64] : memref<2x1x32xf32, #tpu.memory_space<vmem>>, vector<1x1x32xf32>
    %112 = vector.shape_cast %111 : vector<1x1x32xf32> to vector<1x32xf32>
    %cst_65 = arith.constant dense<0.000000e+00> : vector<64xf32>
    %113 = vector.multi_reduction <add>, %108, %cst_65 [1] : vector<64x32xf32> to vector<64xf32>
    %114 = vector.shape_cast %113 : vector<64xf32> to vector<64x1xf32>
    %cst_66 = arith.constant 3.200000e+01 : f32
    %115 = vector.broadcast %cst_66 : f32 to vector<64x1xf32>
    %116 = arith.divf %114, %115 : vector<64x1xf32>
    %117 = vector.broadcast %116 : vector<64x1xf32> to vector<64x32xf32>
    %118 = arith.subf %108, %117 : vector<64x32xf32>
    %119 = arith.mulf %118, %118 : vector<64x32xf32>
    %cst_67 = arith.constant dense<0.000000e+00> : vector<64xf32>
    %120 = vector.multi_reduction <add>, %119, %cst_67 [1] : vector<64x32xf32> to vector<64xf32>
    %121 = vector.shape_cast %120 : vector<64xf32> to vector<64x1xf32>
    %cst_68 = arith.constant 3.200000e+01 : f32
    %122 = vector.broadcast %cst_68 : f32 to vector<64x1xf32>
    %123 = arith.divf %121, %122 : vector<64x1xf32>
    %cst_69 = arith.constant 9.99999996E-13 : f32
    %124 = vector.broadcast %cst_69 : f32 to vector<64x1xf32>
    %125 = arith.addf %123, %124 : vector<64x1xf32>
    %126 = math.rsqrt %125 : vector<64x1xf32>
    %127 = vector.broadcast %126 : vector<64x1xf32> to vector<64x32xf32>
    %128 = arith.mulf %118, %127 : vector<64x32xf32>
    %129 = vector.broadcast %110 : vector<1x32xf32> to vector<64x32xf32>
    %130 = arith.mulf %129, %128 : vector<64x32xf32>
    %131 = vector.broadcast %112 : vector<1x32xf32> to vector<64x32xf32>
    %132 = arith.addf %130, %131 : vector<64x32xf32>
    %133 = arith.truncf %132 : vector<64x32xf32> to vector<64x32xbf16>
    %c1_70 = arith.constant 1 : index
    %c0_71 = arith.constant 0 : index
    %c0_72 = arith.constant 0 : index
    %134 = vector.load %arg8[%c1_70, %c0_71, %c0_72] : memref<2x32x128xbf16, #tpu.memory_space<vmem>>, vector<1x32x128xbf16>
    %135 = vector.shape_cast %134 : vector<1x32x128xbf16> to vector<32x128xbf16>
    %cst_73 = arith.constant dense<0.000000e+00> : vector<64x128xf32>
    %136 = tpu.matmul %133, %135, %cst_73 {dimension_numbers = #tpu.dot_dimension_numbers<[1], [0], [0], [1], [0, 0, 1, 1], [], []>} : vector<64x32xbf16>, vector<32x128xbf16>, vector<64x128xf32> -> vector<64x128xf32>
    %c1_74 = arith.constant 1 : index
    %c0_75 = arith.constant 0 : index
    %c0_76 = arith.constant 0 : index
    %137 = vector.load %arg9[%c1_74, %c0_75, %c0_76] : memref<2x1x128xf32, #tpu.memory_space<vmem>>, vector<1x1x128xf32>
    %138 = vector.shape_cast %137 : vector<1x1x128xf32> to vector<1x128xf32>
    %139 = vector.broadcast %138 : vector<1x128xf32> to vector<64x128xf32>
    %140 = arith.addf %136, %139 : vector<64x128xf32>
    %cst_77 = arith.constant 5.000000e-01 : f32
    %141 = vector.broadcast %cst_77 : f32 to vector<64x128xf32>
    %142 = arith.mulf %140, %141 : vector<64x128xf32>
    %cst_78 = arith.constant 0.707106769 : f32
    %143 = vector.broadcast %cst_78 : f32 to vector<64x128xf32>
    %144 = arith.mulf %140, %143 : vector<64x128xf32>
    %145 = math.erf %144 : vector<64x128xf32>
    %cst_79 = arith.constant 1.000000e+00 : f32
    %146 = vector.broadcast %cst_79 : f32 to vector<64x128xf32>
    %147 = arith.addf %146, %145 : vector<64x128xf32>
    %148 = arith.mulf %142, %147 : vector<64x128xf32>
    %149 = arith.truncf %148 : vector<64x128xf32> to vector<64x128xbf16>
    %c1_80 = arith.constant 1 : index
    %c0_81 = arith.constant 0 : index
    %c0_82 = arith.constant 0 : index
    %150 = vector.load %arg10[%c1_80, %c0_81, %c0_82] : memref<2x128x32xbf16, #tpu.memory_space<vmem>>, vector<1x128x32xbf16>
    %151 = vector.shape_cast %150 : vector<1x128x32xbf16> to vector<128x32xbf16>
    %cst_83 = arith.constant dense<0.000000e+00> : vector<64x32xf32>
    %152 = tpu.matmul %149, %151, %cst_83 {dimension_numbers = #tpu.dot_dimension_numbers<[1], [0], [0], [1], [0, 0, 1, 1], [], []>} : vector<64x128xbf16>, vector<128x32xbf16>, vector<64x32xf32> -> vector<64x32xf32>
    %c1_84 = arith.constant 1 : index
    %c0_85 = arith.constant 0 : index
    %c0_86 = arith.constant 0 : index
    %153 = vector.load %arg11[%c1_84, %c0_85, %c0_86] : memref<2x1x32xf32, #tpu.memory_space<vmem>>, vector<1x1x32xf32>
    %154 = vector.shape_cast %153 : vector<1x1x32xf32> to vector<1x32xf32>
    %155 = vector.broadcast %154 : vector<1x32xf32> to vector<64x32xf32>
    %156 = arith.addf %152, %155 : vector<64x32xf32>
    %157 = arith.addf %156, %132 : vector<64x32xf32>
    %c1_87 = arith.constant 1 : index
    %c0_88 = arith.constant 0 : index
    %c0_89 = arith.constant 0 : index
    %158 = vector.load %arg12[%c1_87, %c0_88, %c0_89] : memref<2x1x32xf32, #tpu.memory_space<vmem>>, vector<1x1x32xf32>
    %159 = vector.shape_cast %158 : vector<1x1x32xf32> to vector<1x32xf32>
    %c1_90 = arith.constant 1 : index
    %c0_91 = arith.constant 0 : index
    %c0_92 = arith.constant 0 : index
    %160 = vector.load %arg13[%c1_90, %c0_91, %c0_92] : memref<2x1x32xf32, #tpu.memory_space<vmem>>, vector<1x1x32xf32>
    %161 = vector.shape_cast %160 : vector<1x1x32xf32> to vector<1x32xf32>
    %cst_93 = arith.constant dense<0.000000e+00> : vector<64xf32>
    %162 = vector.multi_reduction <add>, %157, %cst_93 [1] : vector<64x32xf32> to vector<64xf32>
    %163 = vector.shape_cast %162 : vector<64xf32> to vector<64x1xf32>
    %cst_94 = arith.constant 3.200000e+01 : f32
    %164 = vector.broadcast %cst_94 : f32 to vector<64x1xf32>
    %165 = arith.divf %163, %164 : vector<64x1xf32>
    %166 = vector.broadcast %165 : vector<64x1xf32> to vector<64x32xf32>
    %167 = arith.subf %157, %166 : vector<64x32xf32>
    %168 = arith.mulf %167, %167 : vector<64x32xf32>
    %cst_95 = arith.constant dense<0.000000e+00> : vector<64xf32>
    %169 = vector.multi_reduction <add>, %168, %cst_95 [1] : vector<64x32xf32> to vector<64xf32>
    %170 = vector.shape_cast %169 : vector<64xf32> to vector<64x1xf32>
    %cst_96 = arith.constant 3.200000e+01 : f32
    %171 = vector.broadcast %cst_96 : f32 to vector<64x1xf32>
    %172 = arith.divf %170, %171 : vector<64x1xf32>
    %cst_97 = arith.constant 9.99999996E-13 : f32
    %173 = vector.broadcast %cst_97 : f32 to vector<64x1xf32>
    %174 = arith.addf %172, %173 : vector<64x1xf32>
    %175 = math.rsqrt %174 : vector<64x1xf32>
    %176 = vector.broadcast %175 : vector<64x1xf32> to vector<64x32xf32>
    %177 = arith.mulf %167, %176 : vector<64x32xf32>
    %178 = vector.broadcast %159 : vector<1x32xf32> to vector<64x32xf32>
    %179 = arith.mulf %178, %177 : vector<64x32xf32>
    %180 = vector.broadcast %161 : vector<1x32xf32> to vector<64x32xf32>
    %181 = arith.addf %179, %180 : vector<64x32xf32>
    %182 = vector.shape_cast %181 : vector<64x32xf32> to vector<8x8x32xf32>
    %c0_98 = arith.constant 0 : index
    %c0_99 = arith.constant 0 : index
    %c0_100 = arith.constant 0 : index
    %183 = vector.load %arg14[%c0_98, %c0_99, %c0_100] : memref<8x8x32xf32, #tpu.memory_space<vmem>>, vector<8x8x32xf32>
    tpu.vector_store %arg14[%c0_98, %c0_99, %c0_100], %182 {strides = array<i32>} : memref<8x8x32xf32, #tpu.memory_space<vmem>>, vector<8x8x32xf32>,
    return
  }
  func.func @transform_0(%arg0: i32) -> (i32, i32, i32) {
    %c0_i32 = arith.constant 0 : i32
    %c0_i32_0 = arith.constant 0 : i32
    %c0_i32_1 = arith.constant 0 : i32
    return %arg0, %c0_i32, %c0_i32_0 : i32, i32, i32
  }
  func.func @transform_1(%arg0: i32) -> (i32, i32) {
    %c0_i32 = arith.constant 0 : i32
    %c0_i32_0 = arith.constant 0 : i32
    %c0_i32_1 = arith.constant 0 : i32
    return %c0_i32, %c0_i32_0 : i32, i32
  }
  func.func @transform_2(%arg0: i32) -> (i32, i32) {
    %c0_i32 = arith.constant 0 : i32
    %c0_i32_0 = arith.constant 0 : i32
    %c0_i32_1 = arith.constant 0 : i32
    return %c0_i32, %c0_i32_0 : i32, i32
  }
  func.func @transform_3(%arg0: i32) -> (i32, i32, i32) {
    %c0_i32 = arith.constant 0 : i32
    %c0_i32_0 = arith.constant 0 : i32
    %c0_i32_1 = arith.constant 0 : i32
    %c0_i32_2 = arith.constant 0 : i32
    return %c0_i32, %c0_i32_0, %c0_i32_1 : i32, i32, i32
  }
  func.func @transform_4(%arg0: i32) -> (i32, i32, i32) {
    %c0_i32 = arith.constant 0 : i32
    %c0_i32_0 = arith.constant 0 : i32
    %c0_i32_1 = arith.constant 0 : i32
    %c0_i32_2 = arith.constant 0 : i32
    return %c0_i32, %c0_i32_0, %c0_i32_1 : i32, i32, i32
  }
  func.func @transform_5(%arg0: i32) -> (i32, i32, i32) {
    %c0_i32 = arith.constant 0 : i32
    %c0_i32_0 = arith.constant 0 : i32
    %c0_i32_1 = arith.constant 0 : i32
    %c0_i32_2 = arith.constant 0 : i32
    return %c0_i32, %c0_i32_0, %c0_i32_1 : i32, i32, i32
  }
  func.func @transform_6(%arg0: i32) -> (i32, i32, i32) {
    %c0_i32 = arith.constant 0 : i32
    %c0_i32_0 = arith.constant 0 : i32
    %c0_i32_1 = arith.constant 0 : i32
    %c0_i32_2 = arith.constant 0 : i32
    return %c0_i32, %c0_i32_0, %c0_i32_1 : i32, i32, i32
  }
  func.func @transform_7(%arg0: i32) -> (i32, i32, i32) {
    %c0_i32 = arith.constant 0 : i32
    %c0_i32_0 = arith.constant 0 : i32
    %c0_i32_1 = arith.constant 0 : i32
    %c0_i32_2 = arith.constant 0 : i32
    return %c0_i32, %c0_i32_0, %c0_i32_1 : i32, i32, i32
  }
  func.func @transform_8(%arg0: i32) -> (i32, i32, i32) {
    %c0_i32 = arith.constant 0 : i32
    %c0_i32_0 = arith.constant 0 : i32
    %c0_i32_1 = arith.constant 0 : i32
    %c0_i32_2 = arith.constant 0 : i32
    return %c0_i32, %c0_i32_0, %c0_i32_1 : i32, i32, i32
  }
  func.func @transform_9(%arg0: i32) -> (i32, i32, i32) {
    %c0_i32 = arith.constant 0 : i32
    %c0_i32_0 = arith.constant 0 : i32
    %c0_i32_1 = arith.constant 0 : i32
    %c0_i32_2 = arith.constant 0 : i32
    return %c0_i32, %c0_i32_0, %c0_i32_1 : i32, i32, i32
  }
  func.func @transform_10(%arg0: i32) -> (i32, i32, i32) {
    %c0_i32 = arith.constant 0 : i32
    %c0_i32_0 = arith.constant 0 : i32
    %c0_i32_1 = arith.constant 0 : i32
    %c0_i32_2 = arith.constant 0 : i32
    return %c0_i32, %c0_i32_0, %c0_i32_1 : i32, i32, i32
  }
  func.func @transform_11(%arg0: i32) -> (i32, i32, i32) {
    %c0_i32 = arith.constant 0 : i32
    %c0_i32_0 = arith.constant 0 : i32
    %c0_i32_1 = arith.constant 0 : i32
    %c0_i32_2 = arith.constant 0 : i32
    return %c0_i32, %c0_i32_0, %c0_i32_1 : i32, i32, i32
  }
  func.func @transform_12(%arg0: i32) -> (i32, i32, i32) {
    %c0_i32 = arith.constant 0 : i32
    %c0_i32_0 = arith.constant 0 : i32
    %c0_i32_1 = arith.constant 0 : i32
    %c0_i32_2 = arith.constant 0 : i32
    return %c0_i32, %c0_i32_0, %c0_i32_1 : i32, i32, i32
  }
  func.func @transform_13(%arg0: i32) -> (i32, i32, i32) {
    %c0_i32 = arith.constant 0 : i32
    %c0_i32_0 = arith.constant 0 : i32
    %c0_i32_1 = arith.constant 0 : i32
    return %arg0, %c0_i32, %c0_i32_0 : i32, i32, i32
  }
}

</mosaic_0001>

<bundles_post_ra>
// kernel: tpu_custom_call.1
= control target key start
LH: loop header
LB: loop body
LE: loop exit
PB: predicated region body
PF: predicated region fallthrough
CT: control target
= control target key end

     0   :  { %s4894_s0 = inlined_call_operand.vmem [shape: f32[16,8,32], index: 0, kind: input, shape index: {}]   ;;  %s4895_s1 = inlined_call_operand.vmem [shape: f32[128,64], index: 1, kind: input, shape index: {}]   ;;  %s4896_s2 = inlined_call_operand.vmem [shape: f32[64,128], index: 2, kind: input, shape index: {}]   ;;  %s4897_s3 = inlined_call_operand.vmem [shape: f32[2,64,32], index: 3, kind: input, shape index: {}]   ;;  %s4898_s4 = inlined_call_operand.vmem [shape: f32[2,64,32], index: 4, kind: input, shape index: {}]   ;;  %s4899_s5 = inlined_call_operand.vmem [shape: f32[2,1,32], index: 5, kind: input, shape index: {}]   ;;  %s4900_s6 = inlined_call_operand.vmem [shape: f32[2,1,32], index: 6, kind: input, shape index: {}]   ;;  %s4901_s7 = inlined_call_operand.vmem [shape: bf16[2,32,128], index: 7, kind: input, shape index: {}]   ;;  %s4902_s8 = inlined_call_operand.vmem [shape: f32[2,1,128], index: 8, kind: input, shape index: {}]   ;;  %s4903_s9 = inlined_call_operand.vmem [shape: bf16[2,128,32], index: 9, kind: input, shape index: {}]   ;;  %s4904_s10 = inlined_call_operand.vmem [shape: f32[2,1,32], index: 10, kind: input, shape index: {}]   ;;  %s4905_s11 = inlined_call_operand.vmem [shape: f32[2,1,32], index: 11, kind: input, shape index: {}]   ;;  %s4906_s12 = inlined_call_operand.vmem [shape: f32[2,1,32], index: 12, kind: input, shape index: {}]   ;;  %s4907_s13 = inlined_call_operand.hbm [shape: f32[16,8,32], index: 13, kind: output, shape index: {}]  }
   0x1   :  { %4908 = sst [smem:[#allocation6_spill]] %s4894_s0 }
   0x2   :  { %4909 = sst [smem:[#allocation7_spill]] %s4895_s1 }
   0x3   :  { %18 = vsyncpa [#allocation3], 0 }
   0x4   :  { %20 = vsyncpa [#allocation3 + $0x1], 0  ;;  %s3362_s25 = smov 0   ;;  %s3364_s26 = smov 0  }
   0x5   :  { %s3366_s27 = smov 0   ;;  %s3368_s28 = smov 0  }
   0x6 LB: > { %s3383_s29 = sadd.s32 4294967295, %s3287_s28   ;;  %s2820_s30 = sadd.s32 4294967294, %s3287_s28   ;;  %s3287_s28 = sphi %s3368_s28, %s4932_s28   ;;  %s3283_s27 = sphi %s3366_s27, %s4931_s27   ;;  %s3279_s26 = sphi %s3364_s26, %s4930_s26   ;;  %s3275_s25 = sphi %s3362_s25, %s4929_s25  }
   0x7   : > { %s3387_s14 = sadd.s32 1, %s3287_s28   ;;  %s311_s15 = sadd.s32 1, %s3283_s27 }
   0x8   : > { %s308_s16 = ssub.s32 %s3287_s28, %s3387_s14  ;;  %p321_p0 = scmp.ne.s32.totalorder %s3283_s27, %s3279_s26 }
   0x9   : > { %p309_p1 = scmp.eq.s32.totalorder %s308_s16, 0  ;;  %p322_p2 = scmp.eq.s32.totalorder %s3383_s29, 1 }
   0xa   : > { %p327_p3 = scmp.ne.s32.totalorder %s3279_s26, %s3275_s25  ;;  %p328_p4 = scmp.eq.s32.totalorder %s2820_s30, 1 }
   0xb   : > { %s3398_s17 = scalar_select %p309_p1, %s3283_s27, %s311_s15  }
   0xc   : > { %p3400_p5 = por %p322_p2, %p321_p0  ;;  %p3404_p6 = por %p328_p4, %p327_p3 }
   0xd   : > { %4910 = sst [smem:[#allocation5_spill]] %s3398_s17  ;;  %p2823_p7 = scmp.ge.s32.totalorder %s3287_s28, 1 }
   0xe   : > { %p391_p8 = scmp.lt.s32.totalorder %s3287_s28, 3 }
  0x10   : > { %p392_p9 = pnand %p2823_p7, %p391_p8 }
  0x11   : > { %s2825_s20 = sshll.u32 (!%p392_p9), %s3383_s29, 3  ;;  %s4913_s0 = sld [smem:[#allocation6_spill]] (!%p392_p9) }
  0x12   : > { %395 = sbr.rel (%p392_p9) target bundleno = 2905 (0xb59), region = 72  ;;  %p436_p10 = scmp.lt.s32.totalorder (!%p392_p9), %s2825_s20, 15 }
  0x13   : > { %s4914_s1 = sld [smem:[#allocation7_spill]] (!%p392_p9)  ;;  %s432_s17 = sand.u32 (!%p392_p9), 1, %s3279_s26  }
  0x14   : > { %s3030_s15 = sshll.u32 (!%p392_p9), %s3383_s29, 6  ;;  %s2743_s29 = scalar_lea.sflag (!%p392_p9), [#allocation3], %s432_s17 }
  0x17   : > { %s4934_s20 = smov (!%p436_p10, %s2825_s20), 15  ;;  %vm475_vm0 = vcmask 523264   ;;  %v589_v32 = vld [vmem:[%s4897_s3] sm:$0xff]  ;;  %v590_v41 = vld [vmem:[%s4897_s3 + $0x8] sm:$0xff]  ;;  %v591_v47 = vld [vmem:[%s4897_s3 + $0x10] sm:$0xff]  ;;  %vm696_vm1 = vcmask 261120  }
  0x18   : > { %s2826_s21 = sshll.u32 %s4934_s20, 3  ;;  %v597_v33 = vld [vmem:[%s4898_s4] sm:$0xff]  ;;  %v598_v42 = vld [vmem:[%s4898_s4 + $0x8] sm:$0xff]  ;;  %v599_v48 = vld [vmem:[%s4898_s4 + $0x10] sm:$0xff]  ;;  %s2754_s20 = scalar_lea.hbm %s4907_s13, %s3030_s15 }
  0x19   : > { %s439_s24 = scalar_lea.vmem %s4913_s0, %s2826_s21  ;;  %v451_v8 = vld [vmem:[%s4914_s1] sm:$0xff]  ;;  %v452_v9 = vld [vmem:[%s4914_s1 + $0x8] sm:$0xff]  ;;  %v453_v10 = vld [vmem:[%s4914_s1 + $0x10] sm:$0xff]  ;;  %s2757_s22 = sshll.u32 %s2754_s20, 4  ;;  %s2758_s22 = int_to_ptr.hbm [resolvable:$true] %s2757_s22 }
  0x1a   : > { %v3414_v0 = vld [vmem:[%s439_s24 + $0x38] sm:$0xff]  ;;  %v3416_v1 = vld [vmem:[%s439_s24 + $0x30] sm:$0xff]  ;;  %v3419_v2 = vld [vmem:[%s439_s24 + $0x28] sm:$0xff]  ;;  %s3239_s23 = sshra.s32 %s2758_s22, 4  ;;  %s3245_s0 = scalar_lea.hbm %s4907_s13, 128  ;;  %s3240_s23 = int_to_ptr.hbm [resolvable:$true] %s3239_s23 }
  0x1b   : > { %532 = vmatpush.msra.mxu0 %v3414_v0  ;;  %v3422_v3 = vld [vmem:[%s439_s24 + $0x20] sm:$0xff]  ;;  %v3425_v4 = vld [vmem:[%s439_s24 + $0x18] sm:$0xff]  ;;  %v3428_v5 = vld [vmem:[%s439_s24 + $0x10] sm:$0xff]  ;;  %p3246_p0 = scmp.lt.s32.totalorder %s3240_s23, %s4907_s13 }
  0x1c   : > { %v3431_v6 = vld [vmem:[%s439_s24 + $0x8] sm:$0xff]  ;;  %v3434_v7 = vld [vmem:[%s439_s24] sm:$0xff]  ;;  %v454_v11 = vld [vmem:[%s4914_s1 + $0x18] sm:$0xff]  ;;  %s2824_s24 = sshll.u32 %s432_s17, 6 }
  0x1d   : > { %533 = vmatpush.msra.mxu0 %v3416_v1  ;;  %v455_v12 = vld [vmem:[%s4914_s1 + $0x20] sm:$0xff]  ;;  %v456_v13 = vld [vmem:[%s4914_s1 + $0x28] sm:$0xff]  ;;  %v457_v14 = vld [vmem:[%s4914_s1 + $0x30] sm:$0xff]  ;;  %s4815_s30 = scalar_lea.vmem [#allocation2], %s2824_s24  ;;  %s3241_s24 = scalar_lea.hbm %s3240_s23, 64 }
  0x1e   : > { %v458_v15 = vld [vmem:[%s4914_s1 + $0x38] sm:$0xff]  ;;  %v459_v16 = vld [vmem:[%s4914_s1 + $0x40] sm:$0xff]  ;;  %v460_v17 = vld [vmem:[%s4914_s1 + $0x48] sm:$0xff]  ;;  %s2755_s21 = sshll.u32 %s4815_s30, 4  ;;  %p3242_p11 = scmp.ne.s32.totalorder %s3240_s23, %s3241_s24  ;;  %s2756_s21 = int_to_ptr.vmem [resolvable:$true] %s2755_s21 }
  0x1f   : > { %534 = vmatpush.msra.mxu0 %v3419_v2  ;;  %v461_v18 = vld [vmem:[%s4914_s1 + $0x50] sm:$0xff]  ;;  %v462_v19 = vld [vmem:[%s4914_s1 + $0x58] sm:$0xff]  ;;  %v463_v20 = vld [vmem:[%s4914_s1 + $0x60] sm:$0xff]  ;;  %p3247_p1 = scmp.lt.s32.totalorder %s3245_s0, %s3241_s24 }
  0x20   : > { %v464_v21 = vld [vmem:[%s4914_s1 + $0x68] sm:$0xff]  ;;  %v465_v22 = vld [vmem:[%s4914_s1 + $0x70] sm:$0xff]  ;;  %v466_v23 = vld [vmem:[%s4914_s1 + $0x78] sm:$0xff]  ;;  %p3243_p12 = pnand %p3242_p11, %p3400_p5 }
  0x21   : > { %535 = vmatpush.msra.mxu0 %v3422_v3  ;;  %v604_v57 = vld [vmem:[%s4898_s4 + $0x38] sm:$0xff]  ;;  %v595_v58 = vld [vmem:[%s4897_s3 + $0x30] sm:$0xff]  ;;  %p3248_p2 = por %p3247_p1, %p3246_p0 }
  0x22   : > { %v603_v59 = vld [vmem:[%s4898_s4 + $0x30] sm:$0xff]  ;;  %v596_v60 = vld [vmem:[%s4897_s3 + $0x38] sm:$0xff]  ;;  %p3244_p13 = pneg %p3243_p12 }
  0x23   : > { %536 = vmatpush.msra.mxu0 %v3425_v4 }
  0x24   : > { %p3249_p3 = pnand %p3248_p2, %p3244_p13 }
  0x25   : > { %537 = vmatpush.msra.mxu0 %v3428_v5 }
  0x27   : > { %538 = vmatpush.msra.mxu0 %v3431_v6 }
  0x29   : > { %539 = vmatpush.msra.mxu0 %v3434_v7 }
  0x2a   : > { %2827 = vmatmul.msk.f32.vlgmr.msra.gmra.mxu0 %vm475_vm0, %v451_v8 }
  0x32   : > { %2828 = vmatmul.msk.f32.gmra.mxu0 %vm475_vm0, %v452_v9  ;;  %v594_v9 = vld [vmem:[%s4897_s3 + $0x28] sm:$0xff] }
  0x3a   : > { %2829 = vmatmul.msk.f32.gmra.mxu0 %vm475_vm0, %v453_v10  ;;  %v602_v10 = vld [vmem:[%s4898_s4 + $0x28] sm:$0xff] }
  0x42   : > { %2830 = vmatmul.msk.f32.gmra.mxu0 %vm475_vm0, %v454_v11 }
  0x4a   : > { %2831 = vmatmul.msk.f32.gmra.mxu0 %vm475_vm0, %v455_v12 }
  0x52   : > { %2832 = vmatmul.msk.f32.gmra.mxu0 %vm475_vm0, %v456_v13 }
  0x5a   : > { %2833 = vmatmul.msk.f32.gmra.mxu0 %vm475_vm0, %v457_v14  ;;  %v593_v14 = vld [vmem:[%s4897_s3 + $0x20] sm:$0xff] }
  0x62   : > { %2834 = vmatmul.msk.f32.gmra.mxu0 %vm475_vm0, %v458_v15  ;;  %v601_v15 = vld [vmem:[%s4898_s4 + $0x20] sm:$0xff] }
  0x6a   : > { %2835 = vmatmul.msk.f32.gmra.mxu0 %vm475_vm0, %v459_v16 }
  0x72   : > { %2836 = vmatmul.msk.f32.gmra.mxu0 %vm475_vm0, %v460_v17 }
  0x7a   : > { %2837 = vmatmul.msk.f32.gmra.mxu0 %vm475_vm0, %v461_v18 }
  0x82   : > { %2838 = vmatmul.msk.f32.gmra.mxu0 %vm475_vm0, %v462_v19  ;;  %v592_v19 = vld [vmem:[%s4897_s3 + $0x18] sm:$0xff] }
  0x8a   : > { %2839 = vmatmul.msk.f32.gmra.mxu0 %vm475_vm0, %v463_v20  ;;  %v600_v20 = vld [vmem:[%s4898_s4 + $0x18] sm:$0xff] }
  0x92   : > { %2840 = vmatmul.msk.f32.gmra.mxu0 %vm475_vm0, %v464_v21 }
  0x9a   : > { %2841 = vmatmul.msk.f32.gmra.mxu0 %vm475_vm0, %v465_v22 }
  0xa2   : > { %2842 = vmatmul.msk.f32.gmra.mxu0 %vm475_vm0, %v466_v23 }
  0xa7   : > { %v541_v24 = vpop.f32.mrf.mxu0 }
  0xa8   : > { %v3520_v35 = vmul.f32 %v589_v32, %v541_v24  ;;  %v629_v36 = vmul.f32 %v597_v33, %v541_v24 }
  0xaf   : > { %v3502_v25 = vpop.f32.mrf.mxu0 }
  0xb0   : > { %v3533_v44 = vmul.f32 %v590_v41, %v3502_v25 }
  0xb7   : > { %v547_v26 = vpop.f32.mrf.mxu0 }
  0xb8   : > { %v3545_v50 = vmul.f32 %v591_v47, %v547_v26 }
  0xbf   : > { %v3504_v27 = vpop.f32.mrf.mxu0 }
  0xc0   : > { %v632_v24 = vmul.f32 %v600_v20, %v3504_v27 }
  0xc7   : > { %v3506_v28 = vpop.f32.mrf.mxu0 }
  0xc8   : > { %v633_v21 = vmul.f32 %v601_v15, %v3506_v28 }
  0xcf   : > { %v3508_v29 = vpop.f32.mrf.mxu0 }
  0xd0   : > { %v634_v16 = vmul.f32 %v602_v10, %v3508_v29 }
  0xd7   : > { %v3510_v30 = vpop.f32.mrf.mxu0 }
  0xd8   : > { %v635_v11 = vmul.f32 %v603_v59, %v3510_v30 }
  0xdf   : > { %v3512_v31 = vpop.f32.mrf.mxu0 }
  0xe0   : > { %v636_v62 = vmul.f32 %v604_v57, %v3512_v31 }
  0xe7   : > { %v565_v34 = vpop.f32.mrf.mxu0 }
  0xe8   : > { %v3522_v37 = vmul.f32 %v597_v33, %v565_v34  ;;  %v637_v38 = vmul.f32 %v589_v32, %v565_v34  ;;  %v631_v34 = vmul.f32 %v599_v48, %v547_v26  ;;  %v610_v26 = vmul.f32 %v594_v9, %v3508_v29  ;;  %v469_v29 = vld [vmem:[%s4896_s2 + $0x10] sm:$0xff] }
  0xea   : > { %v645_v39 = vadd.f32 %v637_v38, %v629_v36  ;;  %v621_v40 = vsub.f32 %v3520_v35, %v3522_v37  ;;  %v471_v35 = vld [vmem:[%s4896_s2 + $0x20] sm:$0xff]  ;;  %v472_v37 = vld [vmem:[%s4896_s2 + $0x28] sm:$0xff] }
  0xef   : > { %v568_v43 = vpop.f32.mrf.mxu0 }
  0xf0   : > { %v3535_v45 = vmul.f32 %v598_v42, %v568_v43  ;;  %v638_v36 = vmul.f32 %v590_v41, %v568_v43 }
  0xf2   : > { %v622_v46 = vsub.f32 %v3533_v44, %v3535_v45 }
  0xf7   : > { %v571_v49 = vpop.f32.mrf.mxu0 }
  0xf8   : > { %v3547_v51 = vmul.f32 %v599_v48, %v571_v49  ;;  %v639_v32 = vmul.f32 %v591_v47, %v571_v49 }
  0xfa   : > { %v623_v52 = vsub.f32 %v3545_v50, %v3547_v51 }
  0xff   : > { %v574_v53 = vpop.f32.mrf.mxu0 }
 0x100   : > { %v640_v22 = vmul.f32 %v592_v19, %v574_v53 }
 0x102   : > { %v648_v38 = vadd.f32 %v640_v22, %v632_v24 }
 0x107   : > { %v577_v54 = vpop.f32.mrf.mxu0 }
 0x108   : > { %v641_v17 = vmul.f32 %v593_v14, %v577_v54  ;;  %v617_v41 = vmul.f32 %v601_v15, %v577_v54 }
 0x10a   : > { %v649_v33 = vadd.f32 %v641_v17, %v633_v21 }
 0x10f   : > { %v580_v55 = vpop.f32.mrf.mxu0 }
 0x110   : > { %v642_v12 = vmul.f32 %v594_v9, %v580_v55  ;;  %v618_v47 = vmul.f32 %v602_v10, %v580_v55 }
 0x112   : > { %v650_v23 = vadd.f32 %v642_v12, %v634_v16  ;;  %v611_v12 = vmul.f32 %v595_v58, %v3510_v30  ;;  %v626_v48 = vsub.f32 %v610_v26, %v618_v47  ;;  %v470_v30 = vld [vmem:[%s4896_s2 + $0x18] sm:$0xff]  ;;  %v3289_v16 = vmov 32.0  }
 0x113   : > { %3103 = vrcp.f32 %v3289_v16 }
 0x117   : > { %v583_v56 = vpop.f32.mrf.mxu0 }
 0x118   : > { %v643_v63 = vmul.f32 %v595_v58, %v583_v56 }
 0x119   : > { %v3104_v17 = vpop.eup %3103 }
 0x11a   : > { %v651_v18 = vadd.f32 %v643_v63, %v635_v11  ;;  %v647_v63 = vadd.f32 %v639_v32, %v631_v34  ;;  %vm726_vm2 = vweird.f32 %v3104_v17 }
 0x11f   : > { %v586_v61 = vpop.f32.mrf.mxu0 }
 0x120   : > { %v644_v8 = vmul.f32 %v596_v60, %v586_v61 }
 0x122   : > { %v652_v13 = vadd.f32 %v644_v8, %v636_v62  ;;  %v630_v62 = vmul.f32 %v598_v42, %v3502_v25  ;;  %v620_v8 = vmul.f32 %v604_v57, %v586_v61  ;;  %v609_v25 = vmul.f32 %v593_v14, %v3506_v28  ;;  %v467_v28 = vld [vmem:[%s4896_s2] sm:$0xff] }
 0x123   : > { %v616_v42 = vmul.f32 %v600_v20, %v574_v53  ;;  %v608_v57 = vmul.f32 %v592_v19, %v3504_v27  ;;  %v468_v27 = vld [vmem:[%s4896_s2 + $0x8] sm:$0xff]  ;;  %v722_v19 = vmul.f32 32.0, %v3104_v17 }
 0x124   : > { %653 = vmatpush.msra.mxu1 %v652_v13  ;;  %v646_v11 = vadd.f32 %v638_v36, %v630_v62  ;;  %v612_v13 = vmul.f32 %v596_v60, %v3512_v31  ;;  %v625_v31 = vsub.f32 %v609_v25, %v617_v41 }
 0x126   : > { %654 = vmatpush.msra.mxu1 %v651_v18  ;;  %v619_v18 = vmul.f32 %v603_v59, %v583_v56  ;;  %v628_v49 = vsub.f32 %v612_v13, %v620_v8  ;;  %v624_v56 = vsub.f32 %v608_v57, %v616_v42 }
 0x128   : > { %655 = vmatpush.msra.mxu1 %v650_v23  ;;  %v627_v43 = vsub.f32 %v611_v12, %v619_v18 }
 0x12a   : > { %656 = vmatpush.msra.mxu1 %v649_v33 }
 0x12c   : > { %657 = vmatpush.msra.mxu1 %v648_v38 }
 0x12e   : > { %658 = vmatpush.msra.mxu1 %v647_v63 }
 0x130   : > { %659 = vmatpush.msra.mxu1 %v646_v11 }
 0x132   : > { %660 = vmatpush.msra.mxu1 %v645_v39  ;;  %v473_v39 = vld [vmem:[%s4896_s2 + $0x30] sm:$0xff] }
 0x134   : > { %661 = vmatpush.msra.mxu1 %v628_v49 }
 0x136   : > { %662 = vmatpush.msra.mxu1 %v627_v43 }
 0x138   : > { %663 = vmatpush.msra.mxu1 %v626_v48 }
 0x13a   : > { %664 = vmatpush.msra.mxu1 %v625_v31 }
 0x13c   : > { %665 = vmatpush.msra.mxu1 %v624_v56 }
 0x13e   : > { %666 = vmatpush.msra.mxu1 %v623_v52 }
 0x140   : > { %667 = vmatpush.msra.mxu1 %v622_v46 }
 0x142   : > { %668 = vmatpush.msra.mxu1 %v621_v40  ;;  %v474_v40 = vld [vmem:[%s4896_s2 + $0x38] sm:$0xff] }
 0x143   : > { %669 = vmatmul.f32.vlgmr.msra.gmra.mxu1 %v467_v28 }
 0x14b   : > { %672 = vmatmul.f32.gmra.mxu1 %v468_v27 }
 0x153   : > { %675 = vmatmul.f32.gmra.mxu1 %v469_v29 }
 0x15b   : > { %678 = vmatmul.f32.gmra.mxu1 %v470_v30 }
 0x163   : > { %681 = vmatmul.f32.gmra.mxu1 %v471_v35 }
 0x16b   : > { %684 = vmatmul.f32.gmra.mxu1 %v472_v37 }
 0x173   : > { %687 = vmatmul.f32.gmra.mxu1 %v473_v39 }
 0x17b   : > { %690 = vmatmul.f32.gmra.mxu1 %v474_v40 }
 0x1c0   : > { %v670_v44 = vpop.f32.mrf.mxu1 }
 0x1c1   : > { %v671_v45 = vadd.f32 %v670_v44, %v3434_v7 }
 0x1c3   : > { %v697_v46 = vsel %vm696_vm1, %v671_v45, 0.0 }
 0x1c4   : > { %698 = vadd.xlane.f32.xlu0 %v697_v46  ;;  %v3011_v46 = vld [vmem:[%s4901_s7 + $0x8] sm:$0xff] }
 0x1c5   : > { %944 = vmatpush.bf16.msra.mxu2 %v3011_v46  ;;  %3031 = vmatpush.bf16.msra.mxu3 %v3011_v46 }
 0x1c8   : > { %v673_v50 = vpop.f32.mrf.mxu1 }
 0x1c9   : > { %v674_v51 = vadd.f32 %v673_v50, %v3431_v6 }
 0x1cb   : > { %v700_v52 = vsel %vm696_vm1, %v674_v51, 0.0 }
 0x1cc   : > { %701 = vadd.xlane.f32.xlu0 %v700_v52  ;;  %v3010_v52 = vld [vmem:[%s4901_s7] sm:$0xff] }
 0x1cd   : > { %945 = vmatpush.bf16.msra.mxu2 %v3010_v52  ;;  %3032 = vmatpush.bf16.msra.mxu3 %v3010_v52 }
 0x1d0   : > { %v676_v53 = vpop.f32.mrf.mxu1 }
 0x1d1   : > { %v677_v54 = vadd.f32 %v676_v53, %v3428_v5 }
 0x1d3   : > { %v703_v55 = vsel %vm696_vm1, %v677_v54, 0.0 }
 0x1d4   : > { %704 = vadd.xlane.f32.xlu1 %v703_v55 }
 0x1d8   : > { %v679_v58 = vpop.f32.mrf.mxu1 }
 0x1d9   : > { %v680_v59 = vadd.f32 %v679_v58, %v3425_v4 }
 0x1db   : > { %v706_v7 = vsel %vm696_vm1, %v680_v59, 0.0 }
 0x1dc   : > { %707 = vadd.xlane.f32.xlu1 %v706_v7 }
 0x1e0   : > { %v682_v60 = vpop.f32.mrf.mxu1 }
 0x1e1   : > { %v683_v61 = vadd.f32 %v682_v60, %v3422_v3  ;;  %v723_v3 = vsub.f32 1.0, %v722_v19 }
 0x1e3   : > { %v709_v6 = vsel %vm696_vm1, %v683_v61, 0.0  ;;  %v724_v20 = vmul.f32 %v3104_v17, %v723_v3 }
 0x1e4   : > { %710 = vadd.xlane.f32.xlu2 %v709_v6 }
 0x1e5   : > { %v725_v21 = vadd.f32 %v3104_v17, %v724_v20 }
 0x1e7   : > { %v3639_v22 = vsel %vm726_vm2, %v3104_v17, %v725_v21 }
 0x1e8   : > { %v685_v9 = vpop.f32.mrf.mxu1 }
 0x1e9   : > { %v686_v10 = vadd.f32 %v685_v9, %v3419_v2 }
 0x1eb   : > { %v712_v5 = vsel %vm696_vm1, %v686_v10, 0.0 }
 0x1ec   : > { %713 = vadd.xlane.f32.xlu2 %v712_v5 }
 0x1f0   : > { %v688_v14 = vpop.f32.mrf.mxu1 }
 0x1f1   : > { %v689_v15 = vadd.f32 %v688_v14, %v3416_v1 }
 0x1f3   : > { %v715_v4 = vsel %vm696_vm1, %v689_v15, 0.0 }
 0x1f4   : > { %716 = vadd.xlane.f32.xlu2 %v715_v4 }
 0x1f8   : > { %v691_v32 = vpop.f32.mrf.mxu1 }
 0x1f9   : > { %v692_v38 = vadd.f32 %v691_v32, %v3414_v0 }
 0x1fb   : > { %v718_v63 = vsel %vm696_vm1, %v692_v38, 0.0 }
 0x237   : > { %v699_v2 = vpop.xlane.xlu0 %698 }
 0x238   : > { %v728_v23 = vmul.f32 %v3639_v22, %v699_v2 }
 0x23a   : > { %v3642_v24 = vsub.f32 %v671_v45, %v728_v23 }
 0x23c   : > { %v744_v1 = vmul.f32 %v3642_v24, %v3642_v24 }
 0x23e   : > { %v752_v33 = vsel %vm696_vm1, %v744_v1, 0.0 }
 0x23f   : > { %753 = vadd.xlane.f32.xlu0 %v752_v33  ;;  %v702_v34 = vpop.xlane.xlu0 %701 }
 0x240   : > { %v729_v36 = vmul.f32 %v3639_v22, %v702_v34 }
 0x242   : > { %v3649_v62 = vsub.f32 %v674_v51, %v729_v36 }
 0x244   : > { %v745_v8 = vmul.f32 %v3649_v62, %v3649_v62 }
 0x246   : > { %v755_v11 = vsel %vm696_vm1, %v745_v8, 0.0 }
 0x247   : > { %v705_v13 = vpop.xlane.xlu1 %704  ;;  %719 = vadd.xlane.f32.xlu0 %v718_v63  ;;  %756 = vadd.xlane.f32.xlu1 %v755_v11  ;;  %v3705_v63 = vld [vmem:[%s4899_s5] ss:$0 sm:$0xff] }
 0x248   : > { %v730_v18 = vmul.f32 %v3639_v22, %v705_v13 }
 0x24a   : > { %v3656_v12 = vsub.f32 %v677_v54, %v730_v18 }
 0x24c   : > { %v746_v47 = vmul.f32 %v3656_v12, %v3656_v12 }
 0x24e   : > { %v758_v0 = vsel %vm696_vm1, %v746_v47, 0.0 }
 0x24f   : > { %v708_v49 = vpop.xlane.xlu1 %707  ;;  %759 = vadd.xlane.f32.xlu1 %v758_v0 }
 0x250   : > { %v731_v26 = vmul.f32 %v3639_v22, %v708_v49 }
 0x252   : > { %v3662_v41 = vsub.f32 %v680_v59, %v731_v26 }
 0x254   : > { %v747_v43 = vmul.f32 %v3662_v41, %v3662_v41 }
 0x256   : > { %v761_v25 = vsel %vm696_vm1, %v747_v43, 0.0 }
 0x257   : > { %v711_v42 = vpop.xlane.xlu2 %710  ;;  %762 = vadd.xlane.f32.xlu2 %v761_v25 }
 0x258   : > { %v732_v48 = vmul.f32 %v3639_v22, %v711_v42 }
 0x25a   : > { %v3668_v57 = vsub.f32 %v683_v61, %v732_v48 }
 0x25c   : > { %v748_v31 = vmul.f32 %v3668_v57, %v3668_v57 }
 0x25e   : > { %v764_v56 = vsel %vm696_vm1, %v748_v31, 0.0 }
 0x25f   : > { %v714_v28 = vpop.xlane.xlu2 %713  ;;  %765 = vadd.xlane.f32.xlu0 %v764_v56 }
 0x260   : > { %v733_v27 = vmul.f32 %v3639_v22, %v714_v28 }
 0x262   : > { %v3674_v29 = vsub.f32 %v686_v10, %v733_v27 }
 0x264   : > { %v749_v30 = vmul.f32 %v3674_v29, %v3674_v29 }
 0x266   : > { %v767_v35 = vsel %vm696_vm1, %v749_v30, 0.0 }
 0x267   : > { %v717_v37 = vpop.xlane.xlu2 %716  ;;  %768 = vadd.xlane.f32.xlu1 %v767_v35 }
 0x268   : > { %v734_v39 = vmul.f32 %v3639_v22, %v717_v37 }
 0x26a   : > { %v3680_v40 = vsub.f32 %v689_v15, %v734_v39 }
 0x26c   : > { %v750_v44 = vmul.f32 %v3680_v40, %v3680_v40 }
 0x26e   : > { %v770_v45 = vsel %vm696_vm1, %v750_v44, 0.0 }
 0x26f   : > { %771 = vadd.xlane.f32.xlu2 %v770_v45 }
 0x2b2   : > { %v754_v50 = vpop.xlane.xlu0 %753 }
 0x2b3   : > { %v776_v51 = vmul.f32 %v754_v50, %v3639_v22 }
 0x2b5   : > { %v784_v53 = vadd.f32 1e-12, %v776_v51 }
 0x2b7   : > { %3105 = vrsqrt.f32 %v784_v53  ;;  %vm798_vm4 = vweird.f32 %v784_v53 }
 0x2ba   : > { %v757_v54 = vpop.xlane.xlu1 %756  ;;  %v720_v55 = vpop.xlane.xlu0 %719 }
 0x2bb   : > { %v777_v58 = vmul.f32 %v757_v54, %v3639_v22  ;;  %v735_v59 = vmul.f32 %v3639_v22, %v720_v55 }
 0x2bd   : > { %v3106_v7 = vpop.eup %3105  ;;  %v785_v60 = vadd.f32 1e-12, %v777_v58  ;;  %v3694_v61 = vsub.f32 %v692_v38, %v735_v59 }
 0x2be   : > { %v793_v6 = vmul.f32 %v3106_v7, %v784_v53  ;;  %vm799_vm3 = vweird.f32 %v3106_v7 }
 0x2bf   : > { %3107 = vrsqrt.f32 %v785_v60  ;;  %v751_v9 = vmul.f32 %v3694_v61, %v3694_v61  ;;  %vm800_vm5 = vmor %vm798_vm4, %vm799_vm3  ;;  %vm808_vm7 = vweird.f32 %v785_v60 }
 0x2c0   : > { %v794_v10 = vmul.f32 %v3106_v7, %v793_v6 }
 0x2c1   : > { %v773_v5 = vsel %vm696_vm1, %v751_v9, 0.0 }
 0x2c2   : > { %v795_v14 = vmul.f32 0.5, %v794_v10  ;;  %v760_v15 = vpop.xlane.xlu1 %759  ;;  %774 = vadd.xlane.f32.xlu0 %v773_v5 }
 0x2c3   : > { %v778_v4 = vmul.f32 %v760_v15, %v3639_v22 }
 0x2c4   : > { %v796_v16 = vsub.f32 1.5, %v795_v14 }
 0x2c5   : > { %v3108_v17 = vpop.eup %3107  ;;  %v786_v19 = vadd.f32 1e-12, %v778_v4 }
 0x2c6   : > { %v797_v3 = vmul.f32 %v3106_v7, %v796_v16  ;;  %v803_v20 = vmul.f32 %v3108_v17, %v785_v60  ;;  %vm809_vm6 = vweird.f32 %v3108_v17 }
 0x2c7   : > { %3109 = vrsqrt.f32 %v786_v19  ;;  %vm810_vm8 = vmor %vm808_vm7, %vm809_vm6  ;;  %vm818_vm10 = vweird.f32 %v786_v19 }
 0x2c8   : > { %v804_v21 = vmul.f32 %v3108_v17, %v803_v20  ;;  %v801_v2 = vsel %vm800_vm5, %v3106_v7, %v797_v3 }
 0x2c9   : > { %v872_v36 = vmul.f32 %v801_v2, %v3642_v24  ;;  %v3712_v24 = vld [vmem:[%s4900_s6] ss:$0 sm:$0xff] }
 0x2ca   : > { %v805_v23 = vmul.f32 0.5, %v804_v21  ;;  %v763_v1 = vpop.xlane.xlu2 %762 }
 0x2cb   : > { %v779_v32 = vmul.f32 %v763_v1, %v3639_v22  ;;  %v883_v0 = vmul.f32 %v3705_v63, %v872_v36 }
 0x2cc   : > { %v806_v33 = vsub.f32 1.5, %v805_v23 }
 0x2cd   : > { %v3110_v34 = vpop.eup %3109  ;;  %v787_v38 = vadd.f32 1e-12, %v779_v32  ;;  %v3717_v56 = vadd.f32 %v3712_v24, %v883_v0 }
 0x2ce   : > { %v807_v8 = vmul.f32 %v3108_v17, %v806_v33  ;;  %v813_v11 = vmul.f32 %v3110_v34, %v786_v19  ;;  %vm819_vm9 = vweird.f32 %v3110_v34 }
 0x2cf   : > { %3111 = vrsqrt.f32 %v787_v38  ;;  %vm820_vm11 = vmor %vm818_vm10, %vm819_vm9  ;;  %vm828_vm13 = vweird.f32 %v787_v38 }
 0x2d0   : > { %v811_v13 = vsel %vm810_vm8, %v3108_v17, %v807_v8  ;;  %v814_v18 = vmul.f32 %v3110_v34, %v813_v11 }
 0x2d1   : > { %v873_v47 = vmul.f32 %v811_v13, %v3649_v62 }
 0x2d2   : > { %v815_v49 = vmul.f32 0.5, %v814_v18  ;;  %v766_v26 = vpop.xlane.xlu0 %765 }
 0x2d3   : > { %v780_v43 = vmul.f32 %v766_v26, %v3639_v22  ;;  %v884_v25 = vmul.f32 %v3705_v63, %v873_v47 }
 0x2d4   : > { %v816_v42 = vsub.f32 1.5, %v815_v49 }
 0x2d5   : > { %v3112_v48 = vpop.eup %3111  ;;  %v788_v31 = vadd.f32 1e-12, %v780_v43  ;;  %v3720_v62 = vadd.f32 %v3712_v24, %v884_v25 }
 0x2d6   : > { %v817_v28 = vmul.f32 %v3110_v34, %v816_v42  ;;  %v823_v27 = vmul.f32 %v3112_v48, %v787_v38  ;;  %vm829_vm12 = vweird.f32 %v3112_v48 }
 0x2d7   : > { %3113 = vrsqrt.f32 %v788_v31  ;;  %v902_v30 = vpack.c.bf16 %v3720_v62, %v3717_v56  ;;  %vm830_vm14 = vmor %vm828_vm13, %vm829_vm12  ;;  %vm838_vm2 = vweird.f32 %v788_v31 }
 0x2d8   : > { %v824_v35 = vmul.f32 %v3112_v48, %v823_v27  ;;  %v821_v37 = vsel %vm820_vm11, %v3110_v34, %v817_v28 }
 0x2d9   : > { %2851 = vmatmul.msk.bf16.vlgmr.msra.gmra.mxu2 %vm696_vm1, %v902_v30  ;;  %v874_v51 = vmul.f32 %v821_v37, %v3656_v12 }
 0x2da   : > { %v825_v39 = vmul.f32 0.5, %v824_v35  ;;  %v769_v44 = vpop.xlane.xlu1 %768 }
 0x2db   : > { %v781_v45 = vmul.f32 %v769_v44, %v3639_v22  ;;  %v885_v7 = vmul.f32 %v3705_v63, %v874_v51 }
 0x2dc   : > { %v826_v46 = vsub.f32 1.5, %v825_v39 }
 0x2dd   : > { %v3114_v50 = vpop.eup %3113  ;;  %v789_v52 = vadd.f32 1e-12, %v781_v45  ;;  %v3731_v5 = vadd.f32 %v3712_v24, %v885_v7 }
 0x2de   : > { %v827_v53 = vmul.f32 %v3112_v48, %v826_v46  ;;  %v833_v54 = vmul.f32 %v3114_v50, %v788_v31  ;;  %vm839_vm15 = vweird.f32 %v3114_v50 }
 0x2df   : > { %3115 = vrsqrt.f32 %v789_v52  ;;  %vm840_vm3 = vmor %vm838_vm2, %vm839_vm15  ;;  %vm848_vm5 = vweird.f32 %v789_v52 }
 0x2e0   : > { %v831_v55 = vsel %vm830_vm14, %v3112_v48, %v827_v53  ;;  %v834_v58 = vmul.f32 %v3114_v50, %v833_v54  ;;  %v3018_v53 = vld [vmem:[%s4903_s9 + $0x30] sm:$0xff] }
 0x2e1   : > { %v875_v59 = vmul.f32 %v831_v55, %v3662_v41 }
 0x2e2   : > { %v835_v60 = vmul.f32 0.5, %v834_v58 }
 0x2e3   : > { %v886_v6 = vmul.f32 %v3705_v63, %v875_v59 }
 0x2e4   : > { %v836_v9 = vsub.f32 1.5, %v835_v60  ;;  %v3017_v60 = vld [vmem:[%s4903_s9 + $0x28] sm:$0xff] }
 0x2e5   : > { %v3116_v10 = vpop.eup %3115  ;;  %v3734_v12 = vadd.f32 %v3712_v24, %v886_v6 }
 0x2e6   : > { %v837_v14 = vmul.f32 %v3114_v50, %v836_v9  ;;  %v843_v15 = vmul.f32 %v3116_v10, %v789_v52  ;;  %vm849_vm4 = vweird.f32 %v3116_v10 }
 0x2e7   : > { %v903_v4 = vpack.c.bf16 %v3734_v12, %v3731_v5  ;;  %vm850_vm6 = vmor %vm848_vm5, %vm849_vm4 }
 0x2e8   : > { %v844_v41 = vmul.f32 %v3116_v10, %v843_v15  ;;  %v841_v16 = vsel %vm840_vm3, %v3114_v50, %v837_v14 }
 0x2e9   : > { %2852 = vmatmul.msk.bf16.vlgmr.msra.gmra.mxu3 %vm696_vm1, %v903_v4  ;;  %v876_v3 = vmul.f32 %v841_v16, %v3668_v57  ;;  %v772_v57 = vpop.xlane.xlu2 %771 }
 0x2ea   : > { %v845_v17 = vmul.f32 0.5, %v844_v41  ;;  %v782_v36 = vmul.f32 %v772_v57, %v3639_v22  ;;  %v3016_v41 = vld [vmem:[%s4903_s9 + $0x20] sm:$0xff] }
 0x2eb   : > { %v887_v23 = vmul.f32 %v3705_v63, %v876_v3 }
 0x2ec   : > { %v846_v19 = vsub.f32 1.5, %v845_v17  ;;  %v790_v38 = vadd.f32 1e-12, %v782_v36 }
 0x2ed   : > { %v3744_v32 = vadd.f32 %v3712_v24, %v887_v23 }
 0x2ee   : > { %v847_v20 = vmul.f32 %v3116_v10, %v846_v19  ;;  %3117 = vrsqrt.f32 %v790_v38  ;;  %vm858_vm8 = vweird.f32 %v790_v38 }
 0x2f0   : > { %v851_v21 = vsel %vm850_vm6, %v3116_v10, %v847_v20 }
 0x2f1   : > { %v877_v2 = vmul.f32 %v851_v21, %v3674_v29 }
 0x2f3   : > { %v888_v1 = vmul.f32 %v3705_v63, %v877_v2 }
 0x2f4   : > { %v3118_v29 = vpop.eup %3117 }
 0x2f5   : > { %v3747_v33 = vadd.f32 %v3712_v24, %v888_v1  ;;  %v853_v8 = vmul.f32 %v3118_v29, %v790_v38  ;;  %vm859_vm7 = vweird.f32 %v3118_v29  ;;  %v3015_v1 = vld [vmem:[%s4903_s9 + $0x18] sm:$0xff] }
 0x2f6   : > { %vm860_vm9 = vmor %vm858_vm8, %vm859_vm7 }
 0x2f7   : > { %v904_v34 = vpack.c.bf16 %v3747_v33, %v3744_v32  ;;  %v854_v11 = vmul.f32 %v3118_v29, %v853_v8 }
 0x2f9   : > { %2853 = vmatmul.msk.bf16.gmra.mxu3 %vm696_vm1, %v904_v34  ;;  %v855_v0 = vmul.f32 0.5, %v854_v11 }
 0x2fb   : > { %v856_v49 = vsub.f32 1.5, %v855_v0 }
 0x2fd   : > { %v857_v43 = vmul.f32 %v3118_v29, %v856_v49 }
 0x2ff   : > { %v861_v48 = vsel %vm860_vm9, %v3118_v29, %v857_v43 }
 0x300   : > { %v878_v27 = vmul.f32 %v861_v48, %v3680_v40  ;;  %v3770_v40 = vld [vmem:[%s4902_s8] ss:$0 sm:$0xff] }
 0x302   : > { %v889_v39 = vmul.f32 %v3705_v63, %v878_v27 }
 0x304   : > { %v3759_v45 = vadd.f32 %v3712_v24, %v889_v39 }
 0x335   : > { %v775_v13 = vpop.xlane.xlu0 %774 }
 0x336   : > { %v783_v18 = vmul.f32 %v775_v13, %v3639_v22 }
 0x338   : > { %v791_v47 = vadd.f32 1e-12, %v783_v18 }
 0x33a   : > { %3119 = vrsqrt.f32 %v791_v47  ;;  %vm868_vm11 = vweird.f32 %v791_v47 }
 0x340   : > { %v3120_v26 = vpop.eup %3119 }
 0x341   : > { %v863_v25 = vmul.f32 %v3120_v26, %v791_v47  ;;  %vm869_vm10 = vweird.f32 %v3120_v26  ;;  %v3014_v47 = vld [vmem:[%s4903_s9 + $0x10] sm:$0xff] }
 0x342   : > { %vm870_vm12 = vmor %vm868_vm11, %vm869_vm10 }
 0x343   : > { %v864_v42 = vmul.f32 %v3120_v26, %v863_v25 }
 0x345   : > { %v865_v31 = vmul.f32 0.5, %v864_v42 }
 0x347   : > { %v866_v28 = vsub.f32 1.5, %v865_v31 }
 0x349   : > { %v867_v30 = vmul.f32 %v3120_v26, %v866_v28 }
 0x34b   : > { %v871_v35 = vsel %vm870_vm12, %v3120_v26, %v867_v30 }
 0x34c   : > { %v879_v37 = vmul.f32 %v871_v35, %v3694_v61  ;;  %v3013_v35 = vld [vmem:[%s4903_s9 + $0x8] sm:$0xff] }
 0x34e   : > { %v890_v44 = vmul.f32 %v3705_v63, %v879_v37  ;;  %v3019_v63 = vld [vmem:[%s4903_s9 + $0x38] sm:$0xff] }
 0x34f   : > { %1391 = vmatpush.bf16.msrb.mxu3 %v3019_v63 }
 0x350   : > { %v3762_v46 = vadd.f32 %v3712_v24, %v890_v44 }
 0x352   : > { %v905_v50 = vpack.c.bf16 %v3762_v46, %v3759_v45 }
 0x353   : > { %1392 = vmatpush.bf16.msrb.mxu3 %v3018_v53 }
 0x354   : > { %2854 = vmatmul.msk.bf16.gmra.mxu3 %vm696_vm1, %v905_v50 }
 0x357   : > { %1393 = vmatpush.bf16.msrb.mxu3 %v3017_v60 }
 0x35b   : > { %1394 = vmatpush.bf16.msrb.mxu3 %v3016_v41 }
 0x35c   : > { %v947_v61 = vpop.f32.mrf.mxu2 }
 0x35d   : > { %v3773_v51 = vadd.f32 %v3770_v40, %v947_v61 }
 0x35f   : > { %v3779_v24 = vmul.f32 0.70710677, %v3773_v51  ;;  %1395 = vmatpush.bf16.msrb.mxu3 %v3015_v1 }
 0x361   : > { %v983_v52 = vmul.f32 %v3779_v24, %v3779_v24 }
 0x363   : > { %v3786_v54 = vmin.f32 %v983_v52, 16.0  ;;  %1396 = vmatpush.bf16.msrb.mxu3 %v3014_v47 }
 0x364   : > { %v949_v55 = vpop.f32.mrf.mxu2 }
 0x365   : > { %v985_v58 = vmul.f32 2.1237322e-06, %v3786_v54  ;;  %v996_v59 = vmul.f32 3.8918573e-05, %v3786_v54  ;;  %v3791_v7 = vadd.f32 %v3770_v40, %v949_v55  ;;  %v3012_v55 = vld [vmem:[%s4903_s9] sm:$0xff] }
 0x367   : > { %v986_v6 = vadd.f32 0.00028619796, %v985_v58  ;;  %v997_v9 = vadd.f32 0.001143296, %v996_v59  ;;  %v3797_v10 = vmul.f32 0.70710677, %v3791_v7  ;;  %1397 = vmatpush.bf16.msrb.mxu3 %v3013_v35 }
 0x369   : > { %v987_v14 = vmul.f32 %v986_v6, %v3786_v54  ;;  %v998_v15 = vmul.f32 %v997_v9, %v3786_v54  ;;  %v1023_v4 = vmul.f32 %v3797_v10, %v3797_v10 }
 0x36b   : > { %v999_v16 = vadd.f32 0.014752088, %v998_v15  ;;  %v3806_v17 = vmin.f32 %v1023_v4, 16.0  ;;  %v988_v3 = vadd.f32 0.0036580483, %v987_v14  ;;  %1398 = vmatpush.bf16.msrb.mxu3 %v3012_v55 }
 0x36c   : > { %v952_v19 = vpop.f32.mrf.mxu3 }
 0x36d   : > { %v1000_v20 = vmul.f32 %v999_v16, %v3786_v54  ;;  %v3810_v21 = vadd.f32 %v3770_v40, %v952_v19  ;;  %v1025_v2 = vmul.f32 2.1237322e-06, %v3806_v17  ;;  %v1036_v23 = vmul.f32 3.8918573e-05, %v3806_v17 }
 0x36e   : > { %v989_v29 = vmul.f32 %v988_v3, %v3786_v54 }
 0x36f   : > { %v1001_v34 = vadd.f32 0.112945676, %v1000_v20  ;;  %v1026_v57 = vadd.f32 0.00028619796, %v1025_v2  ;;  %v1037_v36 = vadd.f32 0.001143296, %v1036_v23 }
 0x370   : > { %v3818_v38 = vmul.f32 0.70710677, %v3810_v21  ;;  %v990_v42 = vadd.f32 0.05243302, %v989_v29 }
 0x371   : > { %v1002_v8 = vmul.f32 %v1001_v34, %v3786_v54  ;;  %v1027_v11 = vmul.f32 %v1026_v57, %v3806_v17  ;;  %v1038_v13 = vmul.f32 %v1037_v36, %v3806_v17 }
 0x372   : > { %v1063_v18 = vmul.f32 %v3818_v38, %v3818_v38  ;;  %v991_v61 = vmul.f32 %v990_v42, %v3786_v54 }
 0x373   : > { %v1003_v0 = vadd.f32 0.4994258, %v1002_v8  ;;  %v1028_v49 = vadd.f32 0.0036580483, %v1027_v11  ;;  %v1039_v26 = vadd.f32 0.014752088, %v1038_v13 }
 0x374   : > { %v3829_v43 = vmin.f32 %v1063_v18, 16.0  ;;  %v954_v25 = vpop.f32.mrf.mxu3  ;;  %v992_v9 = vadd.f32 0.18741608, %v991_v61 }
 0x375   : > { %v1004_v48 = vmul.f32 %v1003_v0, %v3786_v54  ;;  %v3833_v31 = vadd.f32 %v3770_v40, %v954_v25  ;;  %v1029_v28 = vmul.f32 %v1028_v49, %v3806_v17  ;;  %v1040_v27 = vmul.f32 %v1039_v26, %v3806_v17 }
 0x376   : > { %v1065_v30 = vmul.f32 2.1237322e-06, %v3829_v43  ;;  %v1076_v44 = vmul.f32 3.8918573e-05, %v3829_v43  ;;  %v993_v34 = vmul.f32 %v992_v9, %v3786_v54 }
 0x377   : > { %v1005_v37 = vadd.f32 1.0, %v1004_v48  ;;  %v3842_v39 = vmul.f32 0.70710677, %v3833_v31  ;;  %v1041_v50 = vadd.f32 0.112945676, %v1040_v27 }
 0x378   : > { %v1030_v63 = vadd.f32 0.05243302, %v1029_v28  ;;  %v1066_v53 = vadd.f32 0.00028619796, %v1065_v30  ;;  %v1077_v59 = vadd.f32 0.001143296, %v1076_v44 }
 0x379   : > { %3121 = vrcp.f32 %v1005_v37  ;;  %v1042_v52 = vmul.f32 %v1041_v50, %v3806_v17  ;;  %v1103_v58 = vmul.f32 %v3842_v39, %v3842_v39  ;;  %v1015_v13 = vand.u32 2147483647, %v1005_v37 }
 0x37a   : > { %v1078_v4 = vmul.f32 %v1077_v59, %v3829_v43  ;;  %v1031_v41 = vmul.f32 %v1030_v63, %v3806_v17  ;;  %v1067_v19 = vmul.f32 %v1066_v53, %v3829_v43  ;;  %v1017_v18 = vand.u32 2147483648, %v1005_v37 }
 0x37b   : > { %v1043_v60 = vadd.f32 0.4994258, %v1042_v52  ;;  %v3852_v14 = vmin.f32 %v1103_v58, 16.0  ;;  %v994_v54 = vadd.f32 1.1283791, %v993_v34  ;;  %vm1011_vm14 = vweird.f32 %v1005_v37 }
 0x37c   : > { %v957_v6 = vpop.f32.mrf.mxu3  ;;  %v1079_v36 = vadd.f32 0.014752088, %v1078_v4  ;;  %v1032_v8 = vadd.f32 0.18741608, %v1031_v41  ;;  %v1068_v11 = vadd.f32 0.0036580483, %v1067_v19 }
 0x37d   : > { %v3855_v15 = vadd.f32 %v3770_v40, %v957_v6  ;;  %v1044_v16 = vmul.f32 %v1043_v60, %v3806_v17  ;;  %v1105_v1 = vmul.f32 2.1237322e-06, %v3852_v14  ;;  %v1116_v25 = vmul.f32 3.8918573e-05, %v3852_v14 }
 0x37e   : > { %v1080_v26 = vmul.f32 %v1079_v36, %v3829_v43  ;;  %v1033_v28 = vmul.f32 %v1032_v8, %v3806_v17  ;;  %v1069_v27 = vmul.f32 %v1068_v11, %v3829_v43  ;;  %v1018_v35 = vor.u32 1.1754944e-38, %v1017_v18 }
 0x37f   : > { %v3122_v3 = vpop.eup %3121  ;;  %v3862_v20 = vmul.f32 0.70710677, %v3855_v15  ;;  %v3864_v23 = vadd.f32 1.0, %v1044_v16  ;;  %v1106_v0 = vadd.f32 0.00028619796, %v1105_v1  ;;  %vm1016_vm2 = vcmp.eq.f32.partialorder %v1015_v13, 8.507059e+37 }
 0x380   : > { %v1007_v2 = vmul.f32 %v3122_v3, %v1005_v37  ;;  %vm1012_vm13 = vweird.f32 %v3122_v3  ;;  %v1081_v44 = vadd.f32 0.112945676, %v1080_v26  ;;  %v1117_v50 = vadd.f32 0.001143296, %v1116_v25 }
 0x381   : > { %v1143_v57 = vmul.f32 %v3862_v20, %v3862_v20  ;;  %3123 = vrcp.f32 %v3864_v23  ;;  %vm1013_vm15 = vmor %vm1011_vm14, %vm1012_vm13  ;;  %v1107_v37 = vmul.f32 %v1106_v0, %v3852_v14  ;;  %v995_v17 = vmul.f32 %v994_v54, %v3779_v24 }
 0x382   : > { %v1008_v29 = vsub.f32 1.0, %v1007_v2  ;;  %v1034_v59 = vadd.f32 1.1283791, %v1033_v28  ;;  %v1055_v60 = vand.u32 2147483647, %v3864_v23  ;;  %v1057_v41 = vand.u32 2147483648, %v3864_v23 }
 0x383   : > { %v3873_v42 = vmin.f32 %v1143_v57, 16.0  ;;  %v1070_v6 = vadd.f32 0.05243302, %v1069_v27  ;;  %v1082_v16 = vmul.f32 %v1081_v44, %v3829_v43  ;;  %v1118_v19 = vmul.f32 %v1117_v50, %v3852_v14 }
 0x384   : > { %v1009_v47 = vmul.f32 %v3122_v3, %v1008_v29  ;;  %v959_v49 = vpop.f32.mrf.mxu3  ;;  %v1035_v29 = vmul.f32 %v1034_v59, %v3797_v10  ;;  %vm1051_vm4 = vweird.f32 %v3864_v23  ;;  %vm1056_vm5 = vcmp.eq.f32.partialorder %v1055_v60, 8.507059e+37 }
 0x385   : > { %v3878_v30 = vadd.f32 %v3770_v40, %v959_v49  ;;  %v1156_v58 = vmul.f32 3.8918573e-05, %v3873_v42  ;;  %v1145_v2 = vmul.f32 2.1237322e-06, %v3873_v42  ;;  %v1083_v34 = vadd.f32 0.4994258, %v1082_v16 }
 0x386   : > { %v1010_v48 = vadd.f32 %v3122_v3, %v1009_v47  ;;  %v1119_v57 = vadd.f32 0.014752088, %v1118_v19  ;;  %v1058_v49 = vor.u32 1.1754944e-38, %v1057_v41  ;;  %v1071_v44 = vmul.f32 %v1070_v6, %v3829_v43 }
 0x387   : > { %v3124_v61 = vpop.eup %3123  ;;  %v3883_v52 = vmul.f32 0.70710677, %v3878_v30  ;;  %v1157_v36 = vadd.f32 0.001143296, %v1156_v58  ;;  %v1084_v13 = vmul.f32 %v1083_v34, %v3829_v43  ;;  %v1146_v25 = vadd.f32 0.00028619796, %v1145_v2 }
 0x388   : > { %v1014_v63 = vsel %vm1013_vm15, %v3122_v3, %v1010_v48  ;;  %v1047_v55 = vmul.f32 %v3124_v61, %v3864_v23  ;;  %vm1052_vm3 = vweird.f32 %v3124_v61  ;;  %v1108_v3 = vadd.f32 0.0036580483, %v1107_v37 }
 0x389   : > { %v1019_v53 = vsel %vm1016_vm2, %v1018_v35, %v1014_v63  ;;  %v1183_v9 = vmul.f32 %v3883_v52, %v3883_v52  ;;  %v1120_v18 = vmul.f32 %v1119_v57, %v3852_v14  ;;  %v1158_v47 = vmul.f32 %v1157_v36, %v3873_v42  ;;  %vm1053_vm6 = vmor %vm1051_vm4, %vm1052_vm3 }
 0x38a   : > { %v1048_v4 = vsub.f32 1.0, %v1047_v55  ;;  %v1020_v24 = vmul.f32 %v1019_v53, %v995_v17  ;;  %v1109_v26 = vmul.f32 %v1108_v3, %v3852_v14  ;;  %v3904_v54 = vadd.f32 1.0, %v1084_v13 }
 0x38b   : > { %v3897_v8 = vmin.f32 %v1183_v9, 16.0  ;;  %v1121_v23 = vadd.f32 0.112945676, %v1120_v18  ;;  %v1159_v48 = vadd.f32 0.014752088, %v1158_v47  ;;  %v1147_v63 = vmul.f32 %v1146_v25, %v3873_v42 }
 0x38c   : > { %v1049_v1 = vmul.f32 %v3124_v61, %v1048_v4  ;;  %v2855_v0 = vclamps-f32 %v1020_v24, 1.0  ;;  %3125 = vrcp.f32 %v3904_v54  ;;  %v1110_v50 = vadd.f32 0.05243302, %v1109_v26 }
 0x38d   : > { %v1185_v27 = vmul.f32 2.1237322e-06, %v3897_v8  ;;  %v1122_v53 = vmul.f32 %v1121_v23, %v3852_v14  ;;  %v967_v55 = vmul.f32 0.5, %v3773_v51  ;;  %v1196_v59 = vmul.f32 3.8918573e-05, %v3897_v8 }
 0x38e   : > { %v1050_v11 = vadd.f32 %v3124_v61, %v1049_v1  ;;  %v1303_v37 = vadd.f32 1.0, %v2855_v0  ;;  %v968_v60 = vmul.f32 0.5, %v3791_v7  ;;  %v1072_v6 = vadd.f32 0.18741608, %v1071_v44 }
 0x38f   : > { %v1186_v58 = vadd.f32 0.00028619796, %v1185_v27  ;;  %v1123_v4 = vadd.f32 0.4994258, %v1122_v53  ;;  %v1111_v16 = vmul.f32 %v1110_v50, %v3852_v14  ;;  %v1148_v19 = vadd.f32 0.0036580483, %v1147_v63 }
 0x390   : > { %v1054_v10 = vsel %vm1053_vm6, %v3124_v61, %v1050_v11  ;;  %v1160_v61 = vmul.f32 %v1159_v48, %v3873_v42  ;;  %v1197_v24 = vadd.f32 0.001143296, %v1196_v59  ;;  %v1311_v2 = vmul.f32 %v1303_v37, %v967_v55 }
 0x391   : > { %v1059_v28 = vsel %vm1056_vm5, %v1058_v49, %v1054_v10  ;;  %v1124_v34 = vmul.f32 %v1123_v4, %v3852_v14  ;;  %v1187_v57 = vmul.f32 %v1186_v58, %v3897_v8  ;;  %v1073_v47 = vmul.f32 %v1072_v6, %v3829_v43 }
 0x392   : > { %v1060_v35 = vmul.f32 %v1059_v28, %v1035_v29  ;;  %v1161_v41 = vadd.f32 0.112945676, %v1160_v61  ;;  %v3126_v3 = vpop.eup %3125  ;;  %v1198_v13 = vmul.f32 %v1197_v24, %v3897_v8  ;;  %v1112_v0 = vadd.f32 0.18741608, %v1111_v16 }
 0x393   : > { %v1087_v36 = vmul.f32 %v3126_v3, %v3904_v54  ;;  %v1125_v29 = vadd.f32 1.0, %v1124_v34  ;;  %v1149_v49 = vmul.f32 %v1148_v19, %v3873_v42  ;;  %vm1092_vm7 = vweird.f32 %v3126_v3 }
 0x394   : > { %v2856_v17 = vclamps-f32 %v1060_v35, 1.0  ;;  %v1162_v51 = vmul.f32 %v1161_v41, %v3873_v42  ;;  %v1199_v10 = vadd.f32 0.014752088, %v1198_v13  ;;  %v1188_v23 = vadd.f32 0.0036580483, %v1187_v57 }
 0x395   : > { %v1088_v18 = vsub.f32 1.0, %v1087_v36  ;;  %3127 = vrcp.f32 %v1125_v29  ;;  %vm1091_vm8 = vweird.f32 %v3904_v54  ;;  %v1097_v48 = vand.u32 2147483648, %v3904_v54 }
 0x396   : > { %v1304_v9 = vadd.f32 1.0, %v2856_v17  ;;  %v1163_v11 = vadd.f32 0.4994258, %v1162_v51  ;;  %v1095_v27 = vand.u32 2147483647, %v3904_v54  ;;  %v1200_v43 = vmul.f32 %v1199_v10, %v3897_v8  ;;  %vm1093_vm9 = vmor %vm1091_vm8, %vm1092_vm7 }
 0x397   : > { %v1089_v26 = vmul.f32 %v3126_v3, %v1088_v18  ;;  %v1074_v44 = vadd.f32 1.1283791, %v1073_v47  ;;  %v1113_v50 = vmul.f32 %v1112_v0, %v3852_v14  ;;  %v1150_v63 = vadd.f32 0.05243302, %v1149_v49 }
 0x398   : > { %v1312_v1 = vmul.f32 %v1304_v9, %v968_v60  ;;  %v1164_v25 = vmul.f32 %v1163_v11, %v3873_v42  ;;  %v1189_v53 = vmul.f32 %v1188_v23, %v3897_v8  ;;  %v1098_v61 = vor.u32 1.1754944e-38, %v1097_v48 }
 0x399   : > { %v1090_v28 = vadd.f32 %v3126_v3, %v1089_v26  ;;  %v1201_v55 = vadd.f32 0.112945676, %v1200_v43  ;;  %vm1096_vm10 = vcmp.eq.f32.partialorder %v1095_v27, 8.507059e+37  ;;  %v1075_v60 = vmul.f32 %v1074_v44, %v3818_v38 }
 0x39a   : > { %v1319_v7 = vpack.c.bf16 %v1312_v1, %v1311_v2  ;;  %v3927_v35 = vadd.f32 1.0, %v1164_v25  ;;  %v1114_v9 = vadd.f32 1.1283791, %v1113_v50  ;;  %v1151_v4 = vmul.f32 %v1150_v63, %v3873_v42 }
 0x39b   : > { %v1094_v37 = vsel %vm1093_vm9, %v3126_v3, %v1090_v28  ;;  %v3128_v17 = vpop.eup %3127  ;;  %v1202_v59 = vmul.f32 %v1201_v55, %v3897_v8  ;;  %v1190_v41 = vadd.f32 0.05243302, %v1189_v53  ;;  %v1137_v6 = vand.u32 2147483648, %v1125_v29 }
 0x39c   : > { %1399 = vmatmul.bf16.vlgmr.msrb.gmra.mxu3 %v1319_v7  ;;  %3129 = vrcp.f32 %v3927_v35  ;;  %v1127_v58 = vmul.f32 %v3128_v17, %v1125_v29  ;;  %v1099_v54 = vsel %vm1096_vm10, %v1098_v61, %v1094_v37  ;;  %vm1132_vm11 = vweird.f32 %v3128_v17 }
 0x39d   : > { %v1203_v16 = vadd.f32 0.4994258, %v1202_v59  ;;  %v1100_v24 = vmul.f32 %v1099_v54, %v1075_v60  ;;  %v1135_v2 = vand.u32 2147483647, %v1125_v29  ;;  %v1152_v51 = vadd.f32 0.18741608, %v1151_v4 }
 0x39e   : > { %v1128_v14 = vsub.f32 1.0, %v1127_v58  ;;  %vm1131_vm12 = vweird.f32 %v1125_v29  ;;  %v1191_v38 = vmul.f32 %v1190_v41, %v3897_v8  ;;  %v1138_v36 = vor.u32 1.1754944e-38, %v1137_v6 }
 0x39f   : > { %v1204_v34 = vmul.f32 %v1203_v16, %v3897_v8  ;;  %vm1133_vm13 = vmor %vm1131_vm12, %vm1132_vm11  ;;  %v1115_v13 = vmul.f32 %v1114_v9, %v3842_v39  ;;  %v2857_v18 = vclamps-f32 %v1100_v24, 1.0  ;;  %vm1136_vm14 = vcmp.eq.f32.partialorder %v1135_v2, 8.507059e+37 }
 0x3a0   : > { %v1129_v3 = vmul.f32 %v3128_v17, %v1128_v14  ;;  %v1153_v26 = vmul.f32 %v1152_v51, %v3873_v42  ;;  %v1192_v10 = vadd.f32 0.18741608, %v1191_v38  ;;  %v1177_v23 = vand.u32 2147483648, %v3927_v35 }
 0x3a1   : > { %v1205_v11 = vadd.f32 1.0, %v1204_v34  ;;  %v1305_v28 = vadd.f32 1.0, %v2857_v18  ;;  %vm1171_vm2 = vweird.f32 %v3927_v35  ;;  %v1175_v39 = vand.u32 2147483647, %v3927_v35 }
 0x3a2   : > { %v3130_v19 = vpop.eup %3129  ;;  %v1130_v57 = vadd.f32 %v3128_v17, %v1129_v3  ;;  %v969_v27 = vmul.f32 0.5, %v3810_v21  ;;  %v970_v43 = vmul.f32 0.5, %v3833_v31  ;;  %v1154_v44 = vadd.f32 1.1283791, %v1153_v26 }
 0x3a3   : > { %v1167_v1 = vmul.f32 %v3130_v19, %v3927_v35  ;;  %3131 = vrcp.f32 %v1205_v11  ;;  %vm1172_vm15 = vweird.f32 %v3130_v19  ;;  %v1193_v37 = vmul.f32 %v1192_v10, %v3897_v8 }
 0x3a4   : > { %v1134_v47 = vsel %vm1133_vm13, %v3128_v17, %v1130_v57  ;;  %vm1173_vm3 = vmor %vm1171_vm2, %vm1172_vm15  ;;  %v1178_v17 = vor.u32 1.1754944e-38, %v1177_v23  ;;  %v1313_v53 = vmul.f32 %v1305_v28, %v969_v27  ;;  %vm1176_vm4 = vcmp.eq.f32.partialorder %v1175_v39, 8.507059e+37 }
 0x3a5   : > { %v1168_v7 = vsub.f32 1.0, %v1167_v1  ;;  %v1139_v0 = vsel %vm1136_vm14, %v1138_v36, %v1134_v47  ;;  %v1155_v54 = vmul.f32 %v1154_v44, %v3862_v20  ;;  %v1194_v21 = vadd.f32 1.1283791, %v1193_v37 }
 0x3a6   : > { %v1140_v25 = vmul.f32 %v1139_v0, %v1115_v13  ;;  %v1217_v60 = vand.u32 2147483648, %v1205_v11  ;;  %v1215_v4 = vand.u32 2147483647, %v1205_v11  ;;  %vm1211_vm6 = vweird.f32 %v1205_v11 }
 0x3a7   : > { %v1169_v49 = vmul.f32 %v3130_v19, %v1168_v7  ;;  %v1195_v41 = vmul.f32 %v1194_v21, %v3883_v52  ;;  %v971_v2 = vmul.f32 0.5, %v3855_v15  ;;  %v972_v1 = vmul.f32 0.5, %v3878_v30 }
 0x3a8   : > { %v2858_v48 = vclamps-f32 %v1140_v25, 1.0  ;;  %v1218_v8 = vor.u32 1.1754944e-38, %v1217_v60  ;;  %vm1216_vm8 = vcmp.eq.f32.partialorder %v1215_v4, 8.507059e+37 }
 0x3a9   : > { %v1170_v29 = vadd.f32 %v3130_v19, %v1169_v49  ;;  %v3132_v63 = vpop.eup %3131 }
 0x3aa   : > { %v1306_v50 = vadd.f32 1.0, %v2858_v48  ;;  %v1207_v55 = vmul.f32 %v3132_v63, %v1205_v11  ;;  %vm1212_vm5 = vweird.f32 %v3132_v63 }
 0x3ab   : > { %v1174_v42 = vsel %vm1173_vm3, %v3130_v19, %v1170_v29  ;;  %vm1213_vm7 = vmor %vm1211_vm6, %vm1212_vm5 }
 0x3ac   : > { %v1314_v61 = vmul.f32 %v1306_v50, %v970_v43  ;;  %v1179_v58 = vsel %vm1176_vm4, %v1178_v17, %v1174_v42  ;;  %v1208_v59 = vsub.f32 1.0, %v1207_v55 }
 0x3ad   : > { %v1180_v31 = vmul.f32 %v1179_v58, %v1155_v54 }
 0x3ae   : > { %v1320_v35 = vpack.c.bf16 %v1314_v61, %v1313_v53  ;;  %v1209_v9 = vmul.f32 %v3132_v63, %v1208_v59 }
 0x3af   : > { %v2859_v6 = vclamps-f32 %v1180_v31, 1.0 }
 0x3b0   : > { %1404 = vmatmul.bf16.gmra.mxu3 %v1320_v35  ;;  %v1210_v14 = vadd.f32 %v3132_v63, %v1209_v9 }
 0x3b1   : > { %v1307_v3 = vadd.f32 1.0, %v2859_v6 }
 0x3b2   : > { %v1214_v16 = vsel %vm1213_vm7, %v3132_v63, %v1210_v14 }
 0x3b3   : > { %v1219_v19 = vsel %vm1216_vm8, %v1218_v8, %v1214_v16  ;;  %v1315_v51 = vmul.f32 %v1307_v3, %v971_v2 }
 0x3b4   : > { %v1220_v20 = vmul.f32 %v1219_v19, %v1195_v41 }
 0x3b6   : > { %v2860_v24 = vclamps-f32 %v1220_v20, 1.0 }
 0x3b8   : > { %v1308_v34 = vadd.f32 1.0, %v2860_v24 }
 0x3ba   : > { %v1316_v57 = vmul.f32 %v1308_v34, %v972_v1 }
 0x3bc   : > { %v1321_v38 = vpack.c.bf16 %v1316_v57, %v1315_v51 }
 0x3c0   : > { %1409 = vmatmul.bf16.gmra.mxu3 %v1321_v38 }
 0x3d7   : > { %v962_v36 = vpop.f32.mrf.mxu3 }
 0x3d8   : > { %v3952_v7 = vadd.f32 %v3770_v40, %v962_v36 }
 0x3da   : > { %v3955_v52 = vmul.f32 0.70710677, %v3952_v7 }
 0x3dc   : > { %v1223_v11 = vmul.f32 %v3955_v52, %v3955_v52 }
 0x3de   : > { %v1224_v13 = vmin.f32 %v1223_v11, 16.0 }
 0x3df   : > { %v964_v18 = vpop.f32.mrf.mxu3 }
 0x3e0   : > { %v1225_v15 = vmul.f32 2.1237322e-06, %v1224_v13  ;;  %v3960_v30 = vadd.f32 %v3770_v40, %v964_v18  ;;  %v1236_v47 = vmul.f32 3.8918573e-05, %v1224_v13 }
 0x3e2   : > { %v1226_v0 = vadd.f32 0.00028619796, %v1225_v15  ;;  %v3963_v49 = vmul.f32 0.70710677, %v3960_v30  ;;  %v1237_v26 = vadd.f32 0.001143296, %v1236_v47 }
 0x3e4   : > { %v1263_v25 = vmul.f32 %v3963_v49, %v3963_v49  ;;  %v1227_v10 = vmul.f32 %v1226_v0, %v1224_v13  ;;  %v1238_v29 = vmul.f32 %v1237_v26, %v1224_v13 }
 0x3e6   : > { %v1264_v23 = vmin.f32 %v1263_v25, 16.0  ;;  %v1239_v48 = vadd.f32 0.014752088, %v1238_v29  ;;  %v1228_v27 = vadd.f32 0.0036580483, %v1227_v10 }
 0x3e8   : > { %v1265_v28 = vmul.f32 2.1237322e-06, %v1264_v23  ;;  %v1276_v39 = vmul.f32 3.8918573e-05, %v1264_v23  ;;  %v1240_v43 = vmul.f32 %v1239_v48, %v1224_v13  ;;  %v1229_v37 = vmul.f32 %v1228_v27, %v1224_v13 }
 0x3ea   : > { %v1266_v44 = vadd.f32 0.00028619796, %v1265_v28  ;;  %v1277_v40 = vadd.f32 0.001143296, %v1276_v39  ;;  %v1241_v50 = vadd.f32 0.112945676, %v1240_v43 }
 0x3eb   : > { %v1230_v54 = vadd.f32 0.05243302, %v1229_v37  ;;  %v974_v37 = vmul.f32 0.5, %v3960_v30 }
 0x3ec   : > { %v1267_v42 = vmul.f32 %v1266_v44, %v1264_v23  ;;  %v1278_v63 = vmul.f32 %v1277_v40, %v1264_v23  ;;  %v1242_v17 = vmul.f32 %v1241_v50, %v1224_v13 }
 0x3ed   : > { %v1231_v9 = vmul.f32 %v1230_v54, %v1224_v13 }
 0x3ee   : > { %v1268_v53 = vadd.f32 0.0036580483, %v1267_v42  ;;  %v1279_v61 = vadd.f32 0.014752088, %v1278_v63  ;;  %v1243_v55 = vadd.f32 0.4994258, %v1242_v17 }
 0x3ef   : > { %v1232_v41 = vadd.f32 0.18741608, %v1231_v9  ;;  %v973_v63 = vmul.f32 0.5, %v3952_v7 }
 0x3f0   : > { %v1280_v58 = vmul.f32 %v1279_v61, %v1264_v23  ;;  %v1244_v35 = vmul.f32 %v1243_v55, %v1224_v13  ;;  %v1269_v59 = vmul.f32 %v1268_v53, %v1264_v23 }
 0x3f1   : > { %v1233_v24 = vmul.f32 %v1232_v41, %v1224_v13 }
 0x3f2   : > { %v1281_v21 = vadd.f32 0.112945676, %v1280_v58  ;;  %v1245_v60 = vadd.f32 1.0, %v1244_v35  ;;  %v1270_v4 = vadd.f32 0.05243302, %v1269_v59 }
 0x3f3   : > { %v1234_v57 = vadd.f32 1.1283791, %v1233_v24 }
 0x3f4   : > { %v1282_v31 = vmul.f32 %v1281_v21, %v1264_v23  ;;  %3133 = vrcp.f32 %v1245_v60  ;;  %v1271_v6 = vmul.f32 %v1270_v4, %v1264_v23  ;;  %v1257_v1 = vand.u32 2147483648, %v1245_v60  ;;  %v3094_v21 = vld [vmem:[%s4904_s10] ss:$0 sm:$0xff] }
 0x3f5   : > { %v1255_v51 = vand.u32 2147483647, %v1245_v60  ;;  %vm1251_vm10 = vweird.f32 %v1245_v60  ;;  %v1235_v0 = vmul.f32 %v1234_v57, %v3955_v52 }
 0x3f6   : > { %v1283_v14 = vadd.f32 0.4994258, %v1282_v31  ;;  %v1272_v3 = vadd.f32 0.18741608, %v1271_v6  ;;  %v1258_v18 = vor.u32 1.1754944e-38, %v1257_v1 }
 0x3f7   : > { %vm1256_vm12 = vcmp.eq.f32.partialorder %v1255_v51, 8.507059e+37 }
 0x3f8   : > { %v1284_v8 = vmul.f32 %v1283_v14, %v1264_v23  ;;  %v1273_v36 = vmul.f32 %v1272_v3, %v1264_v23 }
 0x3fa   : > { %v1285_v16 = vadd.f32 1.0, %v1284_v8  ;;  %v3134_v19 = vpop.eup %3133  ;;  %v1274_v25 = vadd.f32 1.1283791, %v1273_v36 }
 0x3fb   : > { %v1247_v20 = vmul.f32 %v3134_v19, %v1245_v60  ;;  %vm1252_vm9 = vweird.f32 %v3134_v19 }
 0x3fc   : > { %3135 = vrcp.f32 %v1285_v16  ;;  %vm1253_vm11 = vmor %vm1251_vm10, %vm1252_vm9  ;;  %v1297_v10 = vand.u32 2147483648, %v1285_v16  ;;  %v1295_v28 = vand.u32 2147483647, %v1285_v16  ;;  %vm1291_vm14 = vweird.f32 %v1285_v16 }
 0x3fd   : > { %v1248_v2 = vsub.f32 1.0, %v1247_v20  ;;  %v1275_v27 = vmul.f32 %v1274_v25, %v3963_v49 }
 0x3fe   : > { %v1298_v23 = vor.u32 1.1754944e-38, %v1297_v10  ;;  %vm1296_vm2 = vcmp.eq.f32.partialorder %v1295_v28, 8.507059e+37 }
 0x3ff   : > { %v1249_v34 = vmul.f32 %v3134_v19, %v1248_v2 }
 0x401   : > { %v1250_v11 = vadd.f32 %v3134_v19, %v1249_v34 }
 0x402   : > { %v3136_v38 = vpop.eup %3135 }
 0x403   : > { %v1287_v15 = vmul.f32 %v3136_v38, %v1285_v16  ;;  %v1254_v47 = vsel %vm1253_vm11, %v3134_v19, %v1250_v11  ;;  %vm1292_vm13 = vweird.f32 %v3136_v38 }
 0x404   : > { %v1259_v26 = vsel %vm1256_vm12, %v1258_v18, %v1254_v47  ;;  %vm1293_vm15 = vmor %vm1291_vm14, %vm1292_vm13 }
 0x405   : > { %v1288_v13 = vsub.f32 1.0, %v1287_v15  ;;  %v1260_v29 = vmul.f32 %v1259_v26, %v1235_v0 }
 0x407   : > { %v1289_v48 = vmul.f32 %v3136_v38, %v1288_v13  ;;  %v2861_v43 = vclamps-f32 %v1260_v29, 1.0 }
 0x409   : > { %v1290_v39 = vadd.f32 %v3136_v38, %v1289_v48  ;;  %v1309_v42 = vadd.f32 1.0, %v2861_v43 }
 0x40b   : > { %v1294_v44 = vsel %vm1293_vm15, %v3136_v38, %v1290_v39  ;;  %v1317_v53 = vmul.f32 %v1309_v42, %v973_v63 }
 0x40c   : > { %v1299_v40 = vsel %vm1296_vm2, %v1298_v23, %v1294_v44 }
 0x40d   : > { %v1300_v50 = vmul.f32 %v1299_v40, %v1275_v27 }
 0x40f   : > { %v2862_v52 = vclamps-f32 %v1300_v50, 1.0 }
 0x411   : > { %v1310_v17 = vadd.f32 1.0, %v2862_v52 }
 0x413   : > { %v1318_v61 = vmul.f32 %v1310_v17, %v974_v37 }
 0x415   : > { %v1322_v55 = vpack.c.bf16 %v1318_v61, %v1317_v53 }
 0x417   : > { %1414 = vmatmul.bf16.gmra.mxu3 %v1322_v55 }
 0x41f   : > { %v1400_v58 = vpop.f32.mrf.mxu3 }
 0x420   : > { %v1401_v2 = vadd.f32 %v3094_v21, %v1400_v58 }
 0x422   : > { %v1420_v51 = vadd.f32 %v1401_v2, %v3717_v56 }
 0x424   : > { %v1430_v36 = vsel %vm696_vm1, %v1420_v51, 0.0 }
 0x427   : > { %v1402_v54 = vpop.f32.mrf.mxu3 }
 0x428   : > { %v1403_v57 = vadd.f32 %v3094_v21, %v1402_v54 }
 0x433   : > { %v1405_v35 = vpop.f32.mrf.mxu3 }
 0x434   : > { %v1406_v9 = vadd.f32 %v3094_v21, %v1405_v35 }
 0x436   : > { %v1422_v4 = vadd.f32 %v1406_v9, %v3731_v5 }
 0x438   : > { %v1436_v14 = vsel %vm696_vm1, %v1422_v4, 0.0 }
 0x43b   : > { %v1407_v49 = vpop.f32.mrf.mxu3 }
 0x43c   : > { %v1408_v16 = vadd.f32 %v3094_v21, %v1407_v49 }
 0x443   : > { %v1410_v59 = vpop.f32.mrf.mxu3 }
 0x444   : > { %v1411_v1 = vadd.f32 %v3094_v21, %v1410_v59 }
 0x44b   : > { %v1412_v60 = vpop.f32.mrf.mxu3 }
 0x44c   : > { %v1413_v31 = vadd.f32 %v3094_v21, %v1412_v60 }
 0x44e   : > { %v1425_v7 = vadd.f32 %v1413_v31, %v3747_v33  ;;  %v1423_v33 = vadd.f32 %v1408_v16, %v3734_v12  ;;  %v1421_v12 = vadd.f32 %v1403_v57, %v3720_v62 }
 0x450   : > { %v1445_v30 = vsel %vm696_vm1, %v1425_v7, 0.0  ;;  %v1439_v34 = vsel %vm696_vm1, %v1423_v33, 0.0 }
 0x451   : > { %1446 = vadd.xlane.f32.xlu0 %v1445_v30 }
 0x459   : > { %1437 = vadd.xlane.f32.xlu0 %v1436_v14 }
 0x49a   : > { %v1415_v8 = vpop.f32.mrf.mxu3 }
 0x49b   : > { %v1416_v41 = vadd.f32 %v3094_v21, %v1415_v8 }
 0x49d   : > { %v1426_v6 = vadd.f32 %v1416_v41, %v3759_v45  ;;  %v1424_v45 = vadd.f32 %v1411_v1, %v3744_v32 }
 0x49f   : > { %v1448_v19 = vsel %vm696_vm1, %v1426_v6, 0.0  ;;  %v1442_v38 = vsel %vm696_vm1, %v1424_v45, 0.0 }
 0x4a0   : > { %1449 = vadd.xlane.f32.xlu2 %v1448_v19 }
 0x4a2   : > { %v1417_v20 = vpop.f32.mrf.mxu3 }
 0x4a3   : > { %v1418_v24 = vadd.f32 %v3094_v21, %v1417_v20 }
 0x4a5   : > { %v1427_v3 = vadd.f32 %v1418_v24, %v3762_v46  ;;  %v1433_v46 = vsel %vm696_vm1, %v1421_v12, 0.0 }
 0x4a7   : > { %v1451_v5 = vsel %vm696_vm1, %v1427_v3, 0.0 }
 0x4a8   : > { %1452 = vadd.xlane.f32.xlu1 %v1451_v5  ;;  %1440 = vadd.xlane.f32.xlu2 %v1439_v34 }
 0x4b0   : > { %1443 = vadd.xlane.f32.xlu1 %v1442_v38  ;;  %1431 = vadd.xlane.f32.xlu2 %v1430_v36 }
 0x4b8   : > { %1434 = vadd.xlane.f32.xlu1 %v1433_v46 }
 0x4c4   : > { %v1447_v11 = vpop.xlane.xlu0 %1446 }
 0x4c5   : > { %v1459_v18 = vmul.f32 %v1447_v11, %v3639_v22 }
 0x4c7   : > { %v3991_v15 = vsub.f32 %v1425_v7, %v1459_v18 }
 0x4c9   : > { %v1475_v56 = vmul.f32 %v3991_v15, %v3991_v15 }
 0x4cb   : > { %v1493_v32 = vsel %vm696_vm1, %v1475_v56, 0.0 }
 0x4cc   : > { %v1438_v47 = vpop.xlane.xlu0 %1437  ;;  %1494 = vadd.xlane.f32.xlu2 %v1493_v32 }
 0x4cd   : > { %v1456_v0 = vmul.f32 %v1438_v47, %v3639_v22 }
 0x4cf   : > { %v3997_v26 = vsub.f32 %v1422_v4, %v1456_v0 }
 0x4d1   : > { %v1472_v62 = vmul.f32 %v3997_v26, %v3997_v26 }
 0x4d3   : > { %v1484_v13 = vsel %vm696_vm1, %v1472_v62, 0.0 }
 0x4d4   : > { %1485 = vadd.xlane.f32.xlu2 %v1484_v13 }
 0x513   : > { %v1450_v25 = vpop.xlane.xlu2 %1449 }
 0x514   : > { %v1460_v10 = vmul.f32 %v1450_v25, %v3639_v22 }
 0x516   : > { %v4003_v29 = vsub.f32 %v1426_v6, %v1460_v10 }
 0x518   : > { %v1476_v48 = vmul.f32 %v4003_v29, %v4003_v29 }
 0x51a   : > { %v1496_v28 = vsel %vm696_vm1, %v1476_v48, 0.0 }
 0x51b   : > { %v1453_v39 = vpop.xlane.xlu1 %1452  ;;  %1497 = vadd.xlane.f32.xlu1 %v1496_v28  ;;  %v1441_v23 = vpop.xlane.xlu2 %1440 }
 0x51c   : > { %v1461_v27 = vmul.f32 %v1453_v39, %v3639_v22  ;;  %v1457_v43 = vmul.f32 %v1441_v23, %v3639_v22 }
 0x51e   : > { %v4010_v44 = vsub.f32 %v1427_v3, %v1461_v27  ;;  %v4012_v40 = vsub.f32 %v1423_v33, %v1457_v43 }
 0x520   : > { %v1477_v50 = vmul.f32 %v4010_v44, %v4010_v44  ;;  %v1473_v52 = vmul.f32 %v4012_v40, %v4012_v40 }
 0x522   : > { %v1499_v42 = vsel %vm696_vm1, %v1477_v50, 0.0  ;;  %v1487_v63 = vsel %vm696_vm1, %v1473_v52, 0.0 }
 0x523   : > { %1500 = vadd.xlane.f32.xlu0 %v1499_v42  ;;  %v1444_v37 = vpop.xlane.xlu1 %1443  ;;  %1488 = vadd.xlane.f32.xlu1 %v1487_v63  ;;  %v1432_v17 = vpop.xlane.xlu2 %1431 }
 0x524   : > { %v1458_v53 = vmul.f32 %v1444_v37, %v3639_v22  ;;  %v1454_v61 = vmul.f32 %v1432_v17, %v3639_v22 }
 0x526   : > { %v4022_v55 = vsub.f32 %v1424_v45, %v1458_v53  ;;  %v4024_v58 = vsub.f32 %v1420_v51, %v1454_v61 }
 0x528   : > { %v1474_v54 = vmul.f32 %v4022_v55, %v4022_v55  ;;  %v1470_v35 = vmul.f32 %v4024_v58, %v4024_v58 }
 0x52a   : > { %v1490_v49 = vsel %vm696_vm1, %v1474_v54, 0.0  ;;  %v1478_v59 = vsel %vm696_vm1, %v1470_v35, 0.0 }
 0x52b   : > { %1491 = vadd.xlane.f32.xlu0 %v1490_v49  ;;  %v1435_v21 = vpop.xlane.xlu1 %1434  ;;  %1479 = vadd.xlane.f32.xlu1 %v1478_v59 }
 0x52c   : > { %v1455_v60 = vmul.f32 %v1435_v21, %v3639_v22 }
 0x52e   : > { %v4033_v31 = vsub.f32 %v1421_v12, %v1455_v60 }
 0x530   : > { %v1471_v7 = vmul.f32 %v4033_v31, %v4033_v31 }
 0x532   : > { %v1481_v9 = vsel %vm696_vm1, %v1471_v7, 0.0 }
 0x533   : > { %1482 = vadd.xlane.f32.xlu0 %v1481_v9 }
 0x53f   : > { %v1495_v30 = vpop.xlane.xlu2 %1494 }
 0x540   : > { %v1507_v4 = vmul.f32 %v1495_v30, %v3639_v22 }
 0x542   : > { %v1515_v14 = vadd.f32 1e-12, %v1507_v4 }
 0x544   : > { %3137 = vrsqrt.f32 %v1515_v14  ;;  %vm1574_vm6 = vweird.f32 %v1515_v14 }
 0x547   : > { %v1486_v8 = vpop.xlane.xlu2 %1485 }
 0x548   : > { %v1504_v41 = vmul.f32 %v1486_v8, %v3639_v22 }
 0x54a   : > { %v4041_v19 = vadd.f32 1e-12, %v1504_v41  ;;  %v4043_v24 = vpop.eup %3137 }
 0x54b   : > { %v1569_v33 = vmul.f32 %v4043_v24, %v1515_v14  ;;  %vm1575_vm4 = vweird.f32 %v4043_v24 }
 0x54c   : > { %vm4078_vm8 = vmor %vm1574_vm6, %vm1575_vm4  ;;  %vm1544_vm2 = vweird.f32 %v4041_v19 }
 0x54d   : > { %v1570_v45 = vmul.f32 %v4043_v24, %v1569_v33 }
 0x54f   : > { %v1571_v46 = vmul.f32 0.5, %v1570_v45 }
 0x551   : > { %v1572_v25 = vsub.f32 1.5, %v1571_v46 }
 0x553   : > { %v1573_v52 = vmul.f32 %v4043_v24, %v1572_v25 }
 0x555   : > { %v1577_v9 = vsel %vm4078_vm8, %v4043_v24, %v1573_v52 }
 0x58e   : > { %v1498_v6 = vpop.xlane.xlu1 %1497 }
 0x58f   : > { %v1508_v16 = vmul.f32 %v1498_v6, %v3639_v22 }
 0x591   : > { %v1516_v20 = vadd.f32 1e-12, %v1508_v16 }
 0x593   : > { %3139 = vrsqrt.f32 %v1516_v20  ;;  %vm1584_vm5 = vweird.f32 %v1516_v20 }
 0x594   : > { %3141 = vrsqrt.f32 %v4041_v19 }
 0x596   : > { %v1501_v3 = vpop.xlane.xlu0 %1500  ;;  %v1489_v2 = vpop.xlane.xlu1 %1488 }
 0x597   : > { %v1509_v1 = vmul.f32 %v1501_v3, %v3639_v22  ;;  %v1505_v5 = vmul.f32 %v1489_v2, %v3639_v22  ;;  %v3095_v2 = vld [vmem:[%s4905_s11] ss:$0 sm:$0xff] }
 0x599   : > { %v3140_v34 = vpop.eup %3139  ;;  %v1517_v51 = vadd.f32 1e-12, %v1509_v1  ;;  %v4050_v57 = vadd.f32 1e-12, %v1505_v5  ;;  %v1603_v1 = vmul.f32 %v1577_v9, %v3991_v15  ;;  %v3208_v9 = vld [vmem:[%s4914_s1 + $0x38] sm:$0xff] }
 0x59a   : > { %v1579_v38 = vmul.f32 %v3140_v34, %v1516_v20  ;;  %v4052_v36 = vpop.eup %3141  ;;  %vm1585_vm3 = vweird.f32 %v3140_v34 }
 0x59b   : > { %3143 = vrsqrt.f32 %v1517_v51  ;;  %v1539_v11 = vmul.f32 %v4052_v36, %v4041_v19  ;;  %vm4073_vm7 = vmor %vm1584_vm5, %vm1585_vm3  ;;  %vm1594_vm10 = vweird.f32 %v1517_v51  ;;  %vm1545_vm13 = vweird.f32 %v4052_v36 }
 0x59c   : > { %v1580_v12 = vmul.f32 %v3140_v34, %v1579_v38  ;;  %3145 = vrsqrt.f32 %v4050_v57  ;;  %vm1554_vm14 = vweird.f32 %v4050_v57  ;;  %vm4118_vm4 = vmor %vm1544_vm2, %vm1545_vm13 }
 0x59d   : > { %v1540_v39 = vmul.f32 %v4052_v36, %v1539_v11 }
 0x59e   : > { %v1581_v18 = vmul.f32 0.5, %v1580_v12  ;;  %v1492_v56 = vpop.xlane.xlu0 %1491  ;;  %v1480_v32 = vpop.xlane.xlu1 %1479 }
 0x59f   : > { %v1506_v47 = vmul.f32 %v1492_v56, %v3639_v22  ;;  %v1502_v0 = vmul.f32 %v1480_v32, %v3639_v22  ;;  %v1541_v63 = vmul.f32 0.5, %v1540_v39  ;;  %v1614_v56 = vmul.f32 %v3095_v2, %v1603_v1 }
 0x5a0   : > { %v1582_v62 = vsub.f32 1.5, %v1581_v18 }
 0x5a1   : > { %v3144_v13 = vpop.eup %3143  ;;  %v4059_v10 = vadd.f32 1e-12, %v1506_v47  ;;  %v4061_v48 = vadd.f32 1e-12, %v1502_v0  ;;  %v1542_v4 = vsub.f32 1.5, %v1541_v63 }
 0x5a2   : > { %v4063_v28 = vpop.eup %3145  ;;  %v1589_v23 = vmul.f32 %v3144_v13, %v1517_v51  ;;  %v1583_v43 = vmul.f32 %v3140_v34, %v1582_v62  ;;  %vm1595_vm9 = vweird.f32 %v3144_v13 }
 0x5a3   : > { %v1549_v27 = vmul.f32 %v4063_v28, %v4050_v57  ;;  %3147 = vrsqrt.f32 %v4059_v10  ;;  %vm1596_vm11 = vmor %vm1594_vm10, %vm1595_vm9  ;;  %vm1555_vm12 = vweird.f32 %v4063_v28  ;;  %v1543_v5 = vmul.f32 %v4052_v36, %v1542_v4  ;;  %v3210_v4 = vld [vmem:[%s4914_s1 + $0x48] sm:$0xff] }
 0x5a4   : > { %v1590_v50 = vmul.f32 %v3144_v13, %v1589_v23  ;;  %3149 = vrsqrt.f32 %v4061_v48  ;;  %v1587_v59 = vsel %vm4073_vm7, %v3140_v34, %v1583_v43  ;;  %vm4107_vm15 = vmor %vm1554_vm14, %vm1555_vm12  ;;  %vm1564_vm5 = vweird.f32 %v4059_v10 }
 0x5a5   : > { %v1550_v42 = vmul.f32 %v4063_v28, %v1549_v27  ;;  %v1604_v6 = vmul.f32 %v1587_v59, %v4003_v29  ;;  %v1547_v47 = vsel %vm4118_vm4, %v4052_v36, %v1543_v5  ;;  %vm1524_vm8 = vweird.f32 %v4061_v48  ;;  %v3204_v59 = vld [vmem:[%s4914_s1 + $0x18] sm:$0xff] }
 0x5a6   : > { %v1591_v37 = vmul.f32 0.5, %v1590_v50  ;;  %v1483_v17 = vpop.xlane.xlu0 %1482  ;;  %v1600_v36 = vmul.f32 %v1547_v47, %v3997_v26 }
 0x5a7   : > { %v1551_v61 = vmul.f32 0.5, %v1550_v42  ;;  %v1503_v54 = vmul.f32 %v1483_v17, %v3639_v22  ;;  %v1615_v38 = vmul.f32 %v3095_v2, %v1604_v6  ;;  %v3214_v6 = vld [vmem:[%s4914_s1 + $0x68] sm:$0xff] }
 0x5a8   : > { %v1592_v49 = vsub.f32 1.5, %v1591_v37  ;;  %v1611_v42 = vmul.f32 %v3095_v2, %v1600_v36 }
 0x5a9   : > { %v3148_v21 = vpop.eup %3147  ;;  %v1552_v60 = vsub.f32 1.5, %v1551_v61  ;;  %v4084_v7 = vadd.f32 1e-12, %v1503_v54 }
 0x5aa   : > { %v4089_v30 = vpop.eup %3149  ;;  %v1593_v14 = vmul.f32 %v3144_v13, %v1592_v49  ;;  %v1559_v8 = vmul.f32 %v3148_v21, %v4059_v10  ;;  %vm1565_vm3 = vweird.f32 %v3148_v21  ;;  %v3203_v49 = vld [vmem:[%s4914_s1 + $0x10] sm:$0xff] }
 0x5ab   : > { %v1519_v41 = vmul.f32 %v4089_v30, %v4061_v48  ;;  %3151 = vrsqrt.f32 %v4084_v7  ;;  %v1553_v16 = vmul.f32 %v4063_v28, %v1552_v60  ;;  %vm1566_vm6 = vmor %vm1564_vm5, %vm1565_vm3  ;;  %vm1525_vm7 = vweird.f32 %v4089_v30  ;;  %v3206_v60 = vld [vmem:[%s4914_s1 + $0x28] sm:$0xff] }
 0x5ac   : > { %v1560_v20 = vmul.f32 %v3148_v21, %v1559_v8  ;;  %v1597_v24 = vsel %vm1596_vm11, %v3144_v13, %v1593_v14  ;;  %vm1526_vm9 = vmor %vm1524_vm8, %vm1525_vm7  ;;  %vm1534_vm11 = vweird.f32 %v4084_v7  ;;  %v3211_v14 = vld [vmem:[%s4914_s1 + $0x50] sm:$0xff]  ;;  %v3212_v8 = vld [vmem:[%s4914_s1 + $0x58] sm:$0xff] }
 0x5ad   : > { %v1520_v33 = vmul.f32 %v4089_v30, %v1519_v41  ;;  %v1605_v3 = vmul.f32 %v1597_v24, %v4010_v44  ;;  %v3096_v44 = vld [vmem:[%s4906_s12] ss:$0 sm:$0xff]  ;;  %v1557_v57 = vsel %vm4107_vm15, %v4063_v28, %v1553_v16  ;;  %v3215_v16 = vld [vmem:[%s4914_s1 + $0x70] sm:$0xff] }
 0x5ae   : > { %v1561_v29 = vmul.f32 0.5, %v1560_v20  ;;  %v4130_v0 = vadd.f32 %v3096_v44, %v1615_v38  ;;  %v1601_v62 = vmul.f32 %v1557_v57, %v4012_v40  ;;  %v4136_v10 = vadd.f32 %v3096_v44, %v1614_v56  ;;  %v3213_v41 = vld [vmem:[%s4914_s1 + $0x60] sm:$0xff]  ;;  %v3216_v20 = vld [vmem:[%s4914_s1 + $0x78] sm:$0xff]  ;;  %v2912_v56 = vld [vmem:[%s4897_s3 + $0x48] sm:$0xff] }
 0x5af   : > { %v1521_v45 = vmul.f32 0.5, %v1520_v33  ;;  %v1616_v51 = vmul.f32 %v3095_v2, %v1605_v3  ;;  %v4151_v37 = vadd.f32 %v3096_v44, %v1611_v42 }
 0x5b0   : > { %v1562_v15 = vsub.f32 1.5, %v1561_v29  ;;  %v1612_v27 = vmul.f32 %v3095_v2, %v1601_v62 }
 0x5b1   : > { %v3152_v12 = vpop.eup %3151  ;;  %v1522_v11 = vsub.f32 1.5, %v1521_v45  ;;  %v4122_v18 = vadd.f32 %v3096_v44, %v1616_v51  ;;  %v2911_v45 = vld [vmem:[%s4897_s3 + $0x40] sm:$0xff] }
 0x5b2   : > { %v1563_v32 = vmul.f32 %v3148_v21, %v1562_v15  ;;  %v1529_v19 = vmul.f32 %v3152_v12, %v4084_v7  ;;  %vm1535_vm10 = vweird.f32 %v3152_v12  ;;  %v4147_v26 = vadd.f32 %v3096_v44, %v1612_v27  ;;  %v3207_v7 = vld [vmem:[%s4914_s1 + $0x30] sm:$0xff]  ;;  %v2919_v51 = vld [vmem:[%s4898_s4 + $0x40] sm:$0xff] }
 0x5b3   : > { %1636 = vmatpush.msrb.mxu2 %v4122_v18  ;;  %v1523_v13 = vmul.f32 %v4089_v30, %v1522_v11  ;;  %vm1536_vm12 = vmor %vm1534_vm11, %vm1535_vm10 }
 0x5b4   : > { %v1530_v25 = vmul.f32 %v3152_v12, %v1529_v19  ;;  %v1567_v28 = vsel %vm1566_vm6, %v3148_v21, %v1563_v32  ;;  %v3205_v21 = vld [vmem:[%s4914_s1 + $0x20] sm:$0xff]  ;;  %v2920_v32 = vld [vmem:[%s4898_s4 + $0x48] sm:$0xff] }
 0x5b5   : > { %1637 = vmatpush.msrb.mxu2 %v4130_v0  ;;  %v1602_v39 = vmul.f32 %v1567_v28, %v4022_v55  ;;  %v1527_v50 = vsel %vm1526_vm9, %v4089_v30, %v1523_v13  ;;  %v3209_v30 = vld [vmem:[%s4914_s1 + $0x40] sm:$0xff]  ;;  %v2921_v28 = vld [vmem:[%s4898_s4 + $0x50] sm:$0xff] }
 0x5b6   : > { %v1531_v23 = vmul.f32 0.5, %v1530_v25  ;;  %v1598_v55 = vmul.f32 %v1527_v50, %v4024_v58  ;;  %v3201_v58 = vld [vmem:[%s4914_s1] sm:$0xff]  ;;  %v2913_v25 = vld [vmem:[%s4897_s3 + $0x50] sm:$0xff] }
 0x5b7   : > { %1638 = vmatpush.msrb.mxu2 %v4136_v10  ;;  %v1613_v40 = vmul.f32 %v3095_v2, %v1602_v39 }
 0x5b8   : > { %v1532_v43 = vsub.f32 1.5, %v1531_v23  ;;  %v1609_v61 = vmul.f32 %v3095_v2, %v1598_v55  ;;  %v2917_v55 = vld [vmem:[%s4897_s3 + $0x70] sm:$0xff] }
 0x5b9   : > { %v4143_v52 = vadd.f32 %v3096_v44, %v1613_v40 }
 0x5ba   : > { %v1533_v63 = vmul.f32 %v3152_v12, %v1532_v43  ;;  %v4158_v35 = vadd.f32 %v3096_v44, %v1609_v61 }
 0x5bb   : > { %1639 = vmatpush.msrb.mxu2 %v4143_v52 }
 0x5bc   : > { %v1537_v48 = vsel %vm1536_vm12, %v3152_v12, %v1533_v63  ;;  %v2926_v63 = vld [vmem:[%s4898_s4 + $0x78] sm:$0xff] }
 0x5bd   : > { %1640 = vmatpush.msrb.mxu2 %v4147_v26  ;;  %v1599_v17 = vmul.f32 %v1537_v48, %v4033_v31  ;;  %v3202_v31 = vld [vmem:[%s4914_s1 + $0x8] sm:$0xff]  ;;  %v2925_v48 = vld [vmem:[%s4898_s4 + $0x70] sm:$0xff] }
 0x5bf   : > { %1641 = vmatpush.msrb.mxu2 %v4151_v37  ;;  %v1610_v53 = vmul.f32 %v3095_v2, %v1599_v17  ;;  %v2918_v17 = vld [vmem:[%s4897_s3 + $0x78] sm:$0xff] }
 0x5c1   : > { %v4155_v54 = vadd.f32 %v3096_v44, %v1610_v53 }
 0x5c3   : > { %1642 = vmatpush.msrb.mxu2 %v4155_v54 }
 0x5c5   : > { %1643 = vmatpush.msrb.mxu2 %v4158_v35 }
 0x5c6   : > { %2895 = vmatmul.msk.f32.vlgmr.msrb.gmra.mxu2 %vm475_vm0, %v3201_v58 }
 0x5ce   : > { %2896 = vmatmul.msk.f32.gmra.mxu2 %vm475_vm0, %v3202_v31 }
 0x5d6   : > { %2897 = vmatmul.msk.f32.gmra.mxu2 %vm475_vm0, %v3203_v49  ;;  %v2916_v49 = vld [vmem:[%s4897_s3 + $0x68] sm:$0xff] }
 0x5de   : > { %2898 = vmatmul.msk.f32.gmra.mxu2 %vm475_vm0, %v3204_v59  ;;  %v2924_v59 = vld [vmem:[%s4898_s4 + $0x68] sm:$0xff] }
 0x5e6   : > { %2899 = vmatmul.msk.f32.gmra.mxu2 %vm475_vm0, %v3205_v21 }
 0x5ee   : > { %2900 = vmatmul.msk.f32.gmra.mxu2 %vm475_vm0, %v3206_v60 }
 0x5f6   : > { %2901 = vmatmul.msk.f32.gmra.mxu2 %vm475_vm0, %v3207_v7 }
 0x5fe   : > { %2902 = vmatmul.msk.f32.gmra.mxu2 %vm475_vm0, %v3208_v9  ;;  %v2915_v9 = vld [vmem:[%s4897_s3 + $0x60] sm:$0xff] }
 0x606   : > { %2903 = vmatmul.msk.f32.gmra.mxu2 %vm475_vm0, %v3209_v30  ;;  %v2923_v30 = vld [vmem:[%s4898_s4 + $0x60] sm:$0xff] }
 0x60e   : > { %2904 = vmatmul.msk.f32.gmra.mxu2 %vm475_vm0, %v3210_v4 }
 0x616   : > { %2905 = vmatmul.msk.f32.gmra.mxu2 %vm475_vm0, %v3211_v14 }
 0x61e   : > { %2906 = vmatmul.msk.f32.gmra.mxu2 %vm475_vm0, %v3212_v8 }
 0x626   : > { %2907 = vmatmul.msk.f32.gmra.mxu2 %vm475_vm0, %v3213_v41  ;;  %v2914_v41 = vld [vmem:[%s4897_s3 + $0x58] sm:$0xff] }
 0x62e   : > { %2908 = vmatmul.msk.f32.gmra.mxu2 %vm475_vm0, %v3214_v6  ;;  %v2922_v6 = vld [vmem:[%s4898_s4 + $0x58] sm:$0xff] }
 0x636   : > { %2909 = vmatmul.msk.f32.gmra.mxu2 %vm475_vm0, %v3215_v16 }
 0x63e   : > { %2910 = vmatmul.msk.f32.gmra.mxu2 %vm475_vm0, %v3216_v20 }
 0x649   : > { %v1645_v24 = vpop.f32.mrf.mxu2 }
 0x64a   : > { %v4243_v38 = vmul.f32 %v2911_v45, %v1645_v24  ;;  %v1735_v15 = vmul.f32 %v2919_v51, %v1645_v24 }
 0x651   : > { %v4225_v33 = vpop.f32.mrf.mxu2 }
 0x652   : > { %v4256_v47 = vmul.f32 %v2912_v56, %v4225_v33 }
 0x659   : > { %v1651_v3 = vpop.f32.mrf.mxu2 }
 0x65a   : > { %v4268_v36 = vmul.f32 %v2913_v25, %v1651_v3 }
 0x661   : > { %v4227_v2 = vpop.f32.mrf.mxu2 }
 0x669   : > { %v4229_v1 = vpop.f32.mrf.mxu2 }
 0x66a   : > { %v1739_v16 = vmul.f32 %v2923_v30, %v4229_v1 }
 0x671   : > { %v4231_v5 = vpop.f32.mrf.mxu2 }
 0x672   : > { %v1740_v4 = vmul.f32 %v2924_v59, %v4231_v5 }
 0x679   : > { %v4233_v29 = vpop.f32.mrf.mxu2 }
 0x67a   : > { %v1741_v21 = vmul.f32 %v2925_v48, %v4233_v29 }
 0x681   : > { %v4235_v34 = vpop.f32.mrf.mxu2 }
 0x682   : > { %v1742_v61 = vmul.f32 %v2926_v63, %v4235_v34  ;;  %v1718_v11 = vmul.f32 %v2918_v17, %v4235_v34 }
 0x689   : > { %v1669_v44 = vpop.f32.mrf.mxu2 }
 0x68a   : > { %v4245_v57 = vmul.f32 %v2919_v51, %v1669_v44  ;;  %v1743_v12 = vmul.f32 %v2911_v45, %v1669_v44  ;;  %v1738_v45 = vmul.f32 %v2922_v6, %v4227_v2 }
 0x68c   : > { %v1751_v46 = vadd.f32 %v1743_v12, %v1735_v15  ;;  %v1737_v15 = vmul.f32 %v2921_v28, %v1651_v3  ;;  %v1716_v3 = vmul.f32 %v2916_v49, %v4231_v5  ;;  %v3218_v5 = vld [vmem:[%s4896_s2 + $0x8] sm:$0xff] }
 0x691   : > { %v1672_v19 = vpop.f32.mrf.mxu2 }
 0x692   : > { %v4258_v62 = vmul.f32 %v2920_v32, %v1672_v19  ;;  %v1744_v12 = vmul.f32 %v2912_v56, %v1672_v19 }
 0x694   : > { %v1728_v13 = vsub.f32 %v4256_v47, %v4258_v62  ;;  %v3224_v47 = vld [vmem:[%s4896_s2 + $0x38] sm:$0xff] }
 0x699   : > { %v1675_v39 = vpop.f32.mrf.mxu2 }
 0x69a   : > { %v4270_v23 = vmul.f32 %v2921_v28, %v1675_v39  ;;  %v1745_v51 = vmul.f32 %v2913_v25, %v1675_v39 }
 0x69c   : > { %v1729_v40 = vsub.f32 %v4268_v36, %v4270_v23 }
 0x6a1   : > { %v1678_v27 = vpop.f32.mrf.mxu2 }
 0x6a2   : > { %v1746_v20 = vmul.f32 %v2914_v41, %v1678_v27 }
 0x6a9   : > { %v1681_v43 = vpop.f32.mrf.mxu2 }
 0x6aa   : > { %v1747_v14 = vmul.f32 %v2915_v9, %v1681_v43  ;;  %v1723_v56 = vmul.f32 %v2923_v30, %v1681_v43 }
 0x6ac   : > { %v1755_v44 = vadd.f32 %v1747_v14, %v1739_v16 }
 0x6b1   : > { %v1684_v50 = vpop.f32.mrf.mxu2 }
 0x6b2   : > { %v1748_v60 = vmul.f32 %v2916_v49, %v1684_v50  ;;  %v1724_v25 = vmul.f32 %v2924_v59, %v1684_v50 }
 0x6b4   : > { %v1756_v24 = vadd.f32 %v1748_v60, %v1740_v4  ;;  %v1717_v60 = vmul.f32 %v2917_v55, %v4233_v29  ;;  %v1732_v28 = vsub.f32 %v1716_v3, %v1724_v25  ;;  %v3219_v29 = vld [vmem:[%s4896_s2 + $0x10] sm:$0xff] }
 0x6b9   : > { %v1687_v42 = vpop.f32.mrf.mxu2 }
 0x6ba   : > { %v1749_v58 = vmul.f32 %v2917_v55, %v1687_v42 }
 0x6bc   : > { %v1757_v8 = vadd.f32 %v1749_v58, %v1741_v21  ;;  %v1736_v58 = vmul.f32 %v2920_v32, %v4225_v33  ;;  %v1715_v33 = vmul.f32 %v2915_v9, %v4229_v1  ;;  %v1722_v32 = vmul.f32 %v2922_v6, %v1678_v27 }
 0x6bd   : > { %v4923_v1 = vsub.f32 %v4243_v38, %v4245_v57  ;;  %v3220_v38 = vld [vmem:[%s4896_s2 + $0x18] sm:$0xff]  ;;  %v3221_v57 = vld [vmem:[%s4896_s2 + $0x20] sm:$0xff] }
 0x6be   : > { %v1731_v34 = vsub.f32 %v1715_v33, %v1723_v56 }
 0x6c1   : > { %v1690_v53 = vpop.f32.mrf.mxu2 }
 0x6c2   : > { %v1750_v31 = vmul.f32 %v2918_v17, %v1690_v53  ;;  %v1726_v21 = vmul.f32 %v2926_v63, %v1690_v53  ;;  %v1714_v63 = vmul.f32 %v2914_v41, %v4227_v2  ;;  %v3217_v2 = vld [vmem:[%s4896_s2] sm:$0xff] }
 0x6c4   : > { %v1758_v7 = vadd.f32 %v1750_v31, %v1742_v61  ;;  %v1754_v61 = vadd.f32 %v1746_v20, %v1738_v45  ;;  %v1753_v31 = vadd.f32 %v1745_v51, %v1737_v15  ;;  %v1734_v39 = vsub.f32 %v1718_v11, %v1726_v21  ;;  %v3223_v11 = vld [vmem:[%s4896_s2 + $0x30] sm:$0xff] }
 0x6c6   : > { %1759 = vmatpush.msrb.mxu1 %v1758_v7  ;;  %v1752_v7 = vadd.f32 %v1744_v12, %v1736_v58 }
 0x6c8   : > { %1760 = vmatpush.msrb.mxu1 %v1757_v8  ;;  %v1725_v8 = vmul.f32 %v2925_v48, %v1687_v42  ;;  %v1730_v42 = vsub.f32 %v1714_v63, %v1722_v32 }
 0x6ca   : > { %1761 = vmatpush.msrb.mxu1 %v1756_v24  ;;  %v1733_v19 = vsub.f32 %v1717_v60, %v1725_v8 }
 0x6cc   : > { %1762 = vmatpush.msrb.mxu1 %v1755_v44 }
 0x6ce   : > { %1763 = vmatpush.msrb.mxu1 %v1754_v61 }
 0x6d0   : > { %1764 = vmatpush.msrb.mxu1 %v1753_v31 }
 0x6d2   : > { %1765 = vmatpush.msrb.mxu1 %v1752_v7 }
 0x6d4   : > { %1766 = vmatpush.msrb.mxu1 %v1751_v46  ;;  %v3222_v46 = vld [vmem:[%s4896_s2 + $0x28] sm:$0xff] }
 0x6d6   : > { %1767 = vmatpush.msrb.mxu1 %v1734_v39 }
 0x6d8   : > { %1768 = vmatpush.msrb.mxu1 %v1733_v19 }
 0x6da   : > { %1769 = vmatpush.msrb.mxu1 %v1732_v28 }
 0x6dc   : > { %1770 = vmatpush.msrb.mxu1 %v1731_v34 }
 0x6de   : > { %1771 = vmatpush.msrb.mxu1 %v1730_v42 }
 0x6e0   : > { %1772 = vmatpush.msrb.mxu1 %v1729_v40 }
 0x6e2   : > { %1773 = vmatpush.msrb.mxu1 %v1728_v13 }
 0x6e4   : > { %1774 = vmatpush.msrb.mxu1 %v4923_v1 }
 0x6e5   : > { %1775 = vmatmul.f32.vlgmr.msrb.gmra.mxu1 %v3217_v2 }
 0x6ed   : > { %1778 = vmatmul.f32.gmra.mxu1 %v3218_v5 }
 0x6f5   : > { %1781 = vmatmul.f32.gmra.mxu1 %v3219_v29 }
 0x6fd   : > { %1784 = vmatmul.f32.gmra.mxu1 %v3220_v38 }
 0x705   : > { %1787 = vmatmul.f32.gmra.mxu1 %v3221_v57 }
 0x70d   : > { %1790 = vmatmul.f32.gmra.mxu1 %v3222_v46 }
 0x715   : > { %1793 = vmatmul.f32.gmra.mxu1 %v3223_v11 }
 0x71d   : > { %1796 = vmatmul.f32.gmra.mxu1 %v3224_v47 }
 0x762   : > { %v1776_v62 = vpop.f32.mrf.mxu1 }
 0x763   : > { %v1777_v13 = vadd.f32 %v1776_v62, %v4158_v35 }
 0x765   : > { %v1804_v36 = vsel %vm696_vm1, %v1777_v13, 0.0 }
 0x766   : > { %1805 = vadd.xlane.f32.xlu2 %v1804_v36 }
 0x76a   : > { %v1779_v23 = vpop.f32.mrf.mxu1 }
 0x76b   : > { %v1780_v40 = vadd.f32 %v1779_v23, %v4155_v54 }
 0x76d   : > { %v1807_v27 = vsel %vm696_vm1, %v1780_v40, 0.0 }
 0x76e   : > { %1808 = vadd.xlane.f32.xlu0 %v1807_v27 }
 0x772   : > { %v1782_v43 = vpop.f32.mrf.mxu1 }
 0x773   : > { %v1783_v50 = vadd.f32 %v1782_v43, %v4151_v37  ;;  %v3021_v43 = vld [vmem:[%s4901_s7 + $0x18] sm:$0xff] }
 0x774   : > { %2046 = vmatpush.bf16.msra.mxu3 %v3021_v43 }
 0x775   : > { %v1810_v55 = vsel %vm696_vm1, %v1783_v50, 0.0 }
 0x776   : > { %1811 = vadd.xlane.f32.xlu1 %v1810_v55 }
 0x77a   : > { %v1785_v48 = vpop.f32.mrf.mxu1 }
 0x77b   : > { %v1786_v17 = vadd.f32 %v1785_v48, %v4147_v26 }
 0x77d   : > { %v1813_v35 = vsel %vm696_vm1, %v1786_v17, 0.0 }
 0x77e   : > { %1814 = vadd.xlane.f32.xlu2 %v1813_v35  ;;  %v3020_v35 = vld [vmem:[%s4901_s7 + $0x10] sm:$0xff] }
 0x77f   : > { %2047 = vmatpush.bf16.msra.mxu3 %v3020_v35 }
 0x782   : > { %v1788_v53 = vpop.f32.mrf.mxu1 }
 0x783   : > { %v1789_v49 = vadd.f32 %v1788_v53, %v4143_v52 }
 0x785   : > { %v1816_v54 = vsel %vm696_vm1, %v1789_v49, 0.0 }
 0x786   : > { %1817 = vadd.xlane.f32.xlu0 %v1816_v54 }
 0x78a   : > { %v1791_v59 = vpop.f32.mrf.mxu1 }
 0x78b   : > { %v1792_v9 = vadd.f32 %v1791_v59, %v4136_v10 }
 0x78d   : > { %v1819_v37 = vsel %vm696_vm1, %v1792_v9, 0.0 }
 0x78e   : > { %1820 = vadd.xlane.f32.xlu1 %v1819_v37 }
 0x792   : > { %v1794_v30 = vpop.f32.mrf.mxu1 }
 0x793   : > { %v1795_v4 = vadd.f32 %v1794_v30, %v4130_v0 }
 0x795   : > { %v1822_v26 = vsel %vm696_vm1, %v1795_v4, 0.0 }
 0x796   : > { %1823 = vadd.xlane.f32.xlu1 %v1822_v26 }
 0x79a   : > { %v1797_v10 = vpop.f32.mrf.mxu1 }
 0x79b   : > { %v1798_v0 = vadd.f32 %v1797_v10, %v4122_v18 }
 0x79d   : > { %v1825_v15 = vsel %vm696_vm1, %v1798_v0, 0.0 }
 0x7d9   : > { %v1806_v14 = vpop.xlane.xlu2 %1805 }
 0x7da   : > { %v1828_v41 = vmul.f32 %v1806_v14, %v3639_v22 }
 0x7dc   : > { %v4363_v6 = vsub.f32 %v1777_v13, %v1828_v41 }
 0x7de   : > { %v1844_v52 = vmul.f32 %v4363_v6, %v4363_v6 }
 0x7e0   : > { %v1852_v16 = vsel %vm696_vm1, %v1844_v52, 0.0 }
 0x7e1   : > { %v1809_v20 = vpop.xlane.xlu0 %1808  ;;  %1853 = vadd.xlane.f32.xlu2 %v1852_v16 }
 0x7e2   : > { %v1829_v24 = vmul.f32 %v1809_v20, %v3639_v22 }
 0x7e4   : > { %v4370_v45 = vsub.f32 %v1780_v40, %v1829_v24  ;;  %v4425_v24 = vld [vmem:[%s4899_s5 + $0x1] ss:$0 sm:$0xff] }
 0x7e6   : > { %v1845_v51 = vmul.f32 %v4370_v45, %v4370_v45 }
 0x7e8   : > { %v1855_v44 = vsel %vm696_vm1, %v1845_v51, 0.0 }
 0x7e9   : > { %v1812_v12 = vpop.xlane.xlu1 %1811  ;;  %1856 = vadd.xlane.f32.xlu0 %v1855_v44  ;;  %1826 = vadd.xlane.f32.xlu2 %v1825_v15 }
 0x7ea   : > { %v1830_v61 = vmul.f32 %v1812_v12, %v3639_v22 }
 0x7ec   : > { %v4377_v58 = vsub.f32 %v1783_v50, %v1830_v61 }
 0x7ee   : > { %v1846_v31 = vmul.f32 %v4377_v58, %v4377_v58 }
 0x7f0   : > { %v1858_v18 = vsel %vm696_vm1, %v1846_v31, 0.0  ;;  %v4431_v31 = vld [vmem:[%s4900_s6 + $0x1] ss:$0 sm:$0xff] }
 0x7f1   : > { %1859 = vadd.xlane.f32.xlu0 %v1858_v18  ;;  %v1815_v21 = vpop.xlane.xlu2 %1814 }
 0x7f2   : > { %v1831_v7 = vmul.f32 %v1815_v21, %v3639_v22 }
 0x7f4   : > { %v4383_v8 = vsub.f32 %v1786_v17, %v1831_v7 }
 0x7f6   : > { %v1847_v60 = vmul.f32 %v4383_v8, %v4383_v8 }
 0x7f8   : > { %v1861_v25 = vsel %vm696_vm1, %v1847_v60, 0.0 }
 0x7f9   : > { %v1818_v39 = vpop.xlane.xlu0 %1817  ;;  %1862 = vadd.xlane.f32.xlu1 %v1861_v25 }
 0x7fa   : > { %v1832_v3 = vmul.f32 %v1818_v39, %v3639_v22 }
 0x7fc   : > { %v4389_v56 = vsub.f32 %v1789_v49, %v1832_v3 }
 0x7fe   : > { %v1848_v19 = vmul.f32 %v4389_v56, %v4389_v56 }
 0x800   : > { %v1864_v33 = vsel %vm696_vm1, %v1848_v19, 0.0 }
 0x801   : > { %v1821_v32 = vpop.xlane.xlu1 %1820  ;;  %1865 = vadd.xlane.f32.xlu2 %v1864_v33 }
 0x802   : > { %v1833_v28 = vmul.f32 %v1821_v32, %v3639_v22 }
 0x804   : > { %v4395_v63 = vsub.f32 %v1792_v9, %v1833_v28 }
 0x806   : > { %v1849_v34 = vmul.f32 %v4395_v63, %v4395_v63 }
 0x808   : > { %v1867_v42 = vsel %vm696_vm1, %v1849_v34, 0.0 }
 0x809   : > { %v1824_v1 = vpop.xlane.xlu1 %1823  ;;  %1868 = vadd.xlane.f32.xlu0 %v1867_v42 }
 0x80a   : > { %v1834_v2 = vmul.f32 %v1824_v1, %v3639_v22 }
 0x80c   : > { %v4401_v5 = vsub.f32 %v1795_v4, %v1834_v2 }
 0x80e   : > { %v1850_v29 = vmul.f32 %v4401_v5, %v4401_v5 }
 0x810   : > { %v1870_v38 = vsel %vm696_vm1, %v1850_v29, 0.0 }
 0x811   : > { %1871 = vadd.xlane.f32.xlu1 %v1870_v38 }
 0x854   : > { %v1854_v57 = vpop.xlane.xlu2 %1853 }
 0x855   : > { %v1876_v46 = vmul.f32 %v1854_v57, %v3639_v22 }
 0x857   : > { %v1884_v11 = vadd.f32 1e-12, %v1876_v46 }
 0x859   : > { %3153 = vrsqrt.f32 %v1884_v11  ;;  %vm1898_vm13 = vweird.f32 %v1884_v11 }
 0x85c   : > { %v1857_v47 = vpop.xlane.xlu0 %1856  ;;  %v1827_v62 = vpop.xlane.xlu2 %1826 }
 0x85d   : > { %v1877_v13 = vmul.f32 %v1857_v47, %v3639_v22  ;;  %v1835_v36 = vmul.f32 %v1827_v62, %v3639_v22 }
 0x85f   : > { %v3154_v23 = vpop.eup %3153  ;;  %v1885_v40 = vadd.f32 1e-12, %v1877_v13  ;;  %v4409_v27 = vsub.f32 %v1798_v0, %v1835_v36 }
 0x860   : > { %v1893_v50 = vmul.f32 %v3154_v23, %v1884_v11  ;;  %vm1899_vm0 = vweird.f32 %v3154_v23 }
 0x861   : > { %3155 = vrsqrt.f32 %v1885_v40  ;;  %v1851_v55 = vmul.f32 %v4409_v27, %v4409_v27  ;;  %vm1900_vm14 = vmor %vm1898_vm13, %vm1899_vm0  ;;  %vm1908_vm2 = vweird.f32 %v1885_v40 }
 0x862   : > { %v1894_v48 = vmul.f32 %v3154_v23, %v1893_v50 }
 0x863   : > { %v1873_v17 = vsel %vm696_vm1, %v1851_v55, 0.0 }
 0x864   : > { %v1895_v53 = vmul.f32 0.5, %v1894_v48  ;;  %v1860_v49 = vpop.xlane.xlu0 %1859  ;;  %1874 = vadd.xlane.f32.xlu2 %v1873_v17 }
 0x865   : > { %v1878_v54 = vmul.f32 %v1860_v49, %v3639_v22 }
 0x866   : > { %v1896_v59 = vsub.f32 1.5, %v1895_v53 }
 0x867   : > { %v3156_v9 = vpop.eup %3155  ;;  %v1886_v37 = vadd.f32 1e-12, %v1878_v54 }
 0x868   : > { %v1897_v30 = vmul.f32 %v3154_v23, %v1896_v59  ;;  %v1903_v4 = vmul.f32 %v3156_v9, %v1885_v40  ;;  %vm1909_vm15 = vweird.f32 %v3156_v9 }
 0x869   : > { %3157 = vrsqrt.f32 %v1886_v37  ;;  %vm1910_vm3 = vmor %vm1908_vm2, %vm1909_vm15  ;;  %vm1918_vm5 = vweird.f32 %v1886_v37 }
 0x86a   : > { %v1904_v26 = vmul.f32 %v3156_v9, %v1903_v4  ;;  %v1901_v14 = vsel %vm1900_vm14, %v3154_v23, %v1897_v30 }
 0x86b   : > { %v1972_v0 = vmul.f32 %v1901_v14, %v4363_v6 }
 0x86c   : > { %v1905_v41 = vmul.f32 0.5, %v1904_v26  ;;  %v1863_v52 = vpop.xlane.xlu1 %1862 }
 0x86d   : > { %v1879_v16 = vmul.f32 %v1863_v52, %v3639_v22  ;;  %v1983_v18 = vmul.f32 %v4425_v24, %v1972_v0 }
 0x86e   : > { %v1906_v10 = vsub.f32 1.5, %v1905_v41 }
 0x86f   : > { %v3158_v20 = vpop.eup %3157  ;;  %v1887_v51 = vadd.f32 1e-12, %v1879_v16  ;;  %v4438_v19 = vadd.f32 %v4431_v31, %v1983_v18 }
 0x870   : > { %v1907_v44 = vmul.f32 %v3156_v9, %v1906_v10  ;;  %v1913_v15 = vmul.f32 %v3158_v20, %v1886_v37  ;;  %vm1919_vm4 = vweird.f32 %v3158_v20 }
 0x871   : > { %3159 = vrsqrt.f32 %v1887_v51  ;;  %vm1920_vm6 = vmor %vm1918_vm5, %vm1919_vm4  ;;  %vm1928_vm8 = vweird.f32 %v1887_v51 }
 0x872   : > { %v1911_v12 = vsel %vm1910_vm3, %v3156_v9, %v1907_v44  ;;  %v1914_v61 = vmul.f32 %v3158_v20, %v1913_v15 }
 0x873   : > { %v1973_v21 = vmul.f32 %v1911_v12, %v4370_v45 }
 0x874   : > { %v1915_v7 = vmul.f32 0.5, %v1914_v61  ;;  %v1866_v60 = vpop.xlane.xlu2 %1865 }
 0x875   : > { %v1984_v6 = vmul.f32 %v4425_v24, %v1973_v21  ;;  %v1880_v25 = vmul.f32 %v1866_v60, %v3639_v22 }
 0x876   : > { %v1916_v39 = vsub.f32 1.5, %v1915_v7 }
 0x877   : > { %v3160_v3 = vpop.eup %3159  ;;  %v4441_v33 = vadd.f32 %v4431_v31, %v1984_v6  ;;  %v1888_v32 = vadd.f32 1e-12, %v1880_v25 }
 0x878   : > { %v1917_v28 = vmul.f32 %v3158_v20, %v1916_v39  ;;  %v1923_v34 = vmul.f32 %v3160_v3, %v1887_v51  ;;  %vm1929_vm7 = vweird.f32 %v3160_v3 }
 0x879   : > { %3161 = vrsqrt.f32 %v1888_v32  ;;  %v2002_v45 = vpack.c.bf16 %v4441_v33, %v4438_v19  ;;  %vm1930_vm9 = vmor %vm1928_vm8, %vm1929_vm7  ;;  %vm1938_vm11 = vweird.f32 %v1888_v32 }
 0x87a   : > { %v1924_v42 = vmul.f32 %v3160_v3, %v1923_v34  ;;  %v1921_v1 = vsel %vm1920_vm6, %v3158_v20, %v1917_v28 }
 0x87b   : > { %2942 = vmatmul.msk.bf16.vlgmr.msra.gmra.mxu3 %vm696_vm1, %v2002_v45  ;;  %v1974_v11 = vmul.f32 %v1921_v1, %v4377_v58 }
 0x87c   : > { %v1925_v2 = vmul.f32 0.5, %v1924_v42  ;;  %v1869_v29 = vpop.xlane.xlu0 %1868 }
 0x87d   : > { %v1881_v38 = vmul.f32 %v1869_v29, %v3639_v22  ;;  %v1985_v43 = vmul.f32 %v4425_v24, %v1974_v11 }
 0x87e   : > { %v1926_v57 = vsub.f32 1.5, %v1925_v2 }
 0x87f   : > { %v3162_v46 = vpop.eup %3161  ;;  %v1889_v47 = vadd.f32 1e-12, %v1881_v38  ;;  %v4452_v35 = vadd.f32 %v4431_v31, %v1985_v43 }
 0x880   : > { %v1927_v62 = vmul.f32 %v3160_v3, %v1926_v57  ;;  %v1933_v13 = vmul.f32 %v3162_v46, %v1888_v32  ;;  %vm1939_vm10 = vweird.f32 %v3162_v46 }
 0x881   : > { %3163 = vrsqrt.f32 %v1889_v47  ;;  %vm1940_vm12 = vmor %vm1938_vm11, %vm1939_vm10  ;;  %vm1948_vm13 = vweird.f32 %v1889_v47 }
 0x882   : > { %v1931_v36 = vsel %vm1930_vm9, %v3160_v3, %v1927_v62  ;;  %v1934_v23 = vmul.f32 %v3162_v46, %v1933_v13 }
 0x883   : > { %v1975_v40 = vmul.f32 %v1931_v36, %v4383_v8 }
 0x884   : > { %v1935_v50 = vmul.f32 0.5, %v1934_v23 }
 0x885   : > { %v1986_v55 = vmul.f32 %v4425_v24, %v1975_v40 }
 0x886   : > { %v1936_v48 = vsub.f32 1.5, %v1935_v50 }
 0x887   : > { %v3164_v17 = vpop.eup %3163  ;;  %v4455_v58 = vadd.f32 %v4431_v31, %v1986_v55  ;;  %v3029_v55 = vld [vmem:[%s4903_s9 + $0x78] sm:$0xff] }
 0x888   : > { %v1937_v53 = vmul.f32 %v3162_v46, %v1936_v48  ;;  %v1943_v49 = vmul.f32 %v3164_v17, %v1889_v47  ;;  %vm1949_vm0 = vweird.f32 %v3164_v17  ;;  %2495 = vmatpush.bf16.msrb.mxu0 %v3029_v55  ;;  %3033 = vmatpush.bf16.msra.mxu1 %v3029_v55 }
 0x889   : > { %v2003_v54 = vpack.c.bf16 %v4455_v58, %v4452_v35  ;;  %vm1950_vm14 = vmor %vm1948_vm13, %vm1949_vm0  ;;  %3034 = vmatpush.bf16.msra.mxu2 %v3029_v55 }
 0x88a   : > { %v1944_v8 = vmul.f32 %v3164_v17, %v1943_v49  ;;  %v1941_v59 = vsel %vm1940_vm12, %v3162_v46, %v1937_v53 }
 0x88b   : > { %2943 = vmatmul.msk.bf16.gmra.mxu3 %vm696_vm1, %v2003_v54  ;;  %v1976_v30 = vmul.f32 %v1941_v59, %v4389_v56  ;;  %v1872_v56 = vpop.xlane.xlu1 %1871 }
 0x88c   : > { %v1945_v9 = vmul.f32 0.5, %v1944_v8  ;;  %v1882_v0 = vmul.f32 %v1872_v56, %v3639_v22 }
 0x88d   : > { %v1987_v41 = vmul.f32 %v4425_v24, %v1976_v30 }
 0x88e   : > { %v1946_v37 = vsub.f32 1.5, %v1945_v9  ;;  %v1890_v51 = vadd.f32 1e-12, %v1882_v0  ;;  %v3028_v9 = vld [vmem:[%s4903_s9 + $0x70] sm:$0xff] }
 0x88f   : > { %v4465_v16 = vadd.f32 %v4431_v31, %v1987_v41  ;;  %2496 = vmatpush.bf16.msrb.mxu0 %v3028_v9  ;;  %3035 = vmatpush.bf16.msra.mxu1 %v3028_v9 }
 0x890   : > { %v1947_v4 = vmul.f32 %v3164_v17, %v1946_v37  ;;  %3165 = vrsqrt.f32 %v1890_v51  ;;  %vm1958_vm2 = vweird.f32 %v1890_v51  ;;  %3036 = vmatpush.bf16.msra.mxu2 %v3028_v9 }
 0x892   : > { %v1951_v26 = vsel %vm1950_vm14, %v3164_v17, %v1947_v4 }
 0x893   : > { %v1977_v14 = vmul.f32 %v1951_v26, %v4395_v63 }
 0x895   : > { %v1988_v52 = vmul.f32 %v4425_v24, %v1977_v14 }
 0x896   : > { %v3166_v63 = vpop.eup %3165 }
 0x897   : > { %v4468_v10 = vadd.f32 %v4431_v31, %v1988_v52  ;;  %v1953_v44 = vmul.f32 %v3166_v63, %v1890_v51  ;;  %vm1959_vm15 = vweird.f32 %v3166_v63  ;;  %v3027_v51 = vld [vmem:[%s4903_s9 + $0x68] sm:$0xff] }
 0x898   : > { %vm1960_vm3 = vmor %vm1958_vm2, %vm1959_vm15  ;;  %2497 = vmatpush.bf16.msrb.mxu0 %v3027_v51  ;;  %3037 = vmatpush.bf16.msra.mxu1 %v3027_v51 }
 0x899   : > { %v2004_v20 = vpack.c.bf16 %v4468_v10, %v4465_v16  ;;  %v1954_v15 = vmul.f32 %v3166_v63, %v1953_v44  ;;  %3038 = vmatpush.bf16.msra.mxu2 %v3027_v51 }
 0x89b   : > { %2944 = vmatmul.msk.bf16.gmra.mxu3 %vm696_vm1, %v2004_v20  ;;  %v1955_v21 = vmul.f32 0.5, %v1954_v15 }
 0x89d   : > { %v1956_v7 = vsub.f32 1.5, %v1955_v21 }
 0x89f   : > { %v1957_v6 = vmul.f32 %v3166_v63, %v1956_v7 }
 0x8a1   : > { %v1961_v3 = vsel %vm1960_vm3, %v3166_v63, %v1957_v6  ;;  %v3026_v6 = vld [vmem:[%s4903_s9 + $0x60] sm:$0xff] }
 0x8a2   : > { %v1978_v34 = vmul.f32 %v1961_v3, %v4401_v5  ;;  %v4491_v5 = vld [vmem:[%s4902_s8 + $0x1] ss:$0 sm:$0xff]  ;;  %2498 = vmatpush.bf16.msrb.mxu0 %v3026_v6  ;;  %3039 = vmatpush.bf16.msra.mxu1 %v3026_v6 }
 0x8a3   : > { %3040 = vmatpush.bf16.msra.mxu2 %v3026_v6 }
 0x8a4   : > { %v1989_v2 = vmul.f32 %v4425_v24, %v1978_v34 }
 0x8a6   : > { %v4480_v38 = vadd.f32 %v4431_v31, %v1989_v2 }
 0x8d7   : > { %v1875_v12 = vpop.xlane.xlu2 %1874 }
 0x8d8   : > { %v1883_v61 = vmul.f32 %v1875_v12, %v3639_v22 }
 0x8da   : > { %v1891_v18 = vadd.f32 1e-12, %v1883_v61 }
 0x8dc   : > { %3167 = vrsqrt.f32 %v1891_v18  ;;  %vm1968_vm5 = vweird.f32 %v1891_v18 }
 0x8e2   : > { %v3168_v60 = vpop.eup %3167 }
 0x8e3   : > { %v1963_v25 = vmul.f32 %v3168_v60, %v1891_v18  ;;  %vm1969_vm4 = vweird.f32 %v3168_v60 }
 0x8e4   : > { %vm1970_vm6 = vmor %vm1968_vm5, %vm1969_vm4 }
 0x8e5   : > { %v1964_v39 = vmul.f32 %v3168_v60, %v1963_v25 }
 0x8e7   : > { %v1965_v32 = vmul.f32 0.5, %v1964_v39 }
 0x8e9   : > { %v1966_v28 = vsub.f32 1.5, %v1965_v32 }
 0x8eb   : > { %v1967_v45 = vmul.f32 %v3168_v60, %v1966_v28 }
 0x8ed   : > { %v1971_v42 = vsel %vm1970_vm6, %v3168_v60, %v1967_v45 }
 0x8ee   : > { %v1979_v1 = vmul.f32 %v1971_v42, %v4409_v27 }
 0x8f0   : > { %v1990_v29 = vmul.f32 %v4425_v24, %v1979_v1 }
 0x8f2   : > { %v4483_v57 = vadd.f32 %v4431_v31, %v1990_v29  ;;  %v3025_v29 = vld [vmem:[%s4903_s9 + $0x58] sm:$0xff] }
 0x8f3   : > { %2499 = vmatpush.bf16.msrb.mxu0 %v3025_v29  ;;  %3041 = vmatpush.bf16.msra.mxu1 %v3025_v29 }
 0x8f4   : > { %v2005_v46 = vpack.c.bf16 %v4483_v57, %v4480_v38  ;;  %3042 = vmatpush.bf16.msra.mxu2 %v3025_v29 }
 0x8f6   : > { %2945 = vmatmul.msk.bf16.gmra.mxu3 %vm696_vm1, %v2005_v46 }
 0x8fe   : > { %v2049_v27 = vpop.f32.mrf.mxu3 }
 0x8ff   : > { %v4494_v11 = vadd.f32 %v4491_v5, %v2049_v27 }
 0x901   : > { %v4497_v24 = vmul.f32 0.70710677, %v4494_v11 }
 0x903   : > { %v2085_v31 = vmul.f32 %v4497_v24, %v4497_v24 }
 0x905   : > { %v4501_v47 = vmin.f32 %v2085_v31, 16.0 }
 0x906   : > { %v2051_v62 = vpop.f32.mrf.mxu3 }
 0x907   : > { %v2087_v13 = vmul.f32 2.1237322e-06, %v4501_v47  ;;  %v2098_v36 = vmul.f32 3.8918573e-05, %v4501_v47  ;;  %v4506_v23 = vadd.f32 %v4491_v5, %v2051_v62 }
 0x909   : > { %v2088_v40 = vadd.f32 0.00028619796, %v2087_v13  ;;  %v2099_v43 = vadd.f32 0.001143296, %v2098_v36  ;;  %v4509_v50 = vmul.f32 0.70710677, %v4506_v23 }
 0x90b   : > { %v2089_v48 = vmul.f32 %v2088_v40, %v4501_v47  ;;  %v2100_v17 = vmul.f32 %v2099_v43, %v4501_v47  ;;  %v2125_v53 = vmul.f32 %v4509_v50, %v4509_v50  ;;  %v3024_v43 = vld [vmem:[%s4903_s9 + $0x50] sm:$0xff] }
 0x90c   : > { %2500 = vmatpush.bf16.msrb.mxu0 %v3024_v43  ;;  %3043 = vmatpush.bf16.msra.mxu1 %v3024_v43 }
 0x90d   : > { %v2090_v49 = vadd.f32 0.0036580483, %v2089_v48  ;;  %v2101_v54 = vadd.f32 0.014752088, %v2100_v17  ;;  %v4518_v8 = vmin.f32 %v2125_v53, 16.0  ;;  %3044 = vmatpush.bf16.msra.mxu2 %v3024_v43 }
 0x90e   : > { %v2054_v59 = vpop.f32.mrf.mxu3 }
 0x90f   : > { %v2102_v37 = vmul.f32 %v2101_v54, %v4501_v47  ;;  %v4525_v30 = vadd.f32 %v4491_v5, %v2054_v59  ;;  %v2127_v4 = vmul.f32 2.1237322e-06, %v4518_v8  ;;  %v2138_v26 = vmul.f32 3.8918573e-05, %v4518_v8 }
 0x910   : > { %v2091_v14 = vmul.f32 %v2090_v49, %v4501_v47 }
 0x911   : > { %v2103_v41 = vadd.f32 0.112945676, %v2102_v37  ;;  %v2128_v52 = vadd.f32 0.00028619796, %v2127_v4  ;;  %v2139_v20 = vadd.f32 0.001143296, %v2138_v26 }
 0x912   : > { %v4531_v56 = vmul.f32 0.70710677, %v4525_v30  ;;  %v2092_v12 = vadd.f32 0.05243302, %v2091_v14  ;;  %v3023_v14 = vld [vmem:[%s4903_s9 + $0x48] sm:$0xff] }
 0x913   : > { %v2104_v0 = vmul.f32 %v2103_v41, %v4501_v47  ;;  %v2129_v63 = vmul.f32 %v2128_v52, %v4518_v8  ;;  %v2140_v44 = vmul.f32 %v2139_v20, %v4518_v8  ;;  %2501 = vmatpush.bf16.msrb.mxu0 %v3023_v14  ;;  %3045 = vmatpush.bf16.msra.mxu1 %v3023_v14 }
 0x914   : > { %v2165_v15 = vmul.f32 %v4531_v56, %v4531_v56  ;;  %v2093_v28 = vmul.f32 %v2092_v12, %v4501_v47  ;;  %3046 = vmatpush.bf16.msra.mxu2 %v3023_v14 }
 0x915   : > { %v2105_v61 = vadd.f32 0.4994258, %v2104_v0  ;;  %v2130_v18 = vadd.f32 0.0036580483, %v2129_v63  ;;  %v2141_v21 = vadd.f32 0.014752088, %v2140_v44 }
 0x916   : > { %v4541_v7 = vmin.f32 %v2165_v15, 16.0  ;;  %v2056_v60 = vpop.f32.mrf.mxu3  ;;  %v2094_v31 = vadd.f32 0.18741608, %v2093_v28 }
 0x917   : > { %v2106_v25 = vmul.f32 %v2105_v61, %v4501_v47  ;;  %v4548_v39 = vadd.f32 %v4491_v5, %v2056_v60  ;;  %v2131_v3 = vmul.f32 %v2130_v18, %v4518_v8  ;;  %v2142_v32 = vmul.f32 %v2141_v21, %v4518_v8  ;;  %v3022_v61 = vld [vmem:[%s4903_s9 + $0x40] sm:$0xff] }
 0x918   : > { %v2178_v45 = vmul.f32 3.8918573e-05, %v4541_v7  ;;  %v2167_v36 = vmul.f32 2.1237322e-06, %v4541_v7  ;;  %v2095_v59 = vmul.f32 %v2094_v31, %v4501_v47  ;;  %2502 = vmatpush.bf16.msrb.mxu0 %v3022_v61  ;;  %3047 = vmatpush.bf16.msra.mxu1 %v3022_v61 }
 0x919   : > { %v4553_v34 = vadd.f32 1.0, %v2106_v25  ;;  %v2132_v42 = vadd.f32 0.05243302, %v2131_v3  ;;  %v2143_v1 = vadd.f32 0.112945676, %v2142_v32  ;;  %3048 = vmatpush.bf16.msra.mxu2 %v3022_v61 }
 0x91a   : > { %v4558_v2 = vmul.f32 0.70710677, %v4548_v39  ;;  %v2179_v62 = vadd.f32 0.001143296, %v2178_v45  ;;  %v2168_v26 = vadd.f32 0.00028619796, %v2167_v36 }
 0x91b   : > { %3169 = vrcp.f32 %v4553_v34  ;;  %v2133_v46 = vmul.f32 %v2132_v42, %v4518_v8  ;;  %v2144_v27 = vmul.f32 %v2143_v1, %v4518_v8  ;;  %v2096_v51 = vadd.f32 1.1283791, %v2095_v59 }
 0x91c   : > { %v2205_v48 = vmul.f32 %v4558_v2, %v4558_v2  ;;  %v2180_v53 = vmul.f32 %v2179_v62, %v4541_v7  ;;  %v2117_v63 = vand.u32 2147483647, %v4553_v34  ;;  %v2119_v44 = vand.u32 2147483648, %v4553_v34 }
 0x91d   : > { %v2145_v13 = vadd.f32 0.4994258, %v2144_v27  ;;  %v2134_v55 = vadd.f32 0.18741608, %v2133_v46  ;;  %vm2113_vm8 = vweird.f32 %v4553_v34  ;;  %v2169_v60 = vmul.f32 %v2168_v26, %v4541_v7 }
 0x91e   : > { %v2059_v40 = vpop.f32.mrf.mxu3  ;;  %v4587_v52 = vmin.f32 %v2205_v48, 16.0  ;;  %v2181_v20 = vadd.f32 0.014752088, %v2180_v53  ;;  %v2120_v45 = vor.u32 1.1754944e-38, %v2119_v44  ;;  %vm2118_vm10 = vcmp.eq.f32.partialorder %v2117_v63, 8.507059e+37 }
 0x91f   : > { %v4572_v17 = vadd.f32 %v4491_v5, %v2059_v40  ;;  %v2146_v49 = vmul.f32 %v2145_v13, %v4518_v8  ;;  %v2135_v41 = vmul.f32 %v2134_v55, %v4518_v8  ;;  %v2097_v31 = vmul.f32 %v2096_v51, %v4497_v24 }
 0x920   : > { %v2182_v18 = vmul.f32 %v2181_v20, %v4541_v7  ;;  %v2207_v6 = vmul.f32 2.1237322e-06, %v4587_v52  ;;  %v2218_v28 = vmul.f32 3.8918573e-05, %v4587_v52  ;;  %v2170_v36 = vadd.f32 0.0036580483, %v2169_v60 }
 0x921   : > { %v3170_v54 = vpop.eup %3169  ;;  %v4578_v9 = vmul.f32 0.70710677, %v4572_v17  ;;  %v4581_v4 = vadd.f32 1.0, %v2146_v49  ;;  %v2136_v21 = vadd.f32 1.1283791, %v2135_v41 }
 0x922   : > { %v2109_v37 = vmul.f32 %v3170_v54, %v4553_v34  ;;  %vm2114_vm7 = vweird.f32 %v3170_v54  ;;  %v2183_v1 = vadd.f32 0.112945676, %v2182_v18  ;;  %v2208_v43 = vadd.f32 0.00028619796, %v2207_v6 }
 0x923   : > { %v2245_v47 = vmul.f32 %v4578_v9, %v4578_v9  ;;  %3171 = vrcp.f32 %v4581_v4  ;;  %vm2115_vm9 = vmor %vm2113_vm8, %vm2114_vm7  ;;  %v2137_v40 = vmul.f32 %v2136_v21, %v4509_v50  ;;  %v2219_v48 = vadd.f32 0.001143296, %v2218_v28 }
 0x924   : > { %v2110_v0 = vsub.f32 1.0, %v2109_v37  ;;  %v2157_v49 = vand.u32 2147483647, %v4581_v4  ;;  %v2184_v59 = vmul.f32 %v2183_v1, %v4541_v7  ;;  %v2159_v24 = vand.u32 2147483648, %v4581_v4 }
 0x925   : > { %v4594_v12 = vmin.f32 %v2245_v47, 16.0  ;;  %vm2153_vm12 = vweird.f32 %v4581_v4  ;;  %v2209_v20 = vmul.f32 %v2208_v43, %v4587_v52  ;;  %v2220_v51 = vmul.f32 %v2219_v48, %v4587_v52 }
 0x926   : > { %v2111_v15 = vmul.f32 %v3170_v54, %v2110_v0  ;;  %v2061_v8 = vpop.f32.mrf.mxu3  ;;  %v2185_v47 = vadd.f32 0.4994258, %v2184_v59  ;;  %vm2158_vm0 = vcmp.eq.f32.partialorder %v2157_v49, 8.507059e+37  ;;  %v2160_v61 = vor.u32 1.1754944e-38, %v2159_v24 }
 0x927   : > { %v2247_v3 = vmul.f32 2.1237322e-06, %v4594_v12  ;;  %v2258_v32 = vmul.f32 3.8918573e-05, %v4594_v12  ;;  %v4607_v42 = vadd.f32 %v4491_v5, %v2061_v8  ;;  %v2070_v49 = vmul.f32 0.5, %v4506_v23 }
 0x928   : > { %v2112_v25 = vadd.f32 %v3170_v54, %v2111_v15  ;;  %v2186_v15 = vmul.f32 %v2185_v47, %v4541_v7 }
 0x929   : > { %v3172_v34 = vpop.eup %3171  ;;  %v2248_v46 = vadd.f32 0.00028619796, %v2247_v3  ;;  %v2259_v27 = vadd.f32 0.001143296, %v2258_v32  ;;  %v2171_v32 = vmul.f32 %v2170_v36, %v4541_v7  ;;  %v2069_v36 = vmul.f32 0.5, %v4494_v11 }
 0x92a   : > { %v2116_v29 = vsel %vm2115_vm9, %v3170_v54, %v2112_v25  ;;  %v2149_v13 = vmul.f32 %v3172_v34, %v4581_v4  ;;  %v4615_v54 = vmul.f32 0.70710677, %v4607_v42  ;;  %vm2154_vm11 = vweird.f32 %v3172_v34 }
 0x92b   : > { %v2121_v62 = vsel %vm2118_vm10, %v2120_v45, %v2116_v29  ;;  %v2260_v55 = vmul.f32 %v2259_v27, %v4594_v12  ;;  %v2249_v26 = vmul.f32 %v2248_v46, %v4594_v12  ;;  %vm2155_vm13 = vmor %vm2153_vm12, %vm2154_vm11  ;;  %v4631_v25 = vadd.f32 1.0, %v2186_v15 }
 0x92c   : > { %v2150_v53 = vsub.f32 1.0, %v2149_v13  ;;  %v2122_v37 = vmul.f32 %v2121_v62, %v2097_v31  ;;  %v2285_v50 = vmul.f32 %v4615_v54, %v4615_v54  ;;  %v2221_v45 = vadd.f32 0.014752088, %v2220_v51 }
 0x92d   : > { %v2261_v14 = vadd.f32 0.014752088, %v2260_v55  ;;  %v2250_v18 = vadd.f32 0.0036580483, %v2249_v26  ;;  %3173 = vrcp.f32 %v4631_v25  ;;  %v2210_v27 = vadd.f32 0.0036580483, %v2209_v20 }
 0x92e   : > { %v2151_v41 = vmul.f32 %v3172_v34, %v2150_v53  ;;  %v4626_v44 = vmin.f32 %v2285_v50, 16.0  ;;  %v2946_v8 = vclamps-f32 %v2122_v37, 1.0  ;;  %v2172_v48 = vadd.f32 0.05243302, %v2171_v32 }
 0x92f   : > { %v2262_v0 = vmul.f32 %v2261_v14, %v4594_v12  ;;  %v2211_v26 = vmul.f32 %v2210_v27, %v4587_v52  ;;  %vm2193_vm2 = vweird.f32 %v4631_v25 }
 0x930   : > { %v2152_v63 = vadd.f32 %v3172_v34, %v2151_v41  ;;  %v2287_v4 = vmul.f32 2.1237322e-06, %v4626_v44  ;;  %v2298_v6 = vmul.f32 3.8918573e-05, %v4626_v44  ;;  %v2405_v62 = vadd.f32 1.0, %v2946_v8 }
 0x931   : > { %v2263_v21 = vadd.f32 0.112945676, %v2262_v0  ;;  %v2173_v23 = vmul.f32 %v2172_v48, %v4541_v7  ;;  %v2212_v8 = vadd.f32 0.05243302, %v2211_v26 }
 0x932   : > { %v2156_v60 = vsel %vm2155_vm13, %v3172_v34, %v2152_v63  ;;  %v2288_v29 = vadd.f32 0.00028619796, %v2287_v4  ;;  %v2299_v46 = vadd.f32 0.001143296, %v2298_v6  ;;  %v2251_v34 = vmul.f32 %v2250_v18, %v4594_v12 }
 0x933   : > { %v2161_v3 = vsel %vm2158_vm0, %v2160_v61, %v2156_v60  ;;  %v2264_v28 = vmul.f32 %v2263_v21, %v4594_v12  ;;  %v4646_v47 = vpop.eup %3173  ;;  %v2413_v20 = vmul.f32 %v2405_v62, %v2069_v36 }
 0x934   : > { %v2162_v1 = vmul.f32 %v2161_v3, %v2137_v40  ;;  %v2289_v43 = vmul.f32 %v2288_v29, %v4626_v44  ;;  %v2300_v55 = vmul.f32 %v2299_v46, %v4626_v44  ;;  %v2222_v40 = vmul.f32 %v2221_v45, %v4587_v52 }
 0x935   : > { %v2265_v31 = vadd.f32 0.4994258, %v2264_v28  ;;  %v2252_v14 = vadd.f32 0.05243302, %v2251_v34  ;;  %v2189_v18 = vmul.f32 %v4646_v47, %v4631_v25  ;;  %v2174_v45 = vadd.f32 0.18741608, %v2173_v23 }
 0x936   : > { %v2947_v13 = vclamps-f32 %v2162_v1, 1.0  ;;  %v2290_v37 = vadd.f32 0.0036580483, %v2289_v43  ;;  %v2301_v24 = vadd.f32 0.014752088, %v2300_v55  ;;  %v2213_v1 = vmul.f32 %v2212_v8, %v4587_v52 }
 0x937   : > { %v2266_v53 = vmul.f32 %v2265_v31, %v4594_v12  ;;  %v2223_v50 = vadd.f32 0.112945676, %v2222_v40  ;;  %v2253_v61 = vmul.f32 %v2252_v14, %v4594_v12  ;;  %v2190_v6 = vsub.f32 1.0, %v2189_v18 }
 0x938   : > { %v2406_v59 = vadd.f32 1.0, %v2947_v13  ;;  %v2302_v0 = vmul.f32 %v2301_v24, %v4626_v44  ;;  %v2291_v51 = vmul.f32 %v2290_v37, %v4626_v44  ;;  %v2175_v36 = vmul.f32 %v2174_v45, %v4541_v7 }
 0x939   : > { %v4644_v41 = vadd.f32 1.0, %v2266_v53  ;;  %v2224_v21 = vmul.f32 %v2223_v50, %v4587_v52  ;;  %v2254_v29 = vadd.f32 0.18741608, %v2253_v61  ;;  %v2191_v31 = vmul.f32 %v4646_v47, %v2190_v6 }
 0x93a   : > { %v2414_v11 = vmul.f32 %v2406_v59, %v2070_v49  ;;  %v2303_v63 = vadd.f32 0.112945676, %v2302_v0  ;;  %v2292_v4 = vadd.f32 0.05243302, %v2291_v51  ;;  %v2214_v48 = vadd.f32 0.18741608, %v2213_v1 }
 0x93b   : > { %3175 = vrcp.f32 %v4644_v41  ;;  %v2225_v3 = vadd.f32 0.4994258, %v2224_v21  ;;  %v2255_v53 = vmul.f32 %v2254_v29, %v4594_v12  ;;  %v2192_v49 = vadd.f32 %v4646_v47, %v2191_v31 }
 0x93c   : > { %v2421_v15 = vpack.c.bf16 %v2414_v11, %v2413_v20  ;;  %v2304_v60 = vmul.f32 %v2303_v63, %v4626_v44  ;;  %v2293_v62 = vmul.f32 %v2292_v4, %v4626_v44  ;;  %vm2194_vm14 = vweird.f32 %v4646_v47 }
 0x93d   : > { %v2226_v46 = vmul.f32 %v2225_v3, %v4587_v52  ;;  %v2199_v37 = vand.u32 2147483648, %v4631_v25  ;;  %v2279_v26 = vand.u32 2147483648, %v4644_v41  ;;  %v2197_v7 = vand.u32 2147483647, %v4631_v25  ;;  %vm4679_vm4 = vmor %vm2193_vm2, %vm2194_vm14 }
 0x93e   : > { %2503 = vmatmul.bf16.vlgmr.msrb.gmra.mxu0 %v2421_v15  ;;  %v2305_v32 = vadd.f32 0.4994258, %v2304_v60  ;;  %v2294_v59 = vadd.f32 0.18741608, %v2293_v62  ;;  %v2176_v12 = vadd.f32 1.1283791, %v2175_v36  ;;  %vm2273_vm3 = vweird.f32 %v4644_v41 }
 0x93f   : > { %v4663_v13 = vadd.f32 1.0, %v2226_v46  ;;  %v2277_v14 = vand.u32 2147483647, %v4644_v41  ;;  %v2215_v20 = vmul.f32 %v2214_v48, %v4587_v52  ;;  %v2256_v11 = vadd.f32 1.1283791, %v2255_v53 }
 0x940   : > { %v2306_v34 = vmul.f32 %v2305_v32, %v4626_v44  ;;  %v2196_v25 = vsel %vm4679_vm4, %v4646_v47, %v2192_v49  ;;  %v2200_v63 = vor.u32 1.1754944e-38, %v2199_v37  ;;  %v2280_v8 = vor.u32 1.1754944e-38, %v2279_v26 }
 0x941   : > { %v3176_v28 = vpop.eup %3175  ;;  %3177 = vrcp.f32 %v4663_v13  ;;  %vm2198_vm6 = vcmp.eq.f32.partialorder %v2197_v7, 8.507059e+37  ;;  %v2177_v61 = vmul.f32 %v2176_v12, %v4531_v56  ;;  %vm2278_vm7 = vcmp.eq.f32.partialorder %v2277_v14, 8.507059e+37 }
 0x942   : > { %v2269_v27 = vmul.f32 %v3176_v28, %v4644_v41  ;;  %v4665_v55 = vadd.f32 1.0, %v2306_v34  ;;  %vm2274_vm15 = vweird.f32 %v3176_v28  ;;  %v2295_v41 = vmul.f32 %v2294_v59, %v4626_v44 }
 0x943   : > { %vm4684_vm5 = vmor %vm2273_vm3, %vm2274_vm15  ;;  %v2201_v21 = vsel %vm2198_vm6, %v2200_v63, %v2196_v25  ;;  %v2216_v60 = vadd.f32 1.1283791, %v2215_v20  ;;  %v2257_v47 = vmul.f32 %v2256_v11, %v4578_v9  ;;  %v2237_v44 = vand.u32 2147483647, %v4663_v13 }
 0x944   : > { %v2270_v43 = vsub.f32 1.0, %v2269_v27  ;;  %3179 = vrcp.f32 %v4665_v55  ;;  %v2296_v3 = vadd.f32 1.1283791, %v2295_v41  ;;  %v2319_v45 = vand.u32 2147483648, %v4665_v55 }
 0x945   : > { %v2202_v1 = vmul.f32 %v2201_v21, %v2177_v61  ;;  %v2317_v27 = vand.u32 2147483647, %v4665_v55  ;;  %v2217_v9 = vmul.f32 %v2216_v60, %v4558_v2  ;;  %vm2233_vm10 = vweird.f32 %v4663_v13 }
 0x946   : > { %v2271_v40 = vmul.f32 %v3176_v28, %v2270_v43  ;;  %v2297_v31 = vmul.f32 %v2296_v3, %v4615_v54  ;;  %vm2313_vm11 = vweird.f32 %v4665_v55  ;;  %v2320_v36 = vor.u32 1.1754944e-38, %v2319_v45 }
 0x947   : > { %v3178_v51 = vpop.eup %3177  ;;  %v2948_v48 = vclamps-f32 %v2202_v1, 1.0  ;;  %vm2238_vm13 = vcmp.eq.f32.partialorder %v2237_v44, 8.507059e+37  ;;  %vm2318_vm14 = vcmp.eq.f32.partialorder %v2317_v27, 8.507059e+37  ;;  %v2072_v12 = vmul.f32 0.5, %v4548_v39 }
 0x948   : > { %v2272_v24 = vadd.f32 %v3176_v28, %v2271_v40  ;;  %v2229_v52 = vmul.f32 %v3178_v51, %v4663_v13  ;;  %vm2234_vm8 = vweird.f32 %v3178_v51  ;;  %v2073_v50 = vmul.f32 0.5, %v4572_v17 }
 0x949   : > { %vm2235_vm12 = vmor %vm2233_vm10, %vm2234_vm8  ;;  %v2407_v26 = vadd.f32 1.0, %v2948_v48  ;;  %v2074_v20 = vmul.f32 0.5, %v4607_v42 }
 0x94a   : > { %v2276_v23 = vsel %vm4684_vm5, %v3176_v28, %v2272_v24  ;;  %v3180_v15 = vpop.eup %3179  ;;  %v2230_v6 = vsub.f32 1.0, %v2229_v52  ;;  %v2239_v28 = vand.u32 2147483648, %v4663_v13 }
 0x94b   : > { %v2309_v18 = vmul.f32 %v3180_v15, %v4665_v55  ;;  %v2281_v4 = vsel %vm2278_vm7, %v2280_v8, %v2276_v23  ;;  %vm2314_vm9 = vweird.f32 %v3180_v15  ;;  %v2071_v55 = vmul.f32 0.5, %v4525_v30 }
 0x94c   : > { %v2231_v29 = vmul.f32 %v3178_v51, %v2230_v6  ;;  %v2282_v56 = vmul.f32 %v2281_v4, %v2257_v47  ;;  %v2240_v43 = vor.u32 1.1754944e-38, %v2239_v28  ;;  %vm2315_vm0 = vmor %vm2313_vm11, %vm2314_vm9 }
 0x94d   : > { %v2310_v32 = vsub.f32 1.0, %v2309_v18  ;;  %v2415_v0 = vmul.f32 %v2407_v26, %v2071_v55 }
 0x94e   : > { %v2232_v34 = vadd.f32 %v3178_v51, %v2231_v29  ;;  %v2950_v40 = vclamps-f32 %v2282_v56, 1.0 }
 0x94f   : > { %v2311_v46 = vmul.f32 %v3180_v15, %v2310_v32 }
 0x950   : > { %v2236_v53 = vsel %vm2235_vm12, %v3178_v51, %v2232_v34  ;;  %v2409_v54 = vadd.f32 1.0, %v2950_v40 }
 0x951   : > { %v2312_v62 = vadd.f32 %v3180_v15, %v2311_v46  ;;  %v2241_v59 = vsel %vm2238_vm13, %v2240_v43, %v2236_v53 }
 0x952   : > { %v2242_v37 = vmul.f32 %v2241_v59, %v2217_v9  ;;  %v2417_v51 = vmul.f32 %v2409_v54, %v2073_v50 }
 0x953   : > { %v2316_v49 = vsel %vm2315_vm0, %v3180_v15, %v2312_v62 }
 0x954   : > { %v2321_v2 = vsel %vm2318_vm14, %v2320_v36, %v2316_v49  ;;  %v2949_v13 = vclamps-f32 %v2242_v37, 1.0 }
 0x955   : > { %v2322_v24 = vmul.f32 %v2321_v2, %v2297_v31 }
 0x956   : > { %v2408_v14 = vadd.f32 1.0, %v2949_v13 }
 0x957   : > { %v2951_v7 = vclamps-f32 %v2322_v24, 1.0 }
 0x958   : > { %v2416_v25 = vmul.f32 %v2408_v14, %v2072_v12 }
 0x959   : > { %v2410_v11 = vadd.f32 1.0, %v2951_v7 }
 0x95a   : > { %v2422_v41 = vpack.c.bf16 %v2416_v25, %v2415_v0 }
 0x95b   : > { %v2418_v23 = vmul.f32 %v2410_v11, %v2074_v20 }
 0x95c   : > { %2508 = vmatmul.bf16.gmra.mxu0 %v2422_v41 }
 0x95d   : > { %v2423_v63 = vpack.c.bf16 %v2418_v23, %v2417_v51 }
 0x95f   : > { %2513 = vmatmul.bf16.vlgmr.msra.gmra.mxu1 %v2423_v63 }
 0x979   : > { %v2064_v15 = vpop.f32.mrf.mxu3 }
 0x97a   : > { %v4711_v8 = vadd.f32 %v4491_v5, %v2064_v15 }
 0x97c   : > { %v4714_v30 = vmul.f32 0.70710677, %v4711_v8 }
 0x97e   : > { %v2325_v39 = vmul.f32 %v4714_v30, %v4714_v30 }
 0x980   : > { %v2326_v17 = vmin.f32 %v2325_v39, 16.0 }
 0x981   : > { %v2066_v42 = vpop.f32.mrf.mxu3 }
 0x982   : > { %v2327_v52 = vmul.f32 2.1237322e-06, %v2326_v17  ;;  %v2338_v61 = vmul.f32 3.8918573e-05, %v2326_v17  ;;  %v4719_v18 = vadd.f32 %v4491_v5, %v2066_v42 }
 0x984   : > { %v2328_v21 = vadd.f32 0.00028619796, %v2327_v52  ;;  %v2339_v60 = vadd.f32 0.001143296, %v2338_v61  ;;  %v4722_v47 = vmul.f32 0.70710677, %v4719_v18 }
 0x986   : > { %v2340_v4 = vmul.f32 %v2339_v60, %v2326_v17  ;;  %v2365_v6 = vmul.f32 %v4722_v47, %v4722_v47  ;;  %v2329_v3 = vmul.f32 %v2328_v21, %v2326_v17 }
 0x988   : > { %v2341_v32 = vadd.f32 0.014752088, %v2340_v4  ;;  %v2366_v44 = vmin.f32 %v2365_v6, 16.0  ;;  %v2330_v29 = vadd.f32 0.0036580483, %v2329_v3 }
 0x98a   : > { %v2342_v28 = vmul.f32 %v2341_v32, %v2326_v17  ;;  %v2367_v45 = vmul.f32 2.1237322e-06, %v2366_v44  ;;  %v2378_v1 = vmul.f32 3.8918573e-05, %v2366_v44  ;;  %v2331_v31 = vmul.f32 %v2330_v29, %v2326_v17 }
 0x98c   : > { %v2343_v56 = vadd.f32 0.112945676, %v2342_v28  ;;  %v2368_v46 = vadd.f32 0.00028619796, %v2367_v45  ;;  %v2379_v5 = vadd.f32 0.001143296, %v2378_v1 }
 0x98d   : > { %v2332_v40 = vadd.f32 0.05243302, %v2331_v31 }
 0x98e   : > { %v2344_v27 = vmul.f32 %v2343_v56, %v2326_v17  ;;  %v2369_v9 = vmul.f32 %v2368_v46, %v2366_v44  ;;  %v2380_v34 = vmul.f32 %v2379_v5, %v2366_v44 }
 0x98f   : > { %v2333_v24 = vmul.f32 %v2332_v40, %v2326_v17 }
 0x990   : > { %v2345_v62 = vadd.f32 0.4994258, %v2344_v27  ;;  %v2370_v43 = vadd.f32 0.0036580483, %v2369_v9  ;;  %v2381_v36 = vadd.f32 0.014752088, %v2380_v34 }
 0x991   : > { %v2334_v55 = vadd.f32 0.18741608, %v2333_v24  ;;  %v2075_v9 = vmul.f32 0.5, %v4711_v8  ;;  %v2076_v34 = vmul.f32 0.5, %v4719_v18 }
 0x992   : > { %v2346_v48 = vmul.f32 %v2345_v62, %v2326_v17  ;;  %v2382_v53 = vmul.f32 %v2381_v36, %v2366_v44  ;;  %v2371_v59 = vmul.f32 %v2370_v43, %v2366_v44 }
 0x993   : > { %v2335_v11 = vmul.f32 %v2334_v55, %v2326_v17 }
 0x994   : > { %v2347_v49 = vadd.f32 1.0, %v2346_v48  ;;  %v2383_v2 = vadd.f32 0.112945676, %v2382_v53  ;;  %v2372_v13 = vadd.f32 0.05243302, %v2371_v59 }
 0x995   : > { %v2336_v63 = vadd.f32 1.1283791, %v2335_v11  ;;  %v3100_v48 = vld [vmem:[%s4904_s10 + $0x1] ss:$0 sm:$0xff] }
 0x996   : > { %3181 = vrcp.f32 %v2347_v49  ;;  %v2384_v37 = vmul.f32 %v2383_v2, %v2366_v44  ;;  %v2373_v14 = vmul.f32 %v2372_v13, %v2366_v44  ;;  %v2359_v25 = vand.u32 2147483648, %v2347_v49 }
 0x997   : > { %v2357_v23 = vand.u32 2147483647, %v2347_v49  ;;  %vm2353_vm2 = vweird.f32 %v2347_v49  ;;  %v2337_v60 = vmul.f32 %v2336_v63, %v4714_v30 }
 0x998   : > { %v2385_v26 = vadd.f32 0.4994258, %v2384_v37  ;;  %v2374_v51 = vadd.f32 0.18741608, %v2373_v14  ;;  %v2360_v42 = vor.u32 1.1754944e-38, %v2359_v25 }
 0x999   : > { %vm2358_vm4 = vcmp.eq.f32.partialorder %v2357_v23, 8.507059e+37 }
 0x99a   : > { %v2386_v54 = vmul.f32 %v2385_v26, %v2366_v44  ;;  %v2375_v52 = vmul.f32 %v2374_v51, %v2366_v44 }
 0x99c   : > { %v3182_v7 = vpop.eup %3181  ;;  %v2387_v50 = vadd.f32 1.0, %v2386_v54  ;;  %v2376_v17 = vadd.f32 1.1283791, %v2375_v52 }
 0x99d   : > { %v2349_v12 = vmul.f32 %v3182_v7, %v2347_v49  ;;  %vm2354_vm15 = vweird.f32 %v3182_v7 }
 0x99e   : > { %3183 = vrcp.f32 %v2387_v50  ;;  %vm2355_vm3 = vmor %vm2353_vm2, %vm2354_vm15  ;;  %v2399_v6 = vand.u32 2147483648, %v2387_v50  ;;  %v2397_v28 = vand.u32 2147483647, %v2387_v50  ;;  %vm2393_vm6 = vweird.f32 %v2387_v50 }
 0x99f   : > { %v2350_v20 = vsub.f32 1.0, %v2349_v12  ;;  %v2377_v56 = vmul.f32 %v2376_v17, %v4722_v47 }
 0x9a0   : > { %v2400_v1 = vor.u32 1.1754944e-38, %v2399_v6  ;;  %vm2398_vm8 = vcmp.eq.f32.partialorder %v2397_v28, 8.507059e+37 }
 0x9a1   : > { %v2351_v0 = vmul.f32 %v3182_v7, %v2350_v20 }
 0x9a3   : > { %v2352_v41 = vadd.f32 %v3182_v7, %v2351_v0 }
 0x9a4   : > { %v3184_v15 = vpop.eup %3183 }
 0x9a5   : > { %v2356_v39 = vsel %vm2355_vm3, %v3182_v7, %v2352_v41  ;;  %v2389_v61 = vmul.f32 %v3184_v15, %v2387_v50  ;;  %vm2394_vm5 = vweird.f32 %v3184_v15 }
 0x9a6   : > { %v2361_v21 = vsel %vm2358_vm4, %v2360_v42, %v2356_v39  ;;  %vm2395_vm7 = vmor %vm2393_vm6, %vm2394_vm5 }
 0x9a7   : > { %v2390_v4 = vsub.f32 1.0, %v2389_v61  ;;  %v2362_v3 = vmul.f32 %v2361_v21, %v2337_v60 }
 0x9a9   : > { %v2391_v32 = vmul.f32 %v3184_v15, %v2390_v4  ;;  %v2952_v29 = vclamps-f32 %v2362_v3, 1.0 }
 0x9ab   : > { %v2392_v45 = vadd.f32 %v3184_v15, %v2391_v32  ;;  %v2411_v27 = vadd.f32 1.0, %v2952_v29 }
 0x9ad   : > { %v2396_v44 = vsel %vm2395_vm7, %v3184_v15, %v2392_v45  ;;  %v2419_v62 = vmul.f32 %v2411_v27, %v2075_v9 }
 0x9ae   : > { %v2401_v46 = vsel %vm2398_vm8, %v2400_v1, %v2396_v44 }
 0x9af   : > { %v2402_v5 = vmul.f32 %v2401_v46, %v2377_v56 }
 0x9b1   : > { %v2953_v30 = vclamps-f32 %v2402_v5, 1.0 }
 0x9b3   : > { %v2412_v31 = vadd.f32 1.0, %v2953_v30 }
 0x9b5   : > { %v2420_v43 = vmul.f32 %v2412_v31, %v2076_v34 }
 0x9b7   : > { %v2424_v36 = vpack.c.bf16 %v2420_v43, %v2419_v62 }
 0x9b9   : > { %2518 = vmatmul.bf16.vlgmr.msra.gmra.mxu2 %v2424_v36 }
 0x9bb   : > { %v2504_v47 = vpop.f32.mrf.mxu0 }
 0x9bc   : > { %v2505_v53 = vadd.f32 %v3100_v48, %v2504_v47 }
 0x9be   : > { %v2524_v40 = vadd.f32 %v2505_v53, %v4438_v19 }
 0x9c0   : > { %v2536_v49 = vsel %vm696_vm1, %v2524_v40, 0.0 }
 0x9c1   : > { %2537 = vadd.xlane.f32.xlu0 %v2536_v49 }
 0x9c3   : > { %v2506_v59 = vpop.f32.mrf.mxu0 }
 0x9c4   : > { %v2507_v8 = vadd.f32 %v3100_v48, %v2506_v59 }
 0x9c6   : > { %v2525_v18 = vadd.f32 %v2507_v8, %v4441_v33 }
 0x9c8   : > { %v2539_v2 = vsel %vm696_vm1, %v2525_v18, 0.0 }
 0x9c9   : > { %2540 = vadd.xlane.f32.xlu1 %v2539_v2 }
 0x9d9   : > { %v2509_v37 = vpop.f32.mrf.mxu0 }
 0x9da   : > { %v2510_v24 = vadd.f32 %v3100_v48, %v2509_v37 }
 0x9dc   : > { %v2514_v13 = vpop.f32.mrf.mxu1  ;;  %v2526_v54 = vadd.f32 %v2510_v24, %v4452_v35 }
 0x9dd   : > { %v2515_v26 = vadd.f32 %v3100_v48, %v2514_v13 }
 0x9de   : > { %v2542_v19 = vsel %vm696_vm1, %v2526_v54, 0.0 }
 0x9df   : > { %v2528_v7 = vadd.f32 %v2515_v26, %v4465_v16  ;;  %2543 = vadd.xlane.f32.xlu2 %v2542_v19 }
 0x9e1   : > { %v2548_v55 = vsel %vm696_vm1, %v2528_v7, 0.0  ;;  %v2511_v12 = vpop.f32.mrf.mxu0 }
 0x9e2   : > { %2549 = vadd.xlane.f32.xlu1 %v2548_v55  ;;  %v2512_v14 = vadd.f32 %v3100_v48, %v2511_v12 }
 0x9e4   : > { %v2516_v33 = vpop.f32.mrf.mxu1  ;;  %v2527_v20 = vadd.f32 %v2512_v14, %v4455_v58 }
 0x9e5   : > { %v2517_v50 = vadd.f32 %v3100_v48, %v2516_v33 }
 0x9e6   : > { %v2545_v0 = vsel %vm696_vm1, %v2527_v20, 0.0 }
 0x9e7   : > { %v2529_v11 = vadd.f32 %v2517_v50, %v4468_v10  ;;  %2546 = vadd.xlane.f32.xlu0 %v2545_v0 }
 0x9e9   : > { %v2551_v35 = vsel %vm696_vm1, %v2529_v11, 0.0 }
 0x9ea   : > { %2552 = vadd.xlane.f32.xlu2 %v2551_v35  ;;  %v4808_v35 = vld [vmem:[%s4906_s12 + $0x1] ss:$0 sm:$0xff] }
 0xa34   : > { %v2538_v16 = vpop.xlane.xlu0 %2537 }
 0xa35   : > { %v2560_v25 = vmul.f32 %v2538_v16, %v3639_v22 }
 0xa37   : > { %v4746_v51 = vsub.f32 %v2524_v40, %v2560_v25 }
 0xa39   : > { %v2576_v23 = vmul.f32 %v4746_v51, %v4746_v51 }
 0xa3b   : > { %v2584_v41 = vsel %vm696_vm1, %v2576_v23, 0.0 }
 0xa3c   : > { %v2541_v63 = vpop.xlane.xlu1 %2540  ;;  %2585 = vadd.xlane.f32.xlu2 %v2584_v41  ;;  %v2519_v58 = vpop.f32.mrf.mxu2 }
 0xa3d   : > { %v2561_v10 = vmul.f32 %v2541_v63, %v3639_v22  ;;  %v2520_v15 = vadd.f32 %v3100_v48, %v2519_v58 }
 0xa3f   : > { %v2530_v39 = vadd.f32 %v2520_v15, %v4480_v38  ;;  %v4753_v42 = vsub.f32 %v2525_v18, %v2561_v10 }
 0xa41   : > { %v2554_v52 = vsel %vm696_vm1, %v2530_v39, 0.0  ;;  %v2577_v60 = vmul.f32 %v4753_v42, %v4753_v42 }
 0xa42   : > { %2555 = vadd.xlane.f32.xlu0 %v2554_v52 }
 0xa43   : > { %v2587_v6 = vsel %vm696_vm1, %v2577_v60, 0.0 }
 0xa44   : > { %v2521_v61 = vpop.f32.mrf.mxu2 }
 0xa45   : > { %v2522_v21 = vadd.f32 %v3100_v48, %v2521_v61 }
 0xa47   : > { %v2531_v4 = vadd.f32 %v2522_v21, %v4483_v57 }
 0xa49   : > { %v2557_v17 = vsel %vm696_vm1, %v2531_v4, 0.0 }
 0xa4a   : > { %2558 = vadd.xlane.f32.xlu1 %v2557_v17  ;;  %2588 = vadd.xlane.f32.xlu0 %v2587_v6 }
 0xa52   : > { %v2544_v3 = vpop.xlane.xlu2 %2543 }
 0xa53   : > { %v2562_v38 = vmul.f32 %v2544_v3, %v3639_v22 }
 0xa55   : > { %v2550_v32 = vpop.xlane.xlu1 %2549  ;;  %v4763_v45 = vsub.f32 %v2526_v54, %v2562_v38 }
 0xa56   : > { %v2564_v28 = vmul.f32 %v2550_v32, %v3639_v22 }
 0xa57   : > { %v2578_v29 = vmul.f32 %v4763_v45, %v4763_v45 }
 0xa58   : > { %v4765_v1 = vsub.f32 %v2528_v7, %v2564_v28 }
 0xa59   : > { %v2590_v56 = vsel %vm696_vm1, %v2578_v29, 0.0 }
 0xa5a   : > { %v2580_v57 = vmul.f32 %v4765_v1, %v4765_v1  ;;  %v2547_v44 = vpop.xlane.xlu0 %2546  ;;  %2591 = vadd.xlane.f32.xlu1 %v2590_v56 }
 0xa5b   : > { %v2563_v5 = vmul.f32 %v2547_v44, %v3639_v22 }
 0xa5c   : > { %v2596_v46 = vsel %vm696_vm1, %v2580_v57, 0.0 }
 0xa5d   : > { %2597 = vadd.xlane.f32.xlu0 %v2596_v46  ;;  %v2553_v27 = vpop.xlane.xlu2 %2552  ;;  %v4775_v9 = vsub.f32 %v2527_v20, %v2563_v5  ;;  %v4802_v20 = vld [vmem:[%s4905_s11 + $0x1] ss:$0 sm:$0xff] }
 0xa5e   : > { %v2565_v30 = vmul.f32 %v2553_v27, %v3639_v22 }
 0xa5f   : > { %v2579_v31 = vmul.f32 %v4775_v9, %v4775_v9 }
 0xa60   : > { %v4777_v34 = vsub.f32 %v2529_v11, %v2565_v30 }
 0xa61   : > { %v2593_v43 = vsel %vm696_vm1, %v2579_v31, 0.0 }
 0xa62   : > { %v2581_v62 = vmul.f32 %v4777_v34, %v4777_v34  ;;  %2594 = vadd.xlane.f32.xlu2 %v2593_v43 }
 0xa64   : > { %v2599_v36 = vsel %vm696_vm1, %v2581_v62, 0.0 }
 0xa65   : > { %2600 = vadd.xlane.f32.xlu1 %v2599_v36 }
 0xaaf   : > { %v2586_v48 = vpop.xlane.xlu2 %2585 }
 0xab0   : > { %v2608_v47 = vmul.f32 %v2586_v48, %v3639_v22 }
 0xab2   : > { %v2616_v53 = vadd.f32 1e-12, %v2608_v47 }
 0xab4   : > { %3185 = vrsqrt.f32 %v2616_v53  ;;  %vm2630_vm10 = vweird.f32 %v2616_v53 }
 0xab5   : > { %v2556_v40 = vpop.xlane.xlu0 %2555 }
 0xab6   : > { %v2566_v49 = vmul.f32 %v2556_v40, %v3639_v22 }
 0xab8   : > { %v4787_v59 = vsub.f32 %v2530_v39, %v2566_v49 }
 0xaba   : > { %v3186_v8 = vpop.eup %3185  ;;  %v2582_v18 = vmul.f32 %v4787_v59, %v4787_v59 }
 0xabb   : > { %v2625_v2 = vmul.f32 %v3186_v8, %v2616_v53  ;;  %vm2631_vm9 = vweird.f32 %v3186_v8 }
 0xabc   : > { %v2602_v37 = vsel %vm696_vm1, %v2582_v18, 0.0  ;;  %vm2632_vm11 = vmor %vm2630_vm10, %vm2631_vm9 }
 0xabd   : > { %v2626_v24 = vmul.f32 %v3186_v8, %v2625_v2  ;;  %v2559_v13 = vpop.xlane.xlu1 %2558  ;;  %2603 = vadd.xlane.f32.xlu2 %v2602_v37  ;;  %v2589_v26 = vpop.xlane.xlu0 %2588 }
 0xabe   : > { %v2567_v54 = vmul.f32 %v2559_v13, %v3639_v22  ;;  %v2609_v7 = vmul.f32 %v2589_v26, %v3639_v22 }
 0xabf   : > { %v2627_v19 = vmul.f32 0.5, %v2626_v24 }
 0xac0   : > { %v4794_v55 = vsub.f32 %v2531_v4, %v2567_v54  ;;  %v2617_v12 = vadd.f32 1e-12, %v2609_v7 }
 0xac1   : > { %v2628_v14 = vsub.f32 1.5, %v2627_v19 }
 0xac2   : > { %3187 = vrsqrt.f32 %v2617_v12  ;;  %v2583_v33 = vmul.f32 %v4794_v55, %v4794_v55  ;;  %vm2640_vm0 = vweird.f32 %v2617_v12 }
 0xac3   : > { %v2629_v50 = vmul.f32 %v3186_v8, %v2628_v14 }
 0xac4   : > { %v2605_v11 = vsel %vm696_vm1, %v2583_v33, 0.0 }
 0xac5   : > { %v2633_v0 = vsel %vm2632_vm11, %v3186_v8, %v2629_v50  ;;  %2606 = vadd.xlane.f32.xlu0 %v2605_v11 }
 0xac6   : > { %v2704_v16 = vmul.f32 %v2633_v0, %v4746_v51 }
 0xac8   : > { %v3188_v25 = vpop.eup %3187  ;;  %v2715_v23 = vmul.f32 %v4802_v20, %v2704_v16 }
 0xac9   : > { %v2635_v41 = vmul.f32 %v3188_v25, %v2617_v12  ;;  %vm2641_vm12 = vweird.f32 %v3188_v25 }
 0xaca   : > { %v2726_v63 = vadd.f32 %v4808_v35, %v2715_v23  ;;  %vm2642_vm13 = vmor %vm2640_vm0, %vm2641_vm12 }
 0xacb   : > { %v2636_v58 = vmul.f32 %v3188_v25, %v2635_v41 }
 0xacc   : > { %2734 = vst.msk [vmem:[%s4815_s30] sm:$0xff] %vm696_vm1, %v2726_v63 }
 0xacd   : > { %v2637_v10 = vmul.f32 0.5, %v2636_v58  ;;  %v2592_v52 = vpop.xlane.xlu1 %2591 }
 0xace   : > { %v2610_v51 = vmul.f32 %v2592_v52, %v3639_v22 }
 0xacf   : > { %v2638_v15 = vsub.f32 1.5, %v2637_v10 }
 0xad0   : > { %v2598_v61 = vpop.xlane.xlu0 %2597  ;;  %v2618_v17 = vadd.f32 1e-12, %v2610_v51 }
 0xad1   : > { %v2639_v39 = vmul.f32 %v3188_v25, %v2638_v15  ;;  %v2612_v60 = vmul.f32 %v2598_v61, %v3639_v22 }
 0xad2   : > { %3189 = vrsqrt.f32 %v2618_v17  ;;  %vm2650_vm2 = vweird.f32 %v2618_v17 }
 0xad3   : > { %v2643_v21 = vsel %vm2642_vm13, %v3188_v25, %v2639_v39  ;;  %v2620_v6 = vadd.f32 1e-12, %v2612_v60 }
 0xad4   : > { %v2705_v4 = vmul.f32 %v2643_v21, %v4753_v42 }
 0xad5   : > { %3191 = vrsqrt.f32 %v2620_v6  ;;  %v2595_v32 = vpop.xlane.xlu2 %2594  ;;  %vm2670_vm4 = vweird.f32 %v2620_v6 }
 0xad6   : > { %v2716_v3 = vmul.f32 %v4802_v20, %v2705_v4  ;;  %v2611_v28 = vmul.f32 %v2595_v32, %v3639_v22 }
 0xad8   : > { %v2727_v38 = vadd.f32 %v4808_v35, %v2716_v3  ;;  %v2601_v29 = vpop.xlane.xlu1 %2600  ;;  %v3190_v56 = vpop.eup %3189  ;;  %v2619_v44 = vadd.f32 1e-12, %v2611_v28 }
 0xad9   : > { %v2613_v57 = vmul.f32 %v2601_v29, %v3639_v22  ;;  %v2645_v42 = vmul.f32 %v3190_v56, %v2618_v17  ;;  %vm2651_vm14 = vweird.f32 %v3190_v56 }
 0xada   : > { %2735 = vst.msk [vmem:[%s4815_s30 + $0x8] sm:$0xff] %vm696_vm1, %v2727_v38  ;;  %3193 = vrsqrt.f32 %v2619_v44  ;;  %vm2652_vm3 = vmor %vm2650_vm2, %vm2651_vm14  ;;  %vm2660_vm8 = vweird.f32 %v2619_v44 }
 0xadb   : > { %v3192_v46 = vpop.eup %3191  ;;  %v2621_v5 = vadd.f32 1e-12, %v2613_v57  ;;  %v2646_v30 = vmul.f32 %v3190_v56, %v2645_v42 }
 0xadc   : > { %v2665_v27 = vmul.f32 %v3192_v46, %v2620_v6  ;;  %vm2671_vm15 = vweird.f32 %v3192_v46 }
 0xadd   : > { %3195 = vrsqrt.f32 %v2621_v5  ;;  %v2647_v62 = vmul.f32 0.5, %v2646_v30  ;;  %vm2672_vm5 = vmor %vm2670_vm4, %vm2671_vm15  ;;  %vm2680_vm10 = vweird.f32 %v2621_v5 }
 0xade   : > { %v2666_v31 = vmul.f32 %v3192_v46, %v2665_v27 }
 0xadf   : > { %v2648_v36 = vsub.f32 1.5, %v2647_v62 }
 0xae0   : > { %v2667_v43 = vmul.f32 0.5, %v2666_v31  ;;  %v3194_v48 = vpop.eup %3193 }
 0xae1   : > { %v2649_v40 = vmul.f32 %v3190_v56, %v2648_v36  ;;  %v2655_v49 = vmul.f32 %v3194_v48, %v2619_v44  ;;  %vm2661_vm6 = vweird.f32 %v3194_v48 }
 0xae2   : > { %v2668_v47 = vsub.f32 1.5, %v2667_v43  ;;  %vm2662_vm9 = vmor %vm2660_vm8, %vm2661_vm6 }
 0xae3   : > { %v3196_v53 = vpop.eup %3195  ;;  %v2653_v2 = vsel %vm2652_vm3, %v3190_v56, %v2649_v40  ;;  %v2656_v37 = vmul.f32 %v3194_v48, %v2655_v49 }
 0xae4   : > { %v2669_v8 = vmul.f32 %v3192_v46, %v2668_v47  ;;  %v2675_v18 = vmul.f32 %v3196_v53, %v2621_v5  ;;  %v2706_v24 = vmul.f32 %v2653_v2, %v4763_v45  ;;  %vm2681_vm7 = vweird.f32 %v3196_v53 }
 0xae5   : > { %v2657_v54 = vmul.f32 0.5, %v2656_v37  ;;  %vm2682_vm11 = vmor %vm2680_vm10, %vm2681_vm7 }
 0xae6   : > { %v2673_v13 = vsel %vm2672_vm5, %v3192_v46, %v2669_v8  ;;  %v2676_v26 = vmul.f32 %v3196_v53, %v2675_v18  ;;  %v2717_v19 = vmul.f32 %v4802_v20, %v2706_v24 }
 0xae7   : > { %v2708_v7 = vmul.f32 %v2673_v13, %v4765_v1  ;;  %v2658_v14 = vsub.f32 1.5, %v2657_v54 }
 0xae8   : > { %v2677_v12 = vmul.f32 0.5, %v2676_v26  ;;  %v2728_v50 = vadd.f32 %v4808_v35, %v2717_v19 }
 0xae9   : > { %v2719_v33 = vmul.f32 %v4802_v20, %v2708_v7  ;;  %v2659_v0 = vmul.f32 %v3194_v48, %v2658_v14 }
 0xaea   : > { %v2678_v11 = vsub.f32 1.5, %v2677_v12  ;;  %2736 = vst.msk [vmem:[%s4815_s30 + $0x10] sm:$0xff] %vm696_vm1, %v2728_v50 }
 0xaeb   : > { %v2730_v45 = vadd.f32 %v4808_v35, %v2719_v33  ;;  %v2663_v16 = vsel %vm2662_vm9, %v3194_v48, %v2659_v0 }
 0xaec   : > { %v2679_v1 = vmul.f32 %v3196_v53, %v2678_v11  ;;  %v2707_v25 = vmul.f32 %v2663_v16, %v4775_v9 }
 0xaed   : > { %2738 = vst.msk [vmem:[%s4815_s30 + $0x20] sm:$0xff] %vm696_vm1, %v2730_v45 }
 0xaee   : > { %v2683_v23 = vsel %vm2682_vm11, %v3196_v53, %v2679_v1  ;;  %v2718_v63 = vmul.f32 %v4802_v20, %v2707_v25 }
 0xaef   : > { %v2709_v41 = vmul.f32 %v2683_v23, %v4777_v34 }
 0xaf0   : > { %v2729_v10 = vadd.f32 %v4808_v35, %v2718_v63 }
 0xaf1   : > { %v2720_v58 = vmul.f32 %v4802_v20, %v2709_v41 }
 0xaf2   : > { %2737 = vst.msk [vmem:[%s4815_s30 + $0x18] sm:$0xff] %vm696_vm1, %v2729_v10 }
 0xaf3   : > { %v2731_v15 = vadd.f32 %v4808_v35, %v2720_v58 }
 0xaf5   : > { %2739 = vst.msk [vmem:[%s4815_s30 + $0x28] sm:$0xff] %vm696_vm1, %v2731_v15 }
 0xb30   : > { %v2604_v39 = vpop.xlane.xlu2 %2603 }
 0xb31   : > { %v2614_v52 = vmul.f32 %v2604_v39, %v3639_v22 }
 0xb33   : > { %v2622_v51 = vadd.f32 1e-12, %v2614_v52 }
 0xb35   : > { %3197 = vrsqrt.f32 %v2622_v51  ;;  %vm2690_vm0 = vweird.f32 %v2622_v51 }
 0xb38   : > { %v2607_v9 = vpop.xlane.xlu0 %2606 }
 0xb39   : > { %v2615_v34 = vmul.f32 %v2607_v9, %v3639_v22 }
 0xb3b   : > { %v3198_v61 = vpop.eup %3197  ;;  %v2623_v21 = vadd.f32 1e-12, %v2615_v34 }
 0xb3c   : > { %v2685_v60 = vmul.f32 %v3198_v61, %v2622_v51  ;;  %vm2691_vm12 = vweird.f32 %v3198_v61 }
 0xb3d   : > { %3199 = vrsqrt.f32 %v2623_v21  ;;  %vm2692_vm13 = vmor %vm2690_vm0, %vm2691_vm12  ;;  %vm2700_vm15 = vweird.f32 %v2623_v21 }
 0xb3e   : > { %v2686_v4 = vmul.f32 %v3198_v61, %v2685_v60 }
 0xb40   : > { %v2687_v17 = vmul.f32 0.5, %v2686_v4 }
 0xb42   : > { %v2688_v6 = vsub.f32 1.5, %v2687_v17 }
 0xb43   : > { %v3200_v3 = vpop.eup %3199 }
 0xb44   : > { %v2689_v38 = vmul.f32 %v3198_v61, %v2688_v6  ;;  %v2695_v32 = vmul.f32 %v3200_v3, %v2623_v21  ;;  %vm2701_vm14 = vweird.f32 %v3200_v3 }
 0xb45   : > { %vm2702_vm2 = vmor %vm2700_vm15, %vm2701_vm14 }
 0xb46   : > { %v2693_v28 = vsel %vm2692_vm13, %v3198_v61, %v2689_v38  ;;  %v2696_v29 = vmul.f32 %v3200_v3, %v2695_v32 }
 0xb47   : > { %v2710_v22 = vmul.f32 %v2693_v28, %v4787_v59 }
 0xb48   : > { %v2697_v57 = vmul.f32 0.5, %v2696_v29 }
 0xb49   : > { %v2721_v56 = vmul.f32 %v4802_v20, %v2710_v22 }
 0xb4a   : > { %v2698_v44 = vsub.f32 1.5, %v2697_v57 }
 0xb4b   : > { %v2732_v46 = vadd.f32 %v4808_v35, %v2721_v56 }
 0xb4c   : > { %v2699_v42 = vmul.f32 %v3200_v3, %v2698_v44 }
 0xb4d   : > { %2740 = vst.msk [vmem:[%s4815_s30 + $0x30] sm:$0xff] %vm696_vm1, %v2732_v46 }
 0xb4e   : > { %v2703_v59 = vsel %vm2702_vm2, %v3200_v3, %v2699_v42 }
 0xb4f   : > { %v2711_v5 = vmul.f32 %v2703_v59, %v4794_v55 }
 0xb51   : > { %v2722_v27 = vmul.f32 %v4802_v20, %v2711_v5 }
 0xb53   : > { %v2733_v30 = vadd.f32 %v4808_v35, %v2722_v27 }
 0xb55   : > { %2741 = vst.msk [vmem:[%s4815_s30 + $0x38] sm:$0xff] %vm696_vm1, %v2733_v30 }
 0xb56   : > { %3252 = shalt.err (!%p3249_p3)
}
 0xb57   : > { %s3290_s17 = smov 128   ;;  %s3291_s30 = smov 8  }
 0xb58   : > { %3049 = dma.vmem_to_hbm [thread:$0]  (%p3400_p5), %s2756_s21, 1024, %s2758_s22, %s2743_s29, %s3290_s17, %s3290_s17, %s3291_s30  }
 0xb59 PF: > { %p3055_p4 = scmp.ge.s32.totalorder %s3287_s28, 2  ;;  %s2772_s15 = sand.u32 1, %s3275_s25  }
 0xb5a   : > { %s2773_s1 = scalar_lea.sflag [#allocation3], %s2772_s15 }
 0xb5b   : > { %p3052_p7 = pnand %p3055_p4, %p3404_p6 }
 0xb5d   : > { %p3053_p8 = pneg %p3052_p7 }
 0xb5f   : > { %3270 = dma.done.wait (%p3053_p8), %s2773_s1, 1024  }
 0xb60   : > { %3272 = vsyncadd (%p3053_p8), %s2773_s1, 4294966272  ;;  %s4928_s23 = sld [smem:[#allocation5_spill]]  ;;  %p23_p9 = scmp.ge.s32.totalorder %s3387_s14, 4  }
 0xb61   : > { %s4929_s25 = smov %s3279_s26  ;;  %s4930_s26 = smov %s3283_s27 }
 0xb62   : > { %s4932_s28 = smov %s3387_s14  ;;  %25 = sbr.rel (!%p23_p9) target bundleno = 6 (0x6), region = 117 }
 0xb66   : > { %s4931_s27 = smov %s4928_s23 }
 0xb67   :  { %2779 = vsyncpa [#allocation3], 1 }
 0xb68   :  { %2781 = vsyncpa [#allocation3 + $0x1], 1 }

</bundles_post_ra>
